<compile_context>
chip_gen: v7x
topology: tpu7x:2x2x1
jax: 0.10.0
libtpu: 0.0.40
codegen_flags: <defaults>
</compile_context>

<pallas_src>
import functools

import jax
import jax.numpy as jnp
import numpy as np
from jax.experimental import pallas as pl
from jax.experimental.pallas import tpu as pltpu


def _double_conv_kernel(xp_ref, w1_ref, b1_ref, w2_ref, b2_ref, o_ref, mid_ref,
                        *, H, W):
    """Fused relu(conv2(relu(conv1(x)))) for one batch element.

    Layout trick: the zero-padded (H+2, W+2, C) image is flattened to
    ((H+2)*(W+2)+2, C) rows.  For a 3x3 tap (dh, dw) the patch matrix of ALL
    output positions — laid out on a fake (H, W+2) grid that carries 2 junk
    columns per row — is simply rows [dh*(W+2)+dw : dh*(W+2)+dw + H*(W+2)) of
    that flat image, so each conv is 9 shifted matmuls accumulated in f32.
    The junk columns are masked to zero so they double as the zero-padding
    columns of the conv1 output, which is scattered (row shift +W+3) into a
    padded VMEM scratch buffer and consumed identically by conv2.
    """
    WP = W + 2
    MO = H * WP                          # rows of the fake output grid
    Cp = o_ref.shape[-1]                 # lane-padded channel count

    # ---------------- conv1 + bias + ReLU (in-kernel im2col) ----------------
    acc = jnp.zeros((MO, Cp), jnp.float32)
    for dh in range(3):
        for dw in range(3):
            off = dh * WP + dw
            patch = xp_ref[0, off:off + MO, :]            # (MO, Cin) bf16
            acc += jnp.dot(patch, w1_ref[dh * 3 + dw],
                           preferred_element_type=jnp.float32)
    acc = jnp.maximum(acc + b1_ref[...], 0.0)

    # Zero the 2 junk columns (fake w in {W, W+1}); they become the zero
    # padding columns of the conv1 output.
    col = jax.lax.broadcasted_iota(jnp.int32, (MO, Cp), 0) % WP
    acc = jnp.where(col < W, acc, 0.0)

    # Scatter into the padded intermediate: (h, w) -> row (h+1)*WP + (w+1).
    mid_ref[...] = jnp.zeros_like(mid_ref)
    mid_ref[WP + 1:WP + 1 + MO, :] = acc.astype(mid_ref.dtype)

    # ---------------- conv2 + bias + ReLU ----------------
    acc2 = jnp.zeros((MO, Cp), jnp.float32)
    for dh in range(3):
        for dw in range(3):
            off = dh * WP + dw
            patch = mid_ref[off:off + MO, :]              # (MO, Cp) bf16
            acc2 += jnp.dot(patch, w2_ref[dh * 3 + dw],
                            preferred_element_type=jnp.float32)
    acc2 = jnp.maximum(acc2 + b2_ref[...], 0.0)
    o_ref[0] = acc2.astype(o_ref.dtype)


def double_conv2d(x_nchw, w1, b1, w2, b2):
    """relu(conv2(relu(conv1(x)))) with 3x3 convs, padding=1.

    x_nchw: (N, Cin, H, W) f32 (PyTorch layout)
    w1: (Cout, Cin, 3, 3)   b1: (Cout,)
    w2: (Cout, Cout, 3, 3)  b2: (Cout,)
    returns: (N, Cout, H, W) f32
    """
    N, Cin, H, W = x_nchw.shape
    Cout = w1.shape[0]
    # TODO(synk): only kernel_size=3 / padding=1 (the UNet configuration) is
    # lowered; other kernel_size/padding combinations are not implemented.
    assert w1.shape == (Cout, Cin, 3, 3) and w2.shape == (Cout, Cout, 3, 3)
    assert b1.shape == (Cout,) and b2.shape == (Cout,)

    WP = W + 2
    MSRC = (H + 2) * WP + 2        # flattened padded image (+2 overrun rows)
    MO = H * WP                    # fake output grid (incl. 2 junk cols / row)
    Cp = 128 * pl.cdiv(Cout, 128)  # lane-dense channel padding

    # NCHW -> NHWC, zero-pad spatially, flatten rows, cast to bf16.
    x = jnp.transpose(x_nchw, (0, 2, 3, 1))
    xp = jnp.pad(x, ((0, 0), (1, 1), (1, 1), (0, 0)))
    xp = xp.reshape(N, (H + 2) * WP, Cin)
    xp = jnp.pad(xp, ((0, 0), (0, 2), (0, 0))).astype(jnp.bfloat16)

    # Torch (Cout, Cin, kh, kw) -> (9, Cin, Cp), lanes zero-padded.
    w1m = jnp.transpose(w1, (2, 3, 1, 0)).reshape(9, Cin, Cout)
    w1m = jnp.pad(w1m, ((0, 0), (0, 0), (0, Cp - Cout))).astype(jnp.bfloat16)
    w2m = jnp.transpose(w2, (2, 3, 1, 0)).reshape(9, Cout, Cout)
    w2m = jnp.pad(w2m, ((0, 0), (0, Cp - Cout), (0, Cp - Cout))).astype(jnp.bfloat16)
    b1m = jnp.pad(b1, (0, Cp - Cout)).reshape(1, Cp).astype(jnp.float32)
    b2m = jnp.pad(b2, (0, Cp - Cout)).reshape(1, Cp).astype(jnp.float32)

    kernel = functools.partial(_double_conv_kernel, H=H, W=W)
    out = pl.pallas_call(
        kernel,
        out_shape=jax.ShapeDtypeStruct((N, MO, Cp), jnp.float32),
        grid_spec=pltpu.PrefetchScalarGridSpec(
            num_scalar_prefetch=0,
            grid=(N,),
            in_specs=[
                pl.BlockSpec((1, MSRC, Cin), lambda n: (n, 0, 0)),
                pl.BlockSpec((9, Cin, Cp), lambda n: (0, 0, 0)),
                pl.BlockSpec((1, Cp), lambda n: (0, 0)),
                pl.BlockSpec((9, Cp, Cp), lambda n: (0, 0, 0)),
                pl.BlockSpec((1, Cp), lambda n: (0, 0)),
            ],
            out_specs=pl.BlockSpec((1, MO, Cp), lambda n: (n, 0, 0)),
            scratch_shapes=[pltpu.VMEM((MSRC, Cp), jnp.bfloat16)],
        ),
        compiler_params=pltpu.CompilerParams(
            dimension_semantics=("parallel",)),
    )(xp, w1m, b1m, w2m, b2m)

    # Drop junk columns / padded channels, back to NCHW.
    out = out.reshape(N, H, WP, Cp)[:, :, :W, :Cout]
    return jnp.transpose(out, (0, 3, 1, 2))


# ---------------------------------------------------------------------------
# Pure-JAX reference for validation.
# ---------------------------------------------------------------------------
def double_conv2d_reference(x_nchw, w1, b1, w2, b2):
    x = jnp.transpose(x_nchw, (0, 2, 3, 1))

    def conv_relu(x, w, b):
        whwio = jnp.transpose(w, (2, 3, 1, 0))
        y = jax.lax.conv_general_dilated(
            x, whwio, (1, 1), "SAME",
            dimension_numbers=("NHWC", "HWIO", "NHWC")) + b
        return jnp.maximum(y, 0.0)

    y = conv_relu(conv_relu(x, w1, b1), w2, b2)
    return jnp.transpose(y, (0, 3, 1, 2))


# ---------------------------------------------------------------------------
if __name__ == "__main__":
    key = jax.random.PRNGKey(0)
    k_x, k_w1, k_b1, k_w2, k_b2 = jax.random.split(key, 5)

    N, Cin, Cout, H, W = 2, 4, 32, 16, 16
    x = jax.random.normal(k_x, (N, Cin, H, W), jnp.float32)

    bound1 = 1.0 / np.sqrt(Cin * 9)
    w1 = jax.random.uniform(k_w1, (Cout, Cin, 3, 3), jnp.float32, -bound1, bound1)
    b1 = jax.random.uniform(k_b1, (Cout,), jnp.float32, -bound1, bound1)
    bound2 = 1.0 / np.sqrt(Cout * 9)
    w2 = jax.random.uniform(k_w2, (Cout, Cout, 3, 3), jnp.float32, -bound2, bound2)
    b2 = jax.random.uniform(k_b2, (Cout,), jnp.float32, -bound2, bound2)

    fwd = jax.jit(double_conv2d)
    out = jax.block_until_ready(fwd(x, w1, b1, w2, b2))
    assert out.shape == (N, Cout, H, W)
    assert bool(jnp.all(jnp.isfinite(out)))

    ref = jax.block_until_ready(
        jax.jit(double_conv2d_reference)(x, w1, b1, w2, b2))
    np.testing.assert_allclose(np.asarray(out), np.asarray(ref),
                               atol=2e-2, rtol=2e-2)

    print("KERNEL_OK")
</pallas_src>

<mosaic_0001>
module attributes {stable_mosaic.version = 11 : i64} {
  func.func @_double_conv_kernel(%arg0: i32, %arg1: memref<1x326x4xbf16, #tpu.memory_space<vmem>>, %arg2: memref<9x4x128xbf16, #tpu.memory_space<vmem>>, %arg3: memref<1x128xf32, #tpu.memory_space<vmem>>, %arg4: memref<9x128x128xbf16, #tpu.memory_space<vmem>>, %arg5: memref<1x128xf32, #tpu.memory_space<vmem>>, %arg6: memref<1x288x128xf32, #tpu.memory_space<vmem>>, %arg7: memref<326x128xbf16, #tpu.memory_space<vmem>>) attributes {dimension_semantics = [#tpu.dimension_semantics<parallel>], iteration_bounds = array<i64: 2>, scalar_prefetch = 0 : i64, scratch_operands = 1 : i64, tpu.core_type = #tpu.core_type<tc>, window_params = [{transform_indices = @transform_0, window_bounds = array<i64: 1, 326, 4>}, {pipeline_mode = #tpu.pipeline_mode<synchronous>, transform_indices = @transform_1, window_bounds = array<i64: 9, 4, 128>}, {pipeline_mode = #tpu.pipeline_mode<synchronous>, transform_indices = @transform_2, window_bounds = array<i64: 1, 128>}, {pipeline_mode = #tpu.pipeline_mode<synchronous>, transform_indices = @transform_3, window_bounds = array<i64: 9, 128, 128>}, {pipeline_mode = #tpu.pipeline_mode<synchronous>, transform_indices = @transform_4, window_bounds = array<i64: 1, 128>}, {transform_indices = @transform_5, window_bounds = array<i64: 1, 288, 128>}]} {
    %cst = arith.constant 0.000000e+00 : f32
    %0 = vector.broadcast %cst : f32 to vector<288x128xf32>
    %c0 = arith.constant 0 : index
    %c0_0 = arith.constant 0 : index
    %c0_1 = arith.constant 0 : index
    %1 = vector.load %arg1[%c0, %c0_0, %c0_1] : memref<1x326x4xbf16, #tpu.memory_space<vmem>>, vector<1x288x4xbf16>
    %2 = vector.shape_cast %1 : vector<1x288x4xbf16> to vector<288x4xbf16>
    %c0_2 = arith.constant 0 : index
    %c0_3 = arith.constant 0 : index
    %c0_4 = arith.constant 0 : index
    %3 = vector.load %arg2[%c0_2, %c0_3, %c0_4] : memref<9x4x128xbf16, #tpu.memory_space<vmem>>, vector<1x4x128xbf16>
    %4 = vector.shape_cast %3 : vector<1x4x128xbf16> to vector<4x128xbf16>
    %cst_5 = arith.constant dense<0.000000e+00> : vector<288x128xf32>
    %5 = tpu.matmul %2, %4, %cst_5 {dimension_numbers = #tpu.dot_dimension_numbers<[1], [0], [0], [1], [0, 0, 1, 1], [], []>} : vector<288x4xbf16>, vector<4x128xbf16>, vector<288x128xf32> -> vector<288x128xf32>
    %6 = arith.addf %0, %5 : vector<288x128xf32>
    %c0_6 = arith.constant 0 : index
    %c1 = arith.constant 1 : index
    %c0_7 = arith.constant 0 : index
    %7 = vector.load %arg1[%c0_6, %c1, %c0_7] : memref<1x326x4xbf16, #tpu.memory_space<vmem>>, vector<1x288x4xbf16>
    %8 = vector.shape_cast %7 : vector<1x288x4xbf16> to vector<288x4xbf16>
    %c1_8 = arith.constant 1 : index
    %c0_9 = arith.constant 0 : index
    %c0_10 = arith.constant 0 : index
    %9 = vector.load %arg2[%c1_8, %c0_9, %c0_10] : memref<9x4x128xbf16, #tpu.memory_space<vmem>>, vector<1x4x128xbf16>
    %10 = vector.shape_cast %9 : vector<1x4x128xbf16> to vector<4x128xbf16>
    %cst_11 = arith.constant dense<0.000000e+00> : vector<288x128xf32>
    %11 = tpu.matmul %8, %10, %cst_11 {dimension_numbers = #tpu.dot_dimension_numbers<[1], [0], [0], [1], [0, 0, 1, 1], [], []>} : vector<288x4xbf16>, vector<4x128xbf16>, vector<288x128xf32> -> vector<288x128xf32>
    %12 = arith.addf %6, %11 : vector<288x128xf32>
    %c0_12 = arith.constant 0 : index
    %c2 = arith.constant 2 : index
    %c0_13 = arith.constant 0 : index
    %13 = vector.load %arg1[%c0_12, %c2, %c0_13] : memref<1x326x4xbf16, #tpu.memory_space<vmem>>, vector<1x288x4xbf16>
    %14 = vector.shape_cast %13 : vector<1x288x4xbf16> to vector<288x4xbf16>
    %c2_14 = arith.constant 2 : index
    %c0_15 = arith.constant 0 : index
    %c0_16 = arith.constant 0 : index
    %15 = vector.load %arg2[%c2_14, %c0_15, %c0_16] : memref<9x4x128xbf16, #tpu.memory_space<vmem>>, vector<1x4x128xbf16>
    %16 = vector.shape_cast %15 : vector<1x4x128xbf16> to vector<4x128xbf16>
    %cst_17 = arith.constant dense<0.000000e+00> : vector<288x128xf32>
    %17 = tpu.matmul %14, %16, %cst_17 {dimension_numbers = #tpu.dot_dimension_numbers<[1], [0], [0], [1], [0, 0, 1, 1], [], []>} : vector<288x4xbf16>, vector<4x128xbf16>, vector<288x128xf32> -> vector<288x128xf32>
    %18 = arith.addf %12, %17 : vector<288x128xf32>
    %c0_18 = arith.constant 0 : index
    %c18 = arith.constant 18 : index
    %c0_19 = arith.constant 0 : index
    %19 = vector.load %arg1[%c0_18, %c18, %c0_19] : memref<1x326x4xbf16, #tpu.memory_space<vmem>>, vector<1x288x4xbf16>
    %20 = vector.shape_cast %19 : vector<1x288x4xbf16> to vector<288x4xbf16>
    %c3 = arith.constant 3 : index
    %c0_20 = arith.constant 0 : index
    %c0_21 = arith.constant 0 : index
    %21 = vector.load %arg2[%c3, %c0_20, %c0_21] : memref<9x4x128xbf16, #tpu.memory_space<vmem>>, vector<1x4x128xbf16>
    %22 = vector.shape_cast %21 : vector<1x4x128xbf16> to vector<4x128xbf16>
    %cst_22 = arith.constant dense<0.000000e+00> : vector<288x128xf32>
    %23 = tpu.matmul %20, %22, %cst_22 {dimension_numbers = #tpu.dot_dimension_numbers<[1], [0], [0], [1], [0, 0, 1, 1], [], []>} : vector<288x4xbf16>, vector<4x128xbf16>, vector<288x128xf32> -> vector<288x128xf32>
    %24 = arith.addf %18, %23 : vector<288x128xf32>
    %c0_23 = arith.constant 0 : index
    %c19 = arith.constant 19 : index
    %c0_24 = arith.constant 0 : index
    %25 = vector.load %arg1[%c0_23, %c19, %c0_24] : memref<1x326x4xbf16, #tpu.memory_space<vmem>>, vector<1x288x4xbf16>
    %26 = vector.shape_cast %25 : vector<1x288x4xbf16> to vector<288x4xbf16>
    %c4 = arith.constant 4 : index
    %c0_25 = arith.constant 0 : index
    %c0_26 = arith.constant 0 : index
    %27 = vector.load %arg2[%c4, %c0_25, %c0_26] : memref<9x4x128xbf16, #tpu.memory_space<vmem>>, vector<1x4x128xbf16>
    %28 = vector.shape_cast %27 : vector<1x4x128xbf16> to vector<4x128xbf16>
    %cst_27 = arith.constant dense<0.000000e+00> : vector<288x128xf32>
    %29 = tpu.matmul %26, %28, %cst_27 {dimension_numbers = #tpu.dot_dimension_numbers<[1], [0], [0], [1], [0, 0, 1, 1], [], []>} : vector<288x4xbf16>, vector<4x128xbf16>, vector<288x128xf32> -> vector<288x128xf32>
    %30 = arith.addf %24, %29 : vector<288x128xf32>
    %c0_28 = arith.constant 0 : index
    %c20 = arith.constant 20 : index
    %c0_29 = arith.constant 0 : index
    %31 = vector.load %arg1[%c0_28, %c20, %c0_29] : memref<1x326x4xbf16, #tpu.memory_space<vmem>>, vector<1x288x4xbf16>
    %32 = vector.shape_cast %31 : vector<1x288x4xbf16> to vector<288x4xbf16>
    %c5 = arith.constant 5 : index
    %c0_30 = arith.constant 0 : index
    %c0_31 = arith.constant 0 : index
    %33 = vector.load %arg2[%c5, %c0_30, %c0_31] : memref<9x4x128xbf16, #tpu.memory_space<vmem>>, vector<1x4x128xbf16>
    %34 = vector.shape_cast %33 : vector<1x4x128xbf16> to vector<4x128xbf16>
    %cst_32 = arith.constant dense<0.000000e+00> : vector<288x128xf32>
    %35 = tpu.matmul %32, %34, %cst_32 {dimension_numbers = #tpu.dot_dimension_numbers<[1], [0], [0], [1], [0, 0, 1, 1], [], []>} : vector<288x4xbf16>, vector<4x128xbf16>, vector<288x128xf32> -> vector<288x128xf32>
    %36 = arith.addf %30, %35 : vector<288x128xf32>
    %c0_33 = arith.constant 0 : index
    %c36 = arith.constant 36 : index
    %c0_34 = arith.constant 0 : index
    %37 = vector.load %arg1[%c0_33, %c36, %c0_34] : memref<1x326x4xbf16, #tpu.memory_space<vmem>>, vector<1x288x4xbf16>
    %38 = vector.shape_cast %37 : vector<1x288x4xbf16> to vector<288x4xbf16>
    %c6 = arith.constant 6 : index
    %c0_35 = arith.constant 0 : index
    %c0_36 = arith.constant 0 : index
    %39 = vector.load %arg2[%c6, %c0_35, %c0_36] : memref<9x4x128xbf16, #tpu.memory_space<vmem>>, vector<1x4x128xbf16>
    %40 = vector.shape_cast %39 : vector<1x4x128xbf16> to vector<4x128xbf16>
    %cst_37 = arith.constant dense<0.000000e+00> : vector<288x128xf32>
    %41 = tpu.matmul %38, %40, %cst_37 {dimension_numbers = #tpu.dot_dimension_numbers<[1], [0], [0], [1], [0, 0, 1, 1], [], []>} : vector<288x4xbf16>, vector<4x128xbf16>, vector<288x128xf32> -> vector<288x128xf32>
    %42 = arith.addf %36, %41 : vector<288x128xf32>
    %c0_38 = arith.constant 0 : index
    %c37 = arith.constant 37 : index
    %c0_39 = arith.constant 0 : index
    %43 = vector.load %arg1[%c0_38, %c37, %c0_39] : memref<1x326x4xbf16, #tpu.memory_space<vmem>>, vector<1x288x4xbf16>
    %44 = vector.shape_cast %43 : vector<1x288x4xbf16> to vector<288x4xbf16>
    %c7 = arith.constant 7 : index
    %c0_40 = arith.constant 0 : index
    %c0_41 = arith.constant 0 : index
    %45 = vector.load %arg2[%c7, %c0_40, %c0_41] : memref<9x4x128xbf16, #tpu.memory_space<vmem>>, vector<1x4x128xbf16>
    %46 = vector.shape_cast %45 : vector<1x4x128xbf16> to vector<4x128xbf16>
    %cst_42 = arith.constant dense<0.000000e+00> : vector<288x128xf32>
    %47 = tpu.matmul %44, %46, %cst_42 {dimension_numbers = #tpu.dot_dimension_numbers<[1], [0], [0], [1], [0, 0, 1, 1], [], []>} : vector<288x4xbf16>, vector<4x128xbf16>, vector<288x128xf32> -> vector<288x128xf32>
    %48 = arith.addf %42, %47 : vector<288x128xf32>
    %c0_43 = arith.constant 0 : index
    %c38 = arith.constant 38 : index
    %c0_44 = arith.constant 0 : index
    %49 = vector.load %arg1[%c0_43, %c38, %c0_44] : memref<1x326x4xbf16, #tpu.memory_space<vmem>>, vector<1x288x4xbf16>
    %50 = vector.shape_cast %49 : vector<1x288x4xbf16> to vector<288x4xbf16>
    %c8 = arith.constant 8 : index
    %c0_45 = arith.constant 0 : index
    %c0_46 = arith.constant 0 : index
    %51 = vector.load %arg2[%c8, %c0_45, %c0_46] : memref<9x4x128xbf16, #tpu.memory_space<vmem>>, vector<1x4x128xbf16>
    %52 = vector.shape_cast %51 : vector<1x4x128xbf16> to vector<4x128xbf16>
    %cst_47 = arith.constant dense<0.000000e+00> : vector<288x128xf32>
    %53 = tpu.matmul %50, %52, %cst_47 {dimension_numbers = #tpu.dot_dimension_numbers<[1], [0], [0], [1], [0, 0, 1, 1], [], []>} : vector<288x4xbf16>, vector<4x128xbf16>, vector<288x128xf32> -> vector<288x128xf32>
    %54 = arith.addf %48, %53 : vector<288x128xf32>
    %c0_48 = arith.constant 0 : index
    %c0_49 = arith.constant 0 : index
    %55 = vector.load %arg3[%c0_48, %c0_49] : memref<1x128xf32, #tpu.memory_space<vmem>>, vector<1x128xf32>
    %56 = vector.broadcast %55 : vector<1x128xf32> to vector<288x128xf32>
    %57 = arith.addf %54, %56 : vector<288x128xf32>
    %cst_50 = arith.constant 0.000000e+00 : f32
    %58 = vector.broadcast %cst_50 : f32 to vector<288x128xf32>
    %59 = arith.maximumf %57, %58 : vector<288x128xf32>
    %60 = tpu.iota {dimensions = array<i32: 0>} : vector<288x128xi32>
    %c18_i32 = arith.constant 18 : i32
    %c0_i32 = arith.constant 0 : i32
    %61 = arith.cmpi eq, %c18_i32, %c0_i32 : i32
    %c1_i32 = arith.constant 1 : i32
    %62 = arith.select %61, %c1_i32, %c18_i32 : i32
    %63 = vector.broadcast %62 : i32 to vector<288x128xi32>
    %64 = arith.remsi %60, %63 : vector<288x128xi32>
    %c0_i32_51 = arith.constant 0 : i32
    %65 = vector.broadcast %c0_i32_51 : i32 to vector<288x128xi32>
    %66 = arith.cmpi ne, %64, %65 : vector<288x128xi32>
    %c0_i32_52 = arith.constant 0 : i32
    %67 = vector.broadcast %c0_i32_52 : i32 to vector<288x128xi32>
    %68 = arith.cmpi slt, %64, %67 : vector<288x128xi32>
    %c0_i32_53 = arith.constant 0 : i32
    %69 = arith.cmpi slt, %62, %c0_i32_53 : i32
    %70 = vector.broadcast %69 : i1 to vector<288x128xi1>
    %71 = vector.broadcast %70 : vector<288x128xi1> to vector<288x128xi1>
    %72 = arith.xori %68, %71 : vector<288x128xi1>
    %73 = arith.andi %72, %66 : vector<288x128xi1>
    %74 = vector.broadcast %62 : i32 to vector<288x128xi32>
    %75 = arith.addi %64, %74 : vector<288x128xi32>
    %76 = arith.select %73, %75, %64 : vector<288x128xi1>, vector<288x128xi32>
    %c16_i32 = arith.constant 16 : i32
    %77 = vector.broadcast %c16_i32 : i32 to vector<288x128xi32>
    %78 = arith.cmpi slt, %76, %77 : vector<288x128xi32>
    %cst_54 = arith.constant 0.000000e+00 : f32
    %79 = vector.broadcast %cst_54 : f32 to vector<288x128xf32>
    %80 = arith.select %78, %59, %79 : vector<288x128xi1>, vector<288x128xf32>
    %cst_55 = arith.constant 0.000000e+00 : bf16
    %81 = vector.broadcast %cst_55 : bf16 to vector<326x128xbf16>
    %c0_56 = arith.constant 0 : index
    %c0_57 = arith.constant 0 : index
    %82 = vector.load %arg7[%c0_56, %c0_57] : memref<326x128xbf16, #tpu.memory_space<vmem>>, vector<326x128xbf16>
    tpu.vector_store %arg7[%c0_56, %c0_57], %81 {strides = array<i32>} : memref<326x128xbf16, #tpu.memory_space<vmem>>, vector<326x128xbf16>,
    %83 = arith.truncf %80 : vector<288x128xf32> to vector<288x128xbf16>
    %c19_58 = arith.constant 19 : index
    %c0_59 = arith.constant 0 : index
    %84 = vector.load %arg7[%c19_58, %c0_59] : memref<326x128xbf16, #tpu.memory_space<vmem>>, vector<288x128xbf16>
    tpu.vector_store %arg7[%c19_58, %c0_59], %83 {strides = array<i32>} : memref<326x128xbf16, #tpu.memory_space<vmem>>, vector<288x128xbf16>,
    %cst_60 = arith.constant 0.000000e+00 : f32
    %85 = vector.broadcast %cst_60 : f32 to vector<288x128xf32>
    %c0_61 = arith.constant 0 : index
    %c0_62 = arith.constant 0 : index
    %86 = vector.load %arg7[%c0_61, %c0_62] : memref<326x128xbf16, #tpu.memory_space<vmem>>, vector<288x128xbf16>
    %c0_63 = arith.constant 0 : index
    %c0_64 = arith.constant 0 : index
    %c0_65 = arith.constant 0 : index
    %87 = vector.load %arg4[%c0_63, %c0_64, %c0_65] : memref<9x128x128xbf16, #tpu.memory_space<vmem>>, vector<1x128x128xbf16>
    %88 = vector.shape_cast %87 : vector<1x128x128xbf16> to vector<128x128xbf16>
    %cst_66 = arith.constant dense<0.000000e+00> : vector<288x128xf32>
    %89 = tpu.matmul %86, %88, %cst_66 {dimension_numbers = #tpu.dot_dimension_numbers<[1], [0], [0], [1], [0, 0, 1, 1], [], []>} : vector<288x128xbf16>, vector<128x128xbf16>, vector<288x128xf32> -> vector<288x128xf32>
    %90 = arith.addf %85, %89 : vector<288x128xf32>
    %c1_67 = arith.constant 1 : index
    %c0_68 = arith.constant 0 : index
    %91 = vector.load %arg7[%c1_67, %c0_68] : memref<326x128xbf16, #tpu.memory_space<vmem>>, vector<288x128xbf16>
    %c1_69 = arith.constant 1 : index
    %c0_70 = arith.constant 0 : index
    %c0_71 = arith.constant 0 : index
    %92 = vector.load %arg4[%c1_69, %c0_70, %c0_71] : memref<9x128x128xbf16, #tpu.memory_space<vmem>>, vector<1x128x128xbf16>
    %93 = vector.shape_cast %92 : vector<1x128x128xbf16> to vector<128x128xbf16>
    %cst_72 = arith.constant dense<0.000000e+00> : vector<288x128xf32>
    %94 = tpu.matmul %91, %93, %cst_72 {dimension_numbers = #tpu.dot_dimension_numbers<[1], [0], [0], [1], [0, 0, 1, 1], [], []>} : vector<288x128xbf16>, vector<128x128xbf16>, vector<288x128xf32> -> vector<288x128xf32>
    %95 = arith.addf %90, %94 : vector<288x128xf32>
    %c2_73 = arith.constant 2 : index
    %c0_74 = arith.constant 0 : index
    %96 = vector.load %arg7[%c2_73, %c0_74] : memref<326x128xbf16, #tpu.memory_space<vmem>>, vector<288x128xbf16>
    %c2_75 = arith.constant 2 : index
    %c0_76 = arith.constant 0 : index
    %c0_77 = arith.constant 0 : index
    %97 = vector.load %arg4[%c2_75, %c0_76, %c0_77] : memref<9x128x128xbf16, #tpu.memory_space<vmem>>, vector<1x128x128xbf16>
    %98 = vector.shape_cast %97 : vector<1x128x128xbf16> to vector<128x128xbf16>
    %cst_78 = arith.constant dense<0.000000e+00> : vector<288x128xf32>
    %99 = tpu.matmul %96, %98, %cst_78 {dimension_numbers = #tpu.dot_dimension_numbers<[1], [0], [0], [1], [0, 0, 1, 1], [], []>} : vector<288x128xbf16>, vector<128x128xbf16>, vector<288x128xf32> -> vector<288x128xf32>
    %100 = arith.addf %95, %99 : vector<288x128xf32>
    %c18_79 = arith.constant 18 : index
    %c0_80 = arith.constant 0 : index
    %101 = vector.load %arg7[%c18_79, %c0_80] : memref<326x128xbf16, #tpu.memory_space<vmem>>, vector<288x128xbf16>
    %c3_81 = arith.constant 3 : index
    %c0_82 = arith.constant 0 : index
    %c0_83 = arith.constant 0 : index
    %102 = vector.load %arg4[%c3_81, %c0_82, %c0_83] : memref<9x128x128xbf16, #tpu.memory_space<vmem>>, vector<1x128x128xbf16>
    %103 = vector.shape_cast %102 : vector<1x128x128xbf16> to vector<128x128xbf16>
    %cst_84 = arith.constant dense<0.000000e+00> : vector<288x128xf32>
    %104 = tpu.matmul %101, %103, %cst_84 {dimension_numbers = #tpu.dot_dimension_numbers<[1], [0], [0], [1], [0, 0, 1, 1], [], []>} : vector<288x128xbf16>, vector<128x128xbf16>, vector<288x128xf32> -> vector<288x128xf32>
    %105 = arith.addf %100, %104 : vector<288x128xf32>
    %c19_85 = arith.constant 19 : index
    %c0_86 = arith.constant 0 : index
    %106 = vector.load %arg7[%c19_85, %c0_86] : memref<326x128xbf16, #tpu.memory_space<vmem>>, vector<288x128xbf16>
    %c4_87 = arith.constant 4 : index
    %c0_88 = arith.constant 0 : index
    %c0_89 = arith.constant 0 : index
    %107 = vector.load %arg4[%c4_87, %c0_88, %c0_89] : memref<9x128x128xbf16, #tpu.memory_space<vmem>>, vector<1x128x128xbf16>
    %108 = vector.shape_cast %107 : vector<1x128x128xbf16> to vector<128x128xbf16>
    %cst_90 = arith.constant dense<0.000000e+00> : vector<288x128xf32>
    %109 = tpu.matmul %106, %108, %cst_90 {dimension_numbers = #tpu.dot_dimension_numbers<[1], [0], [0], [1], [0, 0, 1, 1], [], []>} : vector<288x128xbf16>, vector<128x128xbf16>, vector<288x128xf32> -> vector<288x128xf32>
    %110 = arith.addf %105, %109 : vector<288x128xf32>
    %c20_91 = arith.constant 20 : index
    %c0_92 = arith.constant 0 : index
    %111 = vector.load %arg7[%c20_91, %c0_92] : memref<326x128xbf16, #tpu.memory_space<vmem>>, vector<288x128xbf16>
    %c5_93 = arith.constant 5 : index
    %c0_94 = arith.constant 0 : index
    %c0_95 = arith.constant 0 : index
    %112 = vector.load %arg4[%c5_93, %c0_94, %c0_95] : memref<9x128x128xbf16, #tpu.memory_space<vmem>>, vector<1x128x128xbf16>
    %113 = vector.shape_cast %112 : vector<1x128x128xbf16> to vector<128x128xbf16>
    %cst_96 = arith.constant dense<0.000000e+00> : vector<288x128xf32>
    %114 = tpu.matmul %111, %113, %cst_96 {dimension_numbers = #tpu.dot_dimension_numbers<[1], [0], [0], [1], [0, 0, 1, 1], [], []>} : vector<288x128xbf16>, vector<128x128xbf16>, vector<288x128xf32> -> vector<288x128xf32>
    %115 = arith.addf %110, %114 : vector<288x128xf32>
    %c36_97 = arith.constant 36 : index
    %c0_98 = arith.constant 0 : index
    %116 = vector.load %arg7[%c36_97, %c0_98] : memref<326x128xbf16, #tpu.memory_space<vmem>>, vector<288x128xbf16>
    %c6_99 = arith.constant 6 : index
    %c0_100 = arith.constant 0 : index
    %c0_101 = arith.constant 0 : index
    %117 = vector.load %arg4[%c6_99, %c0_100, %c0_101] : memref<9x128x128xbf16, #tpu.memory_space<vmem>>, vector<1x128x128xbf16>
    %118 = vector.shape_cast %117 : vector<1x128x128xbf16> to vector<128x128xbf16>
    %cst_102 = arith.constant dense<0.000000e+00> : vector<288x128xf32>
    %119 = tpu.matmul %116, %118, %cst_102 {dimension_numbers = #tpu.dot_dimension_numbers<[1], [0], [0], [1], [0, 0, 1, 1], [], []>} : vector<288x128xbf16>, vector<128x128xbf16>, vector<288x128xf32> -> vector<288x128xf32>
    %120 = arith.addf %115, %119 : vector<288x128xf32>
    %c37_103 = arith.constant 37 : index
    %c0_104 = arith.constant 0 : index
    %121 = vector.load %arg7[%c37_103, %c0_104] : memref<326x128xbf16, #tpu.memory_space<vmem>>, vector<288x128xbf16>
    %c7_105 = arith.constant 7 : index
    %c0_106 = arith.constant 0 : index
    %c0_107 = arith.constant 0 : index
    %122 = vector.load %arg4[%c7_105, %c0_106, %c0_107] : memref<9x128x128xbf16, #tpu.memory_space<vmem>>, vector<1x128x128xbf16>
    %123 = vector.shape_cast %122 : vector<1x128x128xbf16> to vector<128x128xbf16>
    %cst_108 = arith.constant dense<0.000000e+00> : vector<288x128xf32>
    %124 = tpu.matmul %121, %123, %cst_108 {dimension_numbers = #tpu.dot_dimension_numbers<[1], [0], [0], [1], [0, 0, 1, 1], [], []>} : vector<288x128xbf16>, vector<128x128xbf16>, vector<288x128xf32> -> vector<288x128xf32>
    %125 = arith.addf %120, %124 : vector<288x128xf32>
    %c38_109 = arith.constant 38 : index
    %c0_110 = arith.constant 0 : index
    %126 = vector.load %arg7[%c38_109, %c0_110] : memref<326x128xbf16, #tpu.memory_space<vmem>>, vector<288x128xbf16>
    %c8_111 = arith.constant 8 : index
    %c0_112 = arith.constant 0 : index
    %c0_113 = arith.constant 0 : index
    %127 = vector.load %arg4[%c8_111, %c0_112, %c0_113] : memref<9x128x128xbf16, #tpu.memory_space<vmem>>, vector<1x128x128xbf16>
    %128 = vector.shape_cast %127 : vector<1x128x128xbf16> to vector<128x128xbf16>
    %cst_114 = arith.constant dense<0.000000e+00> : vector<288x128xf32>
    %129 = tpu.matmul %126, %128, %cst_114 {dimension_numbers = #tpu.dot_dimension_numbers<[1], [0], [0], [1], [0, 0, 1, 1], [], []>} : vector<288x128xbf16>, vector<128x128xbf16>, vector<288x128xf32> -> vector<288x128xf32>
    %130 = arith.addf %125, %129 : vector<288x128xf32>
    %c0_115 = arith.constant 0 : index
    %c0_116 = arith.constant 0 : index
    %131 = vector.load %arg5[%c0_115, %c0_116] : memref<1x128xf32, #tpu.memory_space<vmem>>, vector<1x128xf32>
    %132 = vector.broadcast %131 : vector<1x128xf32> to vector<288x128xf32>
    %133 = arith.addf %130, %132 : vector<288x128xf32>
    %cst_117 = arith.constant 0.000000e+00 : f32
    %134 = vector.broadcast %cst_117 : f32 to vector<288x128xf32>
    %135 = arith.maximumf %133, %134 : vector<288x128xf32>
    %c0_118 = arith.constant 0 : index
    %c0_119 = arith.constant 0 : index
    %c0_120 = arith.constant 0 : index
    %136 = vector.load %arg6[%c0_118, %c0_119, %c0_120] : memref<1x288x128xf32, #tpu.memory_space<vmem>>, vector<1x288x128xf32>
    %137 = vector.shape_cast %136 : vector<1x288x128xf32> to vector<288x128xf32>
    %138 = vector.shape_cast %135 : vector<288x128xf32> to vector<1x288x128xf32>
    tpu.vector_store %arg6[%c0_118, %c0_119, %c0_120], %138 {strides = array<i32>} : memref<1x288x128xf32, #tpu.memory_space<vmem>>, vector<1x288x128xf32>,
    return
  }
  func.func @transform_0(%arg0: i32) -> (i32, i32, i32) {
    %c0_i32 = arith.constant 0 : i32
    %c0_i32_0 = arith.constant 0 : i32
    %c0_i32_1 = arith.constant 0 : i32
    return %arg0, %c0_i32, %c0_i32_0 : i32, i32, i32
  }
  func.func @transform_1(%arg0: i32) -> (i32, i32, i32) {
    %c0_i32 = arith.constant 0 : i32
    %c0_i32_0 = arith.constant 0 : i32
    %c0_i32_1 = arith.constant 0 : i32
    %c0_i32_2 = arith.constant 0 : i32
    return %c0_i32, %c0_i32_0, %c0_i32_1 : i32, i32, i32
  }
  func.func @transform_2(%arg0: i32) -> (i32, i32) {
    %c0_i32 = arith.constant 0 : i32
    %c0_i32_0 = arith.constant 0 : i32
    %c0_i32_1 = arith.constant 0 : i32
    return %c0_i32, %c0_i32_0 : i32, i32
  }
  func.func @transform_3(%arg0: i32) -> (i32, i32, i32) {
    %c0_i32 = arith.constant 0 : i32
    %c0_i32_0 = arith.constant 0 : i32
    %c0_i32_1 = arith.constant 0 : i32
    %c0_i32_2 = arith.constant 0 : i32
    return %c0_i32, %c0_i32_0, %c0_i32_1 : i32, i32, i32
  }
  func.func @transform_4(%arg0: i32) -> (i32, i32) {
    %c0_i32 = arith.constant 0 : i32
    %c0_i32_0 = arith.constant 0 : i32
    %c0_i32_1 = arith.constant 0 : i32
    return %c0_i32, %c0_i32_0 : i32, i32
  }
  func.func @transform_5(%arg0: i32) -> (i32, i32, i32) {
    %c0_i32 = arith.constant 0 : i32
    %c0_i32_0 = arith.constant 0 : i32
    %c0_i32_1 = arith.constant 0 : i32
    return %arg0, %c0_i32, %c0_i32_0 : i32, i32, i32
  }
}

</mosaic_0001>

<bundles_post_ra>
// kernel: double_conv2d.1
= control target key start
LH: loop header
LB: loop body
LE: loop exit
PB: predicated region body
PF: predicated region fallthrough
CT: control target
= control target key end

     0   :  { %s11605_s18 = smov 0   ;;  %s15031_s0 = inlined_call_operand.vmem [shape: bf16[2,326,4], index: 0, kind: input, shape index: {}]   ;;  %s15032_s1 = inlined_call_operand.vmem [shape: bf16[9,4,128], index: 1, kind: input, shape index: {}]   ;;  %s15033_s2 = inlined_call_operand.vmem [shape: f32[1,128], index: 2, kind: input, shape index: {}]   ;;  %s15034_s3 = inlined_call_operand.vmem [shape: bf16[9,128,128], index: 3, kind: input, shape index: {}]   ;;  %s15035_s4 = inlined_call_operand.vmem [shape: f32[1,128], index: 4, kind: input, shape index: {}]   ;;  %s15036_s5 = inlined_call_operand.vmem [shape: f32[2,288,128], index: 5, kind: output, shape index: {}]  }
   0x1 LB: > { %s8876_s19 = sadd.s32 4294967295, %s11572_s18   ;;  %p8880_p0 = scmp.ge.s32.totalorder %s11572_s18, 1  ;;  %s11572_s18 = sphi %s11605_s18, %s15_s18  }
   0x2   : > { %p187_p1 = scmp.lt.s32.totalorder %s11572_s18, 3 }
   0x4   : > { %p188_p2 = pnand %p8880_p0, %p187_p1 }
   0x6   : > { %191 = sbr.rel (%p188_p2) target bundleno = 1783 (0x6f7), region = 40 }
   0xd   : > { %v8883_v0 = vld [vmem:[%s15032_s1 + $0x2] sm:$0x3]  ;;  %vm15042_vm0 = vcmask 1041408   ;;  %p215_p3 = scmp.lt.s32.totalorder %s8876_s19, 1  ;;  %v262_v2 = vld [vmem:[%s15032_s1] sm:$0x3] }
   0xe   : > { %11260 = vmatprep.subr.msk.bf16.mxu0 %vm15042_vm0, %v8883_v0  ;;  %v565_v1 = vsel %vm15042_vm0, %v8883_v0, 0  ;;  %vm15043_vm1 = vsmask.f32 7424  ;;  %vm508_vm2 = vcmask 31744   ;;  %v781_v24 = vsel %vm15042_vm0, %v262_v2, 0 }
   0xf   : > { %9859 = vmatpush3.bf16.msra.mxu0 %v565_v1  ;;  %s15816_s19 = smov (!%p215_p3, %s8876_s19), 1  ;;  %v11671_v33 = vld [vmem:[%s15032_s1 + $0x4] sm:$0x3]  ;;  %vm15038_vm3 = vcmask 1046528   ;;  %vm15041_vm4 = vsmask.f32 6400 }
  0x10   : > { %11261 = vmatprep.subr.msk.bf16.mxu0 %vm15042_vm0, %v262_v2  ;;  %s11269_s24 = smul.u32 164, %s15816_s19  ;;  %vm15040_vm5 = vcmask 1045504   ;;  %vm15039_vm6 = vsmask.f32 5376  ;;  %vm15037_vm7 = vcmask 1044480  }
  0x11   : > { %s11270_s6 = smul.u32 288, %s15816_s19 }
  0x12   : > { %s11628_s27 = scalar_lea.vmem %s15031_s0, %s11269_s24 }
  0x13   : > { %v226_v3 = vld [vmem:[%s11628_s27] sm:$0xf]  ;;  %v11632_v4 = vld [vmem:[%s11628_s27 + $0x4] sm:$0xf]  ;;  %v11638_v6 = vld [vmem:[%s11628_s27 + $0x8] sm:$0xff]   ;;  %s14954_s19 = scalar_lea.vmem %s15036_s5, %s11270_s6 }
  0x14   : > { %v11635_v5 = vcombine.low %v226_v3, %v11632_v4  ;;  %v11641_v7 = vld [vmem:[%s11628_s27 + $0x10] sm:$0xff]   ;;  %v368_v10 = vshll.u32 %v11638_v6, 16  ;;  %v372_v11 = vshrl.u32 %v11638_v6, 16  ;;  %v11649_v13 = vld [vmem:[%s11628_s27 + $0x18] sm:$0xff]   ;;  %v11653_v15 = vld [vmem:[%s11628_s27 + $0x20] sm:$0xff]  }
  0x15   : > { %v376_v12 = vshll.u32 %v11641_v7, 16  ;;  %v380_v14 = vshrl.u32 %v11641_v7, 16  ;;  %v384_v19 = vshll.u32 %v11649_v13, 16  ;;  %v392_v22 = vshll.u32 %v11653_v15, 16  ;;  %v11658_v23 = vld [vmem:[%s11628_s27 + $0x28] sm:$0xff]   ;;  %v11675_v35 = vld [vmem:[%s11628_s27 + $0x30] sm:$0xff]  }
  0x16   : > { %v361_v8 = vshrl.u32 %v11635_v5, 16  ;;  %v363_v9 = vshll.u32 %v11635_v5, 16  ;;  %v370_v17 = vrot.slane %v368_v10, 1  ;;  %v388_v27 = vshrl.u32 %v11649_v13, 16  ;;  %v11679_v39 = vld [vmem:[%s11628_s27 + $0x38] sm:$0xff]   ;;  %v11690_v46 = vld [vmem:[%s11628_s27 + $0x40] sm:$0xff]  }
  0x17   : > { %v378_v18 = vrot.slane %v376_v12, 1  ;;  %v386_v26 = vrot.slane %v384_v19, 1  ;;  %v396_v30 = vshrl.u32 %v11653_v15, 16  ;;  %v400_v31 = vshll.u32 %v11658_v23, 16  ;;  %v11694_v48 = vld [vmem:[%s11628_s27 + $0x48] sm:$0xff]   ;;  %v11697_v49 = vld [vmem:[%s11628_s27 + $0x50] sm:$0xff]  }
  0x18   : > { %v365_v16 = vrot.slane %v363_v9, 1  ;;  %v374_v21 = vor.u32 %v372_v11, %v370_v17  ;;  %v394_v34 = vrot.slane %v392_v22, 1  ;;  %v408_v40 = vshll.u32 %v11675_v35, 16  ;;  %v11701_v51 = vld [vmem:[%s11628_s27 + $0x58] sm:$0xff]   ;;  %v11710_v60 = vld [vmem:[%s11628_s27 + $0x60] sm:$0xff]   ;;  %v11715_v63 = vld [vmem:[%s11628_s27 + $0x68] sm:$0xff]  }
  0x19   : > { %v382_v25 = vor.u32 %v380_v14, %v378_v18  ;;  %v390_v36 = vor.u32 %v388_v27, %v386_v26  ;;  %v402_v38 = vrot.slane %v400_v31, 1  ;;  %v404_v42 = vshrl.u32 %v11658_v23, 16 }
  0x1a   : > { %v366_v20 = vor.u32 %v365_v16, %v361_v8  ;;  %v379_v29 = vsel %vm15043_vm1, %v374_v21, %v378_v18  ;;  %v398_v37 = vor.u32 %v396_v30, %v394_v34  ;;  %v412_v44 = vshrl.u32 %v11675_v35, 16  ;;  %v11726_v18 = vld [vmem:[%s11628_s27 + $0x70] sm:$0xff]  }
  0x1b   : > { %v387_v32 = vsel %vm15043_vm1, %v382_v25, %v386_v26  ;;  %v395_v41 = vsel %vm15043_vm1, %v390_v36, %v394_v34  ;;  %v416_v45 = vshll.u32 %v11679_v39, 16  ;;  %v410_v47 = vrot.slane %v408_v40, 1  ;;  %v11745_v40 = vld [vmem:[%s11628_s27 + $0x80] sm:$0xff]  }
  0x1c   : > { %v371_v28 = vsel %vm15043_vm1, %v366_v20, %v370_v17  ;;  %v403_v43 = vsel %vm15043_vm1, %v398_v37, %v402_v38  ;;  %v406_v50 = vor.u32 %v404_v42, %v402_v38  ;;  %v424_v54 = vshll.u32 %v11690_v46, 16 }
  0x1d   : > { %9860 = vmatprep.mubr.msk.bf16.mxu0 %vm508_vm2, %v371_v28  ;;  %v414_v52 = vor.u32 %v412_v44, %v410_v47  ;;  %v418_v53 = vrot.slane %v416_v45, 1  ;;  %v420_v55 = vshrl.u32 %v11679_v39, 16  ;;  %v432_v56 = vshll.u32 %v11694_v48, 16  ;;  %v11735_v28 = vld [vmem:[%s11628_s27 + $0x78] sm:$0xff]  }
  0x1e   : > { %9861 = vmatmul.mubr.msk.bf16.vlgmr.msra.gmra.mrb[0].mxu0 %vm508_vm2, %v379_v29  ;;  %v411_v57 = vsel %vm15043_vm1, %v406_v50, %v410_v47  ;;  %v440_v58 = vshll.u32 %v11697_v49, 16  ;;  %v448_v59 = vshll.u32 %v11701_v51, 16  ;;  %v428_v62 = vshrl.u32 %v11690_v46, 16 }
  0x1f   : > { %9897 = vmatpush3.bf16.msra.mxu0 %v781_v24  ;;  %9864 = vmatprep.mubr.msk.bf16.mxu0 %vm508_vm2, %v387_v32  ;;  %v419_v61 = vsel %vm15043_vm1, %v414_v52, %v418_v53  ;;  %v426_v0 = vrot.slane %v424_v54, 1  ;;  %v436_v1 = vshrl.u32 %v11694_v48, 16  ;;  %v422_v2 = vor.u32 %v420_v55, %v418_v53  ;;  %v11758_v54 = vld [vmem:[%s11628_s27 + $0x90] ss:$0 sps:$4 sm:$0x11]  }
  0x20   : > { %11262 = vmatprep.subr.msk.bf16.mxu0 %vm15042_vm0, %v11671_v33  ;;  %v434_v3 = vrot.slane %v432_v56, 1  ;;  %v444_v8 = vshrl.u32 %v11697_v49, 16  ;;  %v442_v9 = vrot.slane %v440_v58, 1  ;;  %v450_v10 = vrot.slane %v448_v59, 1 }
  0x21   : > { %v452_v11 = vshrl.u32 %v11701_v51, 16  ;;  %v456_v12 = vshll.u32 %v11710_v60, 16  ;;  %v430_v14 = vor.u32 %v428_v62, %v426_v0  ;;  %v460_v16 = vshrl.u32 %v11710_v60, 16 }
  0x22   : > { %v464_v17 = vshll.u32 %v11715_v63, 16  ;;  %v427_v19 = vsel %vm15043_vm1, %v422_v2, %v426_v0  ;;  %v468_v22 = vshrl.u32 %v11715_v63, 16  ;;  %v438_v24 = vor.u32 %v436_v1, %v434_v3 }
  0x23   : > { %v435_v20 = vsel %vm15043_vm1, %v430_v14, %v434_v3  ;;  %v458_v21 = vrot.slane %v456_v12, 1  ;;  %v472_v26 = vshll.u32 %v11726_v18, 16  ;;  %v446_v27 = vor.u32 %v444_v8, %v442_v9 }
  0x24   : > { %v466_v25 = vrot.slane %v464_v17, 1  ;;  %v443_v29 = vsel %vm15043_vm1, %v438_v24, %v442_v9  ;;  %v476_v31 = vshrl.u32 %v11726_v18, 16  ;;  %v480_v32 = vshll.u32 %v11735_v28, 16 }
  0x25   : > { %v451_v30 = vsel %vm15043_vm1, %v446_v27, %v450_v10  ;;  %v454_v34 = vor.u32 %v452_v11, %v450_v10  ;;  %v474_v36 = vrot.slane %v472_v26, 1  ;;  %v484_v37 = vshrl.u32 %v11735_v28, 16  ;;  %v8959_v11 = vld [vmem:[%s15032_s1 + $0x6] sm:$0x3] }
  0x26   : > { %9865 = vmatmul.mubr.msk.bf16.gmra.mrb[4].mxu0 %vm508_vm2, %v395_v41  ;;  %v462_v38 = vor.u32 %v460_v16, %v458_v21  ;;  %v11748_v41 = vld [vmem:[%s11628_s27 + $0x88] sm:$0xff]   ;;  %v482_v44 = vrot.slane %v480_v32, 1  ;;  %v488_v45 = vshll.u32 %v11745_v40, 16  ;;  %v470_v47 = vor.u32 %v468_v22, %v466_v25 }
  0x27   : > { %9868 = vmatprep.mubr.msk.bf16.mxu0 %vm508_vm2, %v403_v43  ;;  %v459_v42 = vsel %vm15043_vm1, %v454_v34, %v458_v21  ;;  %v492_v50 = vshrl.u32 %v11745_v40, 16  ;;  %v496_v52 = vshll.u32 %v11748_v41, 16  ;;  %v478_v53 = vor.u32 %v476_v31, %v474_v36 }
  0x28   : > { %v467_v43 = vsel %vm15043_vm1, %v462_v38, %v466_v25  ;;  %v475_v55 = vsel %vm15043_vm1, %v470_v47, %v474_v36  ;;  %v500_v58 = vshrl.u32 %v11748_v41, 16  ;;  %v486_v59 = vor.u32 %v484_v37, %v482_v44  ;;  %v11881_v47 = vld [vmem:[%s11628_s27 + $0x10] sm:$0xff]  }
  0x29   : > { %v483_v56 = vsel %vm15043_vm1, %v478_v53, %v482_v44  ;;  %v504_v62 = vshll.u32 %v11758_v54, 16  ;;  %v1059_v10 = vsel %vm15042_vm0, %v11671_v33, 0  ;;  %v968_v14 = vrot.slane %v11638_v6, 1  ;;  %v11873_v44 = vld [vmem:[%s11628_s27 + $0xc] sm:$0xf]  ;;  %v11890_v53 = vld [vmem:[%s11628_s27 + $0x18] sm:$0xff]  }
  0x2a   : > { %v970_v17 = vrot.slane %v11641_v7, 1  ;;  %v978_v25 = vrot.slane %v11675_v35, 1  ;;  %v980_v26 = vrot.slane %v11679_v39, 1  ;;  %v996_v37 = vrot.slane %v11735_v28, 1 }
  0x2b   : > { %v506_v8 = vrot.slane %v504_v62, 1 }
  0x2e   : > { %9869 = vmatmul.mubr.msk.bf16.gmra.mrb[8].mxu0 %vm508_vm2, %v411_v57  ;;  %v490_v57 = vrot.slane %v488_v45, 1 }
  0x2f   : > { %9872 = vmatprep.mubr.msk.bf16.mxu0 %vm508_vm2, %v419_v61  ;;  %v498_v61 = vrot.slane %v496_v52, 1 }
  0x30   : > { %v494_v0 = vor.u32 %v492_v50, %v490_v57  ;;  %v491_v1 = vsel %vm15043_vm1, %v486_v59, %v490_v57  ;;  %v1407_v50 = vrot.slane %v11881_v47, 1  ;;  %v1409_v57 = vrot.slane %v11890_v53, 1  ;;  %v11902_v59 = vld [vmem:[%s11628_s27 + $0x28] sm:$0xff]  }
  0x31   : > { %v502_v3 = vor.u32 %v500_v58, %v498_v61 }
  0x32   : > { %v499_v2 = vsel %vm15043_vm1, %v494_v0, %v498_v61  ;;  %v1410_v58 = vsel %vm15038_vm3, %v1407_v50, %v1409_v57  ;;  %v11908_v0 = vld [vmem:[%s11628_s27 + $0x30] sm:$0xff]  }
  0x33   : > { %v507_v9 = vsel %vm15043_vm1, %v502_v3, %v506_v8  ;;  %v1415_v3 = vrot.slane %v11908_v0, 1 }
  0x36   : > { %9873 = vmatmul.mubr.msk.bf16.gmra.mrb[12].mxu0 %vm508_vm2, %v427_v19  ;;  %v971_v19 = vsel %vm15038_vm3, %v968_v14, %v970_v17 }
  0x37   : > { %9876 = vmatprep.mubr.msk.bf16.mxu0 %vm508_vm2, %v435_v20  ;;  %v1498_v20 = vsel %vm15042_vm0, %v8959_v11, 0 }
  0x3e   : > { %9877 = vmatmul.mubr.msk.bf16.gmra.mrb[16].mxu0 %vm508_vm2, %v443_v29  ;;  %v984_v29 = vrot.slane %v11694_v48, 1 }
  0x3f   : > { %9880 = vmatprep.mubr.msk.bf16.mxu0 %vm508_vm2, %v451_v30 }
  0x46   : > { %9881 = vmatmul.mubr.msk.bf16.gmra.mrb[20].mxu0 %vm508_vm2, %v459_v42 }
  0x47   : > { %9884 = vmatprep.mubr.msk.bf16.mxu0 %vm508_vm2, %v467_v43  ;;  %v1274_v43 = vld [vmem:[%s11628_s27 + $0x8] sm:$0xe] }
  0x48   : > { %v11878_v45 = vcombine.low %v1274_v43, %v11873_v44 }
  0x4e   : > { %9885 = vmatmul.mubr.msk.bf16.gmra.mrb[24].mxu0 %vm508_vm2, %v475_v55 }
  0x4f   : > { %9888 = vmatprep.mubr.msk.bf16.mxu0 %vm508_vm2, %v483_v56  ;;  %v11894_v56 = vld [vmem:[%s11628_s27 + $0x20] sm:$0xff]  }
  0x56   : > { %9889 = vmatmul.mubr.msk.bf16.gmra.mrb[28].mxu0 %vm508_vm2, %v491_v1  ;;  %v11913_v1 = vld [vmem:[%s15032_s1 + $0xa] sm:$0x3] }
  0x57   : > { %9892 = vmatprep.mubr.msk.bf16.mxu0 %vm508_vm2, %v499_v2  ;;  %v1413_v2 = vrot.slane %v11902_v59, 1 }
  0x5e   : > { %9893 = vmatmul.mubr.msk.bf16.gmra.mrb[32].mxu0 %vm508_vm2, %v507_v9  ;;  %v11923_v9 = vld [vmem:[%s11628_s27 + $0x38] sm:$0xff]  }
  0x5f   : > { %9898 = vmatprep.mubr.msk.bf16.mxu0 %vm508_vm2, %v11635_v5  ;;  %v960_v5 = vld [vmem:[%s11628_s27] sm:$0xe] }
  0x60   : > { %v8940_v33 = vcombine.low %v960_v5, %v11632_v4  ;;  %v972_v4 = vrot.slane %v11649_v13, 1  ;;  %v1417_v5 = vrot.slane %v11923_v9, 1 }
  0x62   : > { %v967_v12 = vrot.slane %v8940_v33, 1  ;;  %v973_v21 = vsel %vm15038_vm3, %v970_v17, %v972_v4  ;;  %v11939_v17 = vld [vmem:[%s11628_s27 + $0x50] sm:$0xff]  }
  0x64   : > { %v969_v16 = vsel %vm15038_vm3, %v967_v12, %v968_v14  ;;  %v1418_v12 = vsel %vm15038_vm3, %v1415_v3, %v1417_v5  ;;  %v11935_v14 = vld [vmem:[%s11628_s27 + $0x48] sm:$0xff]  }
  0x66   : > { %9899 = vmatmul.mubr.msk.bf16.vlgmr.msra.gmra.mrb[0].mxu0 %vm508_vm2, %v11638_v6  ;;  %v11827_v6 = vld [vmem:[%s15032_s1 + $0x8] sm:$0x3] }
  0x67   : > { %9935 = vmatpush3.bf16.msra.mxu0 %v1059_v10  ;;  %9902 = vmatprep.mubr.msk.bf16.mxu0 %vm508_vm2, %v11641_v7  ;;  %v974_v7 = vrot.slane %v11653_v15, 1  ;;  %v1945_v61 = vsel %vm15042_vm0, %v11827_v6, 0  ;;  %v1416_v10 = vsel %vm15038_vm3, %v1413_v2, %v1415_v3 }
  0x68   : > { %11263 = vmatprep.subr.msk.bf16.mxu0 %vm15042_vm0, %v8959_v11  ;;  %v11927_v11 = vld [vmem:[%s11628_s27 + $0x40] sm:$0xff]  }
  0x69   : > { %v975_v22 = vsel %vm15038_vm3, %v972_v4, %v974_v7  ;;  %v1419_v33 = vrot.slane %v11927_v11, 1  ;;  %v1421_v4 = vrot.slane %v11935_v14, 1 }
  0x6e   : > { %9903 = vmatmul.mubr.msk.bf16.gmra.mrb[4].mxu0 %vm508_vm2, %v11649_v13  ;;  %v976_v13 = vrot.slane %v11658_v23, 1 }
  0x6f   : > { %9906 = vmatprep.mubr.msk.bf16.mxu0 %vm508_vm2, %v11653_v15  ;;  %v981_v15 = vsel %vm15038_vm3, %v978_v25, %v980_v26 }
  0x70   : > { %v977_v24 = vsel %vm15038_vm3, %v974_v7, %v976_v13  ;;  %v979_v27 = vsel %vm15038_vm3, %v976_v13, %v978_v25  ;;  %v11951_v7 = vld [vmem:[%s11628_s27 + $0x60] sm:$0xff]   ;;  %v11959_v25 = vld [vmem:[%s11628_s27 + $0x68] sm:$0xff]  }
  0x76   : > { %9907 = vmatmul.mubr.msk.bf16.gmra.mrb[8].mxu0 %vm508_vm2, %v11658_v23  ;;  %v982_v23 = vrot.slane %v11690_v46, 1 }
  0x77   : > { %9910 = vmatprep.mubr.msk.bf16.mxu0 %vm508_vm2, %v11675_v35  ;;  %v986_v35 = vrot.slane %v11697_v49, 1 }
  0x78   : > { %v983_v30 = vsel %vm15038_vm3, %v980_v26, %v982_v23  ;;  %v985_v31 = vsel %vm15038_vm3, %v982_v23, %v984_v29 }
  0x79   : > { %v987_v32 = vsel %vm15038_vm3, %v984_v29, %v986_v35 }
  0x7e   : > { %9911 = vmatmul.mubr.msk.bf16.gmra.mrb[12].mxu0 %vm508_vm2, %v11679_v39  ;;  %v988_v39 = vrot.slane %v11701_v51, 1 }
  0x7f   : > { %9914 = vmatprep.mubr.msk.bf16.mxu0 %vm508_vm2, %v11690_v46  ;;  %v990_v46 = vrot.slane %v11710_v60, 1 }
  0x80   : > { %v989_v34 = vsel %vm15038_vm3, %v986_v35, %v988_v39  ;;  %v11975_v35 = vld [vmem:[%s11628_s27 + $0x80] sm:$0xff]  }
  0x81   : > { %v991_v36 = vsel %vm15038_vm3, %v988_v39, %v990_v46 }
  0x86   : > { %9915 = vmatmul.mubr.msk.bf16.gmra.mrb[16].mxu0 %vm508_vm2, %v11694_v48  ;;  %v992_v48 = vrot.slane %v11715_v63, 1 }
  0x87   : > { %9918 = vmatprep.mubr.msk.bf16.mxu0 %vm508_vm2, %v11697_v49 }
  0x88   : > { %v993_v49 = vsel %vm15038_vm3, %v990_v46, %v992_v48  ;;  %v11983_v46 = vld [vmem:[%s11628_s27 + $0x88] sm:$0xff]  }
  0x8e   : > { %9919 = vmatmul.mubr.msk.bf16.gmra.mrb[20].mxu0 %vm508_vm2, %v11701_v51  ;;  %v994_v51 = vrot.slane %v11726_v18, 1 }
  0x8f   : > { %9922 = vmatprep.mubr.msk.bf16.mxu0 %vm508_vm2, %v11710_v60  ;;  %v998_v60 = vrot.slane %v11745_v40, 1 }
  0x90   : > { %v995_v38 = vsel %vm15038_vm3, %v992_v48, %v994_v51  ;;  %v997_v42 = vsel %vm15038_vm3, %v994_v51, %v996_v37  ;;  %v11986_v48 = vld [vmem:[%s11628_s27 + $0x90] sm:$0xff]  }
  0x91   : > { %v1439_v51 = vrot.slane %v11986_v48, 1 }
  0x96   : > { %9923 = vmatmul.mubr.msk.bf16.gmra.mrb[24].mxu0 %vm508_vm2, %v11715_v63  ;;  %v1000_v63 = vrot.slane %v11748_v41, 1 }
  0x97   : > { %9926 = vmatprep.mubr.msk.bf16.mxu0 %vm508_vm2, %v11726_v18  ;;  %v999_v18 = vsel %vm15038_vm3, %v996_v37, %v998_v60  ;;  %v1721_v37 = vshrl.u32 %v11878_v45, 16 }
  0x9e   : > { %9927 = vmatmul.mubr.msk.bf16.gmra.mrb[28].mxu0 %vm508_vm2, %v11735_v28  ;;  %v1001_v28 = vsel %vm15038_vm3, %v998_v60, %v1000_v63  ;;  %v1732_v60 = vshll.u32 %v11881_v47, 16 }
  0x9f   : > { %9930 = vmatprep.mubr.msk.bf16.mxu0 %vm508_vm2, %v11745_v40  ;;  %v1002_v40 = vrot.slane %v11758_v54, 1  ;;  %v1411_v54 = vrot.slane %v11894_v56, 1 }
  0xa1   : > { %v1003_v52 = vsel %vm15038_vm3, %v1000_v63, %v1002_v40  ;;  %v1412_v62 = vsel %vm15038_vm3, %v1409_v57, %v1411_v54  ;;  %v1414_v8 = vsel %vm15038_vm3, %v1411_v54, %v1413_v2 }
  0xa6   : > { %9931 = vmatmul.mubr.msk.bf16.gmra.mrb[32].mxu0 %vm508_vm2, %v11748_v41  ;;  %v1406_v41 = vrot.slane %v11878_v45, 1 }
  0xa7   : > { %9936 = vmatprep.mubr.msk.bf16.mxu0 %vm508_vm2, %v969_v16  ;;  %v1420_v16 = vsel %vm15038_vm3, %v1417_v5, %v1419_v33 }
  0xa8   : > { %v1408_v55 = vsel %vm15038_vm3, %v1406_v41, %v1407_v50  ;;  %v1734_v50 = vrot.slane %v1732_v60, 2 }
  0xae   : > { %9937 = vmatmul.mubr.msk.bf16.vlgmr.msra.gmra.mrb[0].mxu0 %vm508_vm2, %v971_v19  ;;  %v1423_v19 = vrot.slane %v11939_v17, 1 }
  0xaf   : > { %9973 = vmatpush3.bf16.msra.mxu0 %v1498_v20  ;;  %9940 = vmatprep.mubr.msk.bf16.mxu0 %vm508_vm2, %v973_v21  ;;  %v1422_v20 = vsel %vm15038_vm3, %v1419_v33, %v1421_v4  ;;  %v11947_v21 = vld [vmem:[%s11628_s27 + $0x58] sm:$0xff]  }
  0xb0   : > { %11264 = vmatprep.subr.msk.bf16.mxu0 %vm15042_vm0, %v11827_v6  ;;  %v1424_v6 = vsel %vm15038_vm3, %v1421_v4, %v1423_v19  ;;  %v1425_v13 = vrot.slane %v11947_v21, 1 }
  0xb6   : > { %9941 = vmatmul.mubr.msk.bf16.gmra.mrb[4].mxu0 %vm508_vm2, %v975_v22  ;;  %v1427_v22 = vrot.slane %v11951_v7, 1 }
  0xb7   : > { %9944 = vmatprep.mubr.msk.bf16.mxu0 %vm508_vm2, %v977_v24  ;;  %v1426_v24 = vsel %vm15038_vm3, %v1423_v19, %v1425_v13  ;;  %v1765_v19 = vshrl.u32 %v11908_v0, 16 }
  0xb8   : > { %v1428_v26 = vsel %vm15038_vm3, %v1425_v13, %v1427_v22 }
  0xbe   : > { %9945 = vmatmul.mubr.msk.bf16.gmra.mrb[8].mxu0 %vm508_vm2, %v979_v27  ;;  %v11963_v27 = vld [vmem:[%s11628_s27 + $0x70] sm:$0xff]  }
  0xbf   : > { %9948 = vmatprep.mubr.msk.bf16.mxu0 %vm508_vm2, %v981_v15  ;;  %v1429_v15 = vrot.slane %v11959_v25, 1  ;;  %v1431_v23 = vrot.slane %v11963_v27, 1 }
  0xc1   : > { %v1430_v29 = vsel %vm15038_vm3, %v1427_v22, %v1429_v15 }
  0xc6   : > { %9949 = vmatmul.mubr.msk.bf16.gmra.mrb[12].mxu0 %vm508_vm2, %v983_v30  ;;  %v11971_v30 = vld [vmem:[%s11628_s27 + $0x78] sm:$0xff]  }
  0xc7   : > { %9952 = vmatprep.mubr.msk.bf16.mxu0 %vm508_vm2, %v985_v31  ;;  %v1432_v31 = vsel %vm15038_vm3, %v1429_v15, %v1431_v23  ;;  %v1433_v39 = vrot.slane %v11971_v30, 1  ;;  %v1767_v15 = vrot.slane %v1765_v19, 1 }
  0xce   : > { %9953 = vmatmul.mubr.msk.bf16.gmra.mrb[16].mxu0 %vm508_vm2, %v987_v32  ;;  %v1435_v32 = vrot.slane %v11975_v35, 1 }
  0xcf   : > { %9956 = vmatprep.mubr.msk.bf16.mxu0 %vm508_vm2, %v989_v34  ;;  %v1434_v34 = vsel %vm15038_vm3, %v1431_v23, %v1433_v39 }
  0xd6   : > { %9957 = vmatmul.mubr.msk.bf16.gmra.mrb[20].mxu0 %vm508_vm2, %v991_v36  ;;  %v1436_v36 = vsel %vm15038_vm3, %v1433_v39, %v1435_v32  ;;  %v1774_v39 = vshrl.u32 %v11923_v9, 16 }
  0xd7   : > { %9960 = vmatprep.mubr.msk.bf16.mxu0 %vm508_vm2, %v993_v49  ;;  %v1437_v49 = vrot.slane %v11983_v46, 1 }
  0xd9   : > { %v1438_v63 = vsel %vm15038_vm3, %v1435_v32, %v1437_v49  ;;  %v1440_v43 = vsel %vm15038_vm3, %v1437_v49, %v1439_v51  ;;  %v1777_v32 = vshll.u32 %v11923_v9, 16 }
  0xde   : > { %9961 = vmatmul.mubr.msk.bf16.gmra.mrb[24].mxu0 %vm508_vm2, %v995_v38  ;;  %v1724_v38 = vshll.u32 %v11878_v45, 16  ;;  %v1738_v45 = vshrl.u32 %v11890_v53, 16 }
  0xdf   : > { %9964 = vmatprep.mubr.msk.bf16.mxu0 %vm508_vm2, %v997_v42  ;;  %v1729_v42 = vshrl.u32 %v11881_v47, 16 }
  0xe0   : > { %v1726_v40 = vrot.slane %v1724_v38, 2  ;;  %v1740_v2 = vrot.slane %v1738_v45, 1 }
  0xe1   : > { %v1731_v41 = vrot.slane %v1729_v42, 1 }
  0xe3   : > { %v1735_v54 = vor.u32 %v1734_v50, %v1731_v41  ;;  %v1804_v41 = vshll.u32 %v11939_v17, 16 }
  0xe6   : > { %9965 = vmatmul.mubr.msk.bf16.gmra.mrb[28].mxu0 %vm508_vm2, %v999_v18  ;;  %v11390_v18 = vld [vmem:[%s11628_s27 + $0x98] ss:$0 sps:$4 sm:$0x11]  }
  0xe7   : > { %9968 = vmatprep.mubr.msk.bf16.mxu0 %vm508_vm2, %v1001_v28  ;;  %v1723_v28 = vrot.slane %v1721_v37, 1  ;;  %v1779_v37 = vrot.slane %v1777_v32, 2 }
  0xe9   : > { %v1727_v57 = vor.u32 %v1726_v40, %v1723_v28  ;;  %v1801_v40 = vshrl.u32 %v11939_v17, 16 }
  0xee   : > { %9969 = vmatmul.mubr.msk.bf16.gmra.mrb[32].mxu0 %vm508_vm2, %v1003_v52  ;;  %v1441_v52 = vrot.slane %v11390_v18, 1  ;;  %v1795_v18 = vshll.u32 %v11935_v14, 16 }
  0xef   : > { %9974 = vmatprep.mubr.msk.bf16.mxu0 %vm508_vm2, %v1408_v55  ;;  %v1741_v55 = vshll.u32 %v11890_v53, 16 }
  0xf0   : > { %v1797_v45 = vrot.slane %v1795_v18, 2 }
  0xf1   : > { %v1743_v3 = vrot.slane %v1741_v55, 2 }
  0xf3   : > { %v1744_v33 = vor.u32 %v1743_v3, %v1740_v2  ;;  %v1819_v3 = vshrl.u32 %v11951_v7, 16 }
  0xf6   : > { %9975 = vmatmul.mubr.msk.bf16.vlgmr.msra.gmra.mrb[0].mxu0 %vm508_vm2, %v1410_v58  ;;  %v1747_v58 = vshrl.u32 %v11894_v56, 16 }
  0xf7   : > { %10011 = vmatpush3.bf16.msra.mxu0 %v1945_v61  ;;  %9978 = vmatprep.mubr.msk.bf16.mxu0 %vm508_vm2, %v1412_v62  ;;  %v1750_v61 = vshll.u32 %v11894_v56, 16  ;;  %v1442_v62 = vsel %vm15038_vm3, %v1439_v51, %v1441_v52  ;;  %v1776_v51 = vrot.slane %v1774_v39, 1 }
  0xf8   : > { %11265 = vmatprep.subr.msk.bf16.mxu0 %vm15042_vm0, %v11913_v1 }
  0xf9   : > { %v1752_v5 = vrot.slane %v1750_v61, 2  ;;  %v1810_v61 = vshrl.u32 %v11947_v21, 16 }
  0xfe   : > { %9979 = vmatmul.mubr.msk.bf16.gmra.mrb[4].mxu0 %vm508_vm2, %v1414_v8  ;;  %v1736_v8 = vsel %vm15041_vm4, %v1727_v57, %v1735_v54  ;;  %v1803_v57 = vrot.slane %v1801_v40, 1  ;;  %v1864_v40 = vshrl.u32 %v11983_v46, 16 }
  0xff   : > { %9982 = vmatprep.mubr.msk.bf16.mxu0 %vm508_vm2, %v1416_v10  ;;  %v1749_v10 = vrot.slane %v1747_v58, 1 }
 0x101   : > { %v1753_v4 = vor.u32 %v1752_v5, %v1749_v10  ;;  %v1812_v5 = vrot.slane %v1810_v61, 1 }
 0x106   : > { %9983 = vmatmul.mubr.msk.bf16.gmra.mrb[8].mxu0 %vm508_vm2, %v1418_v12  ;;  %v1756_v12 = vshrl.u32 %v11902_v59, 16 }
 0x107   : > { %9986 = vmatprep.mubr.msk.bf16.mxu0 %vm508_vm2, %v1420_v16  ;;  %v1759_v16 = vshll.u32 %v11902_v59, 16 }
 0x108   : > { %v1758_v13 = vrot.slane %v1756_v12, 1 }
 0x109   : > { %v1761_v22 = vrot.slane %v1759_v16, 2  ;;  %v1821_v16 = vrot.slane %v1819_v3, 1 }
 0x10e   : > { %9987 = vmatmul.mubr.msk.bf16.gmra.mrb[12].mxu0 %vm508_vm2, %v1422_v20  ;;  %v1768_v20 = vshll.u32 %v11908_v0, 16 }
 0x10f   : > { %9990 = vmatprep.mubr.msk.bf16.mxu0 %vm508_vm2, %v1424_v6  ;;  %v1745_v6 = vsel %vm15041_vm4, %v1735_v54, %v1744_v33  ;;  %v1806_v54 = vrot.slane %v1804_v41, 2  ;;  %v1867_v41 = vshll.u32 %v11983_v46, 16 }
 0x110   : > { %v1770_v23 = vrot.slane %v1768_v20, 2  ;;  %v1828_v20 = vshrl.u32 %v11959_v25, 16 }
 0x111   : > { %v1807_v2 = vor.u32 %v1806_v54, %v1803_v57  ;;  %v1866_v57 = vrot.slane %v1864_v40, 1  ;;  %v1869_v54 = vrot.slane %v1867_v41, 2  ;;  %v12146_v40 = vld [vmem:[%s11628_s27 + $0x14] sm:$0xf] }
 0x113   : > { %v1870_v3 = vor.u32 %v1869_v54, %v1866_v57  ;;  %v12167_v54 = vld [vmem:[%s11628_s27 + $0x28] sm:$0xff]  }
 0x116   : > { %9991 = vmatmul.mubr.msk.bf16.gmra.mrb[16].mxu0 %vm508_vm2, %v1426_v24  ;;  %v2259_v24 = vsel %vm15042_vm0, %v11913_v1, 0  ;;  %v1771_v1 = vor.u32 %v1770_v23, %v1767_v15  ;;  %v1830_v15 = vrot.slane %v1828_v20, 1 }
 0x117   : > { %9994 = vmatprep.mubr.msk.bf16.mxu0 %vm508_vm2, %v1428_v26  ;;  %v1754_v26 = vsel %vm15041_vm4, %v1744_v33, %v1753_v4 }
 0x11e   : > { %9995 = vmatmul.mubr.msk.bf16.gmra.mrb[20].mxu0 %vm508_vm2, %v1430_v29  ;;  %v12021_v29 = vld [vmem:[%s15032_s1 + $0xc] sm:$0x3] }
 0x11f   : > { %9998 = vmatprep.mubr.msk.bf16.mxu0 %vm508_vm2, %v1432_v31  ;;  %v1762_v31 = vor.u32 %v1761_v22, %v1758_v13  ;;  %v1837_v22 = vshrl.u32 %v11963_v27, 16 }
 0x121   : > { %v1763_v49 = vsel %vm15041_vm4, %v1753_v4, %v1762_v31  ;;  %v1772_v38 = vsel %vm15041_vm4, %v1762_v31, %v1771_v1  ;;  %v1839_v39 = vrot.slane %v1837_v22, 1  ;;  %v2168_v22 = vrot.slane %v11881_v47, 2 }
 0x126   : > { %9999 = vmatmul.mubr.msk.bf16.gmra.mrb[24].mxu0 %vm508_vm2, %v1434_v34  ;;  %v1783_v34 = vshrl.u32 %v11927_v11, 16 }
 0x127   : > { %10002 = vmatprep.mubr.msk.bf16.mxu0 %vm508_vm2, %v1436_v36  ;;  %v1786_v36 = vshll.u32 %v11927_v11, 16 }
 0x128   : > { %v1785_v42 = vrot.slane %v1783_v34, 1  ;;  %v1846_v34 = vshrl.u32 %v11971_v30, 16 }
 0x129   : > { %v1788_v60 = vrot.slane %v1786_v36, 2  ;;  %v1849_v36 = vshll.u32 %v11971_v30, 16 }
 0x12b   : > { %v1789_v28 = vor.u32 %v1788_v60, %v1785_v42  ;;  %v1848_v42 = vrot.slane %v1846_v34, 1  ;;  %v1851_v60 = vrot.slane %v1849_v36, 2  ;;  %v2180_v34 = vrot.slane %v11927_v11, 2 }
 0x12c   : > { %v2188_v11 = vrot.slane %v11951_v7, 2 }
 0x12e   : > { %10003 = vmatmul.mubr.msk.bf16.gmra.mrb[28].mxu0 %vm508_vm2, %v1438_v63  ;;  %v1780_v63 = vor.u32 %v1779_v37, %v1776_v51  ;;  %v1855_v51 = vshrl.u32 %v11975_v35, 16  ;;  %v1858_v37 = vshll.u32 %v11975_v35, 16 }
 0x12f   : > { %10006 = vmatprep.mubr.msk.bf16.mxu0 %vm508_vm2, %v1440_v43  ;;  %v1792_v43 = vshrl.u32 %v11935_v14, 16 }
 0x130   : > { %v1781_v50 = vsel %vm15041_vm4, %v1771_v1, %v1780_v63  ;;  %v1790_v55 = vsel %vm15041_vm4, %v1780_v63, %v1789_v28  ;;  %v1860_v18 = vrot.slane %v1858_v37, 2 }
 0x131   : > { %v1794_v52 = vrot.slane %v1792_v43, 1  ;;  %v1857_v43 = vrot.slane %v1855_v51, 1 }
 0x133   : > { %v1798_v58 = vor.u32 %v1797_v45, %v1794_v52  ;;  %v1873_v52 = vshrl.u32 %v11986_v48, 16  ;;  %v1876_v45 = vshll.u32 %v11986_v48, 16 }
 0x135   : > { %v1799_v10 = vsel %vm15041_vm4, %v1789_v28, %v1798_v58  ;;  %v1808_v12 = vsel %vm15041_vm4, %v1798_v58, %v1807_v2  ;;  %v1852_v28 = vor.u32 %v1851_v60, %v1848_v42  ;;  %v12073_v58 = vld [vmem:[%s11628_s27 + $0x98] ss:$0 sps:$4 sm:$0x33]  }
 0x136   : > { %10007 = vmatmul.mubr.msk.bf16.gmra.mrb[32].mxu0 %vm508_vm2, %v1442_v62  ;;  %v1813_v62 = vshll.u32 %v11947_v21, 16 }
 0x137   : > { %10012 = vmatprep.mubr.msk.bf16.mxu0 %vm508_vm2, %v1736_v8  ;;  %v1822_v8 = vshll.u32 %v11951_v7, 16  ;;  %v2194_v7 = vrot.slane %v11971_v30, 2 }
 0x138   : > { %v1815_v33 = vrot.slane %v1813_v62, 2  ;;  %v1875_v62 = vrot.slane %v1873_v52, 1 }
 0x139   : > { %v1824_v4 = vrot.slane %v1822_v8, 2  ;;  %v1882_v8 = vshrl.u32 %v12073_v58, 16 }
 0x13a   : > { %v1816_v19 = vor.u32 %v1815_v33, %v1812_v5  ;;  %v2160_v33 = vld [vmem:[%s11628_s27 + $0x8] sm:$0xc] }
 0x13b   : > { %v1825_v13 = vor.u32 %v1824_v4, %v1821_v16  ;;  %v1884_v16 = vrot.slane %v1882_v8, 1  ;;  %v9018_v20 = vcombine.low %v2160_v33, %v11873_v44  ;;  %v2172_v44 = vrot.slane %v11894_v56, 2 }
 0x13c   : > { %v2176_v56 = vrot.slane %v11908_v0, 2  ;;  %v2182_v0 = vrot.slane %v11935_v14, 2  ;;  %v2190_v14 = vrot.slane %v11959_v25, 2 }
 0x13d   : > { %v1826_v31 = vsel %vm15041_vm4, %v1816_v19, %v1825_v13 }
 0x13e   : > { %10013 = vmatmul.mubr.msk.bf16.vlgmr.msra.gmra.mrb[0].mxu0 %vm508_vm2, %v1745_v6  ;;  %v1831_v6 = vshll.u32 %v11959_v25, 16  ;;  %v2183_v51 = vsel %vm15040_vm5, %v2180_v34, %v2182_v0  ;;  %v2191_v60 = vsel %vm15040_vm5, %v2188_v11, %v2190_v14  ;;  %v2198_v25 = vrot.slane %v11983_v46, 2 }
 0x13f   : > { %10049 = vmatpush3.bf16.msra.mxu0 %v2259_v24  ;;  %10016 = vmatprep.mubr.msk.bf16.mxu0 %vm508_vm2, %v1754_v26  ;;  %v1840_v24 = vshll.u32 %v11963_v27, 16  ;;  %v1817_v26 = vsel %vm15041_vm4, %v1807_v2, %v1816_v19  ;;  %v1878_v2 = vrot.slane %v1876_v45, 2  ;;  %v2202_v46 = vrot.slane %v12073_v58, 2 }
 0x140   : > { %11266 = vmatprep.subr.msk.bf16.mxu0 %vm15042_vm0, %v12021_v29  ;;  %v1833_v23 = vrot.slane %v1831_v6, 2 }
 0x141   : > { %v1842_v32 = vrot.slane %v1840_v24, 2  ;;  %v1879_v5 = vor.u32 %v1878_v2, %v1875_v62  ;;  %v12175_v2 = vld [vmem:[%s11628_s27 + $0x30] sm:$0xff]  }
 0x142   : > { %v1834_v1 = vor.u32 %v1833_v23, %v1830_v15  ;;  %v2170_v15 = vrot.slane %v11890_v53, 2  ;;  %v2174_v53 = vrot.slane %v11902_v59, 2  ;;  %v2613_v33 = vrot.slane %v12175_v2, 2 }
 0x143   : > { %v1880_v19 = vsel %vm15041_vm4, %v1870_v3, %v1879_v5 }
 0x144   : > { %v2171_v23 = vsel %vm15040_vm5, %v2168_v22, %v2170_v15  ;;  %v2173_v47 = vsel %vm15040_vm5, %v2170_v15, %v2172_v44  ;;  %v12212_v15 = vld [vmem:[%s11628_s27 + $0x58] sm:$0xff]  }
 0x146   : > { %10017 = vmatmul.mubr.msk.bf16.gmra.mrb[4].mxu0 %vm508_vm2, %v1763_v49  ;;  %v1843_v49 = vor.u32 %v1842_v32, %v1839_v39  ;;  %v12100_v39 = vld [vmem:[%s15032_s1 + $0xe] sm:$0x3]  ;;  %v2177_v32 = vsel %vm15040_vm5, %v2174_v53, %v2176_v56 }
 0x147   : > { %10020 = vmatprep.mubr.msk.bf16.mxu0 %vm508_vm2, %v1772_v38  ;;  %v1835_v38 = vsel %vm15041_vm4, %v1825_v13, %v1834_v1  ;;  %v2167_v13 = vrot.slane %v9018_v20, 2  ;;  %v12200_v20 = vld [vmem:[%s11628_s27 + $0x48] sm:$0xff]  }
 0x148   : > { %v1844_v63 = vsel %vm15041_vm4, %v1834_v1, %v1843_v49  ;;  %v2178_v1 = vrot.slane %v11923_v9, 2  ;;  %v2186_v9 = vrot.slane %v11947_v21, 2 }
 0x14a   : > { %v2179_v36 = vsel %vm15040_vm5, %v2176_v56, %v2178_v1  ;;  %v2181_v59 = vsel %vm15040_vm5, %v2178_v1, %v2180_v34  ;;  %v2189_v42 = vsel %vm15040_vm5, %v2186_v9, %v2188_v11  ;;  %v12232_v1 = vld [vmem:[%s11628_s27 + $0x70] sm:$0xff]  }
 0x14e   : > { %10021 = vmatmul.mubr.msk.bf16.gmra.mrb[8].mxu0 %vm508_vm2, %v1781_v50  ;;  %v1861_v50 = vor.u32 %v1860_v18, %v1857_v43 }
 0x14f   : > { %10024 = vmatprep.mubr.msk.bf16.mxu0 %vm508_vm2, %v1790_v55  ;;  %v1853_v55 = vsel %vm15041_vm4, %v1843_v49, %v1852_v28  ;;  %v2184_v49 = vrot.slane %v11939_v17, 2  ;;  %v2192_v17 = vrot.slane %v11963_v27, 2  ;;  %v2200_v27 = vrot.slane %v11986_v48, 2 }
 0x150   : > { %v1862_v61 = vsel %vm15041_vm4, %v1852_v28, %v1861_v50  ;;  %v2474_v28 = vld [vmem:[%s11628_s27 + $0x10] sm:$0xc] }
 0x151   : > { %v2185_v37 = vsel %vm15040_vm5, %v2182_v0, %v2184_v49  ;;  %v2193_v21 = vsel %vm15040_vm5, %v2190_v14, %v2192_v17  ;;  %v2195_v43 = vsel %vm15040_vm5, %v2192_v17, %v2194_v7  ;;  %v12151_v41 = vcombine.low %v2474_v28, %v12146_v40  ;;  %v12256_v14 = vld [vmem:[%s11628_s27 + $0x90] sm:$0xff]   ;;  %v12259_v17 = vld [vmem:[%s11628_s27 + $0x98] sm:$0xff]  }
 0x152   : > { %v2203_v45 = vsel %vm15040_vm5, %v2200_v27, %v2202_v46 }
 0x153   : > { %v2606_v48 = vrot.slane %v12151_v41, 2 }
 0x156   : > { %10025 = vmatmul.mubr.msk.bf16.gmra.mrb[12].mxu0 %vm508_vm2, %v1799_v10  ;;  %v1885_v10 = vshll.u32 %v12073_v58, 16  ;;  %v2611_v58 = vrot.slane %v12167_v54, 2 }
 0x157   : > { %10028 = vmatprep.mubr.msk.bf16.mxu0 %vm508_vm2, %v1808_v12  ;;  %v1871_v12 = vsel %vm15041_vm4, %v1861_v50, %v1870_v3  ;;  %v12154_v50 = vld [vmem:[%s11628_s27 + $0x18] sm:$0xff]   ;;  %v3145_v3 = vsel %vm15042_vm0, %v12100_v39, 0 }
 0x158   : > { %v1887_v4 = vrot.slane %v1885_v10, 2  ;;  %v2607_v52 = vrot.slane %v12154_v50, 2  ;;  %v12181_v10 = vld [vmem:[%s11628_s27 + $0x38] sm:$0xff]  }
 0x15a   : > { %v1888_v6 = vor.u32 %v1887_v4, %v1884_v16  ;;  %v2608_v57 = vsel %vm15040_vm5, %v2606_v48, %v2607_v52  ;;  %v2614_v16 = vsel %vm15040_vm5, %v2611_v58, %v2613_v33  ;;  %v12196_v4 = vld [vmem:[%s11628_s27 + $0x40] sm:$0xff]  }
 0x15c   : > { %v1889_v24 = vsel %vm15041_vm4, %v1879_v5, %v1888_v6  ;;  %v12186_v5 = vld [vmem:[%s15032_s1 + $0x10] sm:$0x3]  ;;  %v2617_v6 = vrot.slane %v12196_v4, 2 }
 0x15e   : > { %10029 = vmatmul.mubr.msk.bf16.gmra.mrb[16].mxu0 %vm508_vm2, %v1817_v26  ;;  %v2169_v26 = vsel %vm15040_vm5, %v2167_v13, %v2168_v22  ;;  %v2619_v13 = vrot.slane %v12200_v20, 2 }
 0x15f   : > { %10032 = vmatprep.mubr.msk.bf16.mxu0 %vm508_vm2, %v1826_v31  ;;  %v2698_v31 = vsel %vm15042_vm0, %v12021_v29, 0  ;;  %v2175_v29 = vsel %vm15040_vm5, %v2172_v44, %v2174_v53  ;;  %v12224_v53 = vld [vmem:[%s11628_s27 + $0x68] sm:$0xff]  }
 0x166   : > { %10033 = vmatmul.mubr.msk.bf16.gmra.mrb[20].mxu0 %vm508_vm2, %v1835_v38  ;;  %v2187_v38 = vsel %vm15040_vm5, %v2184_v49, %v2186_v9  ;;  %v12248_v9 = vld [vmem:[%s11628_s27 + $0x88] sm:$0xff]  }
 0x167   : > { %10036 = vmatprep.mubr.msk.bf16.mxu0 %vm508_vm2, %v1844_v63  ;;  %v2196_v63 = vrot.slane %v11975_v35, 2  ;;  %v2201_v35 = vsel %vm15040_vm5, %v2198_v25, %v2200_v27 }
 0x169   : > { %v2197_v18 = vsel %vm15040_vm5, %v2194_v7, %v2196_v63  ;;  %v2199_v30 = vsel %vm15040_vm5, %v2196_v63, %v2198_v25  ;;  %v2639_v7 = vrot.slane %v12259_v17, 2  ;;  %v2921_v63 = vshrl.u32 %v12151_v41, 16 }
 0x16a   : > { %v2932_v25 = vshll.u32 %v12154_v50, 16 }
 0x16e   : > { %10037 = vmatmul.mubr.msk.bf16.gmra.mrb[24].mxu0 %vm508_vm2, %v1853_v55  ;;  %v12163_v55 = vld [vmem:[%s11628_s27 + $0x20] sm:$0xff]  }
 0x16f   : > { %10040 = vmatprep.mubr.msk.bf16.mxu0 %vm508_vm2, %v1862_v61  ;;  %v2609_v61 = vrot.slane %v12163_v55, 2 }
 0x171   : > { %v2610_v62 = vsel %vm15040_vm5, %v2607_v52, %v2609_v61  ;;  %v2612_v8 = vsel %vm15040_vm5, %v2609_v61, %v2611_v58  ;;  %v2934_v52 = vrot.slane %v2932_v25, 3 }
 0x176   : > { %10041 = vmatmul.mubr.msk.bf16.gmra.mrb[28].mxu0 %vm508_vm2, %v1871_v12  ;;  %v2615_v12 = vrot.slane %v12181_v10, 2 }
 0x177   : > { %10044 = vmatprep.mubr.msk.bf16.mxu0 %vm508_vm2, %v1880_v19 }
 0x178   : > { %v2616_v19 = vsel %vm15040_vm5, %v2613_v33, %v2615_v12  ;;  %v2618_v22 = vsel %vm15040_vm5, %v2615_v12, %v2617_v6 }
 0x17e   : > { %10045 = vmatmul.mubr.msk.bf16.gmra.mrb[32].mxu0 %vm508_vm2, %v1889_v24  ;;  %v12208_v24 = vld [vmem:[%s11628_s27 + $0x50] sm:$0xff]  }
 0x17f   : > { %10050 = vmatprep.mubr.msk.bf16.mxu0 %vm508_vm2, %v2169_v26  ;;  %v2620_v26 = vsel %vm15040_vm5, %v2617_v6, %v2619_v13  ;;  %v2621_v44 = vrot.slane %v12208_v24, 2 }
 0x186   : > { %10051 = vmatmul.mubr.msk.bf16.vlgmr.msra.gmra.mrb[0].mxu0 %vm508_vm2, %v2171_v23  ;;  %v2623_v23 = vrot.slane %v12212_v15, 2 }
 0x187   : > { %10087 = vmatpush3.bf16.msra.mxu0 %v2698_v31  ;;  %10054 = vmatprep.mubr.msk.bf16.mxu0 %vm508_vm2, %v2173_v47  ;;  %v2622_v31 = vsel %vm15040_vm5, %v2619_v13, %v2621_v44  ;;  %v12220_v47 = vld [vmem:[%s11628_s27 + $0x60] sm:$0xff]  }
 0x188   : > { %11267 = vmatprep.subr.msk.bf16.mxu0 %vm15042_vm0, %v12100_v39  ;;  %v2624_v39 = vsel %vm15040_vm5, %v2621_v44, %v2623_v23  ;;  %v2625_v56 = vrot.slane %v12220_v47, 2 }
 0x18e   : > { %10055 = vmatmul.mubr.msk.bf16.gmra.mrb[4].mxu0 %vm508_vm2, %v2175_v29  ;;  %v2627_v29 = vrot.slane %v12224_v53, 2 }
 0x18f   : > { %10058 = vmatprep.mubr.msk.bf16.mxu0 %vm508_vm2, %v2177_v32  ;;  %v2626_v32 = vsel %vm15040_vm5, %v2623_v23, %v2625_v56  ;;  %v2965_v23 = vshrl.u32 %v12181_v10, 16 }
 0x190   : > { %v2628_v34 = vsel %vm15040_vm5, %v2625_v56, %v2627_v29 }
 0x196   : > { %10059 = vmatmul.mubr.msk.bf16.gmra.mrb[8].mxu0 %vm508_vm2, %v2179_v36  ;;  %v12236_v36 = vld [vmem:[%s11628_s27 + $0x78] sm:$0xff]  }
 0x197   : > { %10062 = vmatprep.mubr.msk.bf16.mxu0 %vm508_vm2, %v2181_v59  ;;  %v2629_v59 = vrot.slane %v12232_v1, 2  ;;  %v2631_v0 = vrot.slane %v12236_v36, 2 }
 0x199   : > { %v2630_v49 = vsel %vm15040_vm5, %v2627_v29, %v2629_v59 }
 0x19e   : > { %10063 = vmatmul.mubr.msk.bf16.gmra.mrb[12].mxu0 %vm508_vm2, %v2183_v51  ;;  %v12244_v51 = vld [vmem:[%s11628_s27 + $0x80] sm:$0xff]  }
 0x19f   : > { %10066 = vmatprep.mubr.msk.bf16.mxu0 %vm508_vm2, %v2185_v37  ;;  %v2632_v37 = vsel %vm15040_vm5, %v2629_v59, %v2631_v0  ;;  %v2633_v11 = vrot.slane %v12244_v51, 2  ;;  %v2967_v59 = vrot.slane %v2965_v23, 2  ;;  %v3028_v23 = vshrl.u32 %v12232_v1, 16 }
 0x1a6   : > { %10067 = vmatmul.mubr.msk.bf16.gmra.mrb[16].mxu0 %vm508_vm2, %v2187_v38  ;;  %v2635_v38 = vrot.slane %v12248_v9, 2 }
 0x1a7   : > { %10070 = vmatprep.mubr.msk.bf16.mxu0 %vm508_vm2, %v2189_v42  ;;  %v2634_v42 = vsel %vm15040_vm5, %v2631_v0, %v2633_v11 }
 0x1ae   : > { %10071 = vmatmul.mubr.msk.bf16.gmra.mrb[20].mxu0 %vm508_vm2, %v2191_v60  ;;  %v2636_v60 = vsel %vm15040_vm5, %v2633_v11, %v2635_v38  ;;  %v2977_v11 = vshll.u32 %v12196_v4, 16 }
 0x1af   : > { %10074 = vmatprep.mubr.msk.bf16.mxu0 %vm508_vm2, %v2193_v21  ;;  %v2637_v21 = vrot.slane %v12256_v14, 2 }
 0x1b1   : > { %v2638_v27 = vsel %vm15040_vm5, %v2635_v38, %v2637_v21  ;;  %v2640_v28 = vsel %vm15040_vm5, %v2637_v21, %v2639_v7 }
 0x1b6   : > { %10075 = vmatmul.mubr.msk.bf16.gmra.mrb[24].mxu0 %vm508_vm2, %v2195_v43  ;;  %v2924_v43 = vshll.u32 %v12151_v41, 16  ;;  %v2938_v41 = vshrl.u32 %v12163_v55, 16 }
 0x1b7   : > { %10078 = vmatprep.mubr.msk.bf16.mxu0 %vm508_vm2, %v2197_v18  ;;  %v2929_v18 = vshrl.u32 %v12154_v50, 16 }
 0x1b8   : > { %v2926_v46 = vrot.slane %v2924_v43, 3  ;;  %v2940_v33 = vrot.slane %v2938_v41, 2 }
 0x1b9   : > { %v2931_v48 = vrot.slane %v2929_v18, 2 }
 0x1bb   : > { %v2935_v58 = vor.u32 %v2934_v52, %v2931_v48 }
 0x1be   : > { %10079 = vmatmul.mubr.msk.bf16.gmra.mrb[28].mxu0 %vm508_vm2, %v2199_v30  ;;  %v11411_v30 = vld [vmem:[%s11628_s27 + $0xa0] ss:$0 sps:$4 sm:$0x33]  }
 0x1bf   : > { %10082 = vmatprep.mubr.msk.bf16.mxu0 %vm508_vm2, %v2201_v35  ;;  %v2923_v35 = vrot.slane %v2921_v63, 2 }
 0x1c1   : > { %v2927_v61 = vor.u32 %v2926_v46, %v2923_v35  ;;  %v3001_v35 = vshrl.u32 %v12212_v15, 16  ;;  %v3004_v46 = vshll.u32 %v12212_v15, 16 }
 0x1c6   : > { %10083 = vmatmul.mubr.msk.bf16.gmra.mrb[32].mxu0 %vm508_vm2, %v2203_v45  ;;  %v2641_v45 = vrot.slane %v11411_v30, 2 }
 0x1c7   : > { %10088 = vmatprep.mubr.msk.bf16.mxu0 %vm508_vm2, %v2608_v57  ;;  %v2941_v57 = vshll.u32 %v12163_v55, 16 }
 0x1c9   : > { %v2943_v12 = vrot.slane %v2941_v57, 3  ;;  %v3003_v57 = vrot.slane %v3001_v35, 2  ;;  %v3067_v35 = vshll.u32 %v12256_v14, 16 }
 0x1cb   : > { %v2944_v13 = vor.u32 %v2943_v12, %v2940_v33  ;;  %v3019_v33 = vshrl.u32 %v12224_v53, 16  ;;  %v3022_v12 = vshll.u32 %v12224_v53, 16 }
 0x1ce   : > { %10089 = vmatmul.mubr.msk.bf16.vlgmr.msra.gmra.mrb[0].mxu0 %vm508_vm2, %v2610_v62  ;;  %v2947_v62 = vshrl.u32 %v12167_v54, 16 }
 0x1cf   : > { %10125 = vmatpush3.bf16.msra.mxu0 %v3145_v3  ;;  %10092 = vmatprep.mubr.msk.bf16.mxu0 %vm508_vm2, %v2612_v8  ;;  %v2950_v3 = vshll.u32 %v12167_v54, 16  ;;  %v2642_v8 = vsel %vm15040_vm5, %v2639_v7, %v2641_v45  ;;  %v2979_v7 = vrot.slane %v2977_v11, 3 }
 0x1d0   : > { %11268 = vmatprep.subr.msk.bf16.mxu0 %vm15042_vm0, %v12186_v5 }
 0x1d1   : > { %v2952_v6 = vrot.slane %v2950_v3, 3  ;;  %v3013_v3 = vshll.u32 %v12220_v47, 16 }
 0x1d6   : > { %10093 = vmatmul.mubr.msk.bf16.gmra.mrb[4].mxu0 %vm508_vm2, %v2614_v16  ;;  %v2936_v16 = vsel %vm15039_vm6, %v2927_v61, %v2935_v58  ;;  %v3006_v61 = vrot.slane %v3004_v46, 3 }
 0x1d7   : > { %10096 = vmatprep.mubr.msk.bf16.mxu0 %vm508_vm2, %v2616_v19  ;;  %v2949_v19 = vrot.slane %v2947_v62, 2  ;;  %v3010_v62 = vshrl.u32 %v12220_v47, 16 }
 0x1d9   : > { %v2953_v44 = vor.u32 %v2952_v6, %v2949_v19  ;;  %v3012_v19 = vrot.slane %v3010_v62, 2  ;;  %v3015_v6 = vrot.slane %v3013_v3, 3 }
 0x1de   : > { %10097 = vmatmul.mubr.msk.bf16.gmra.mrb[8].mxu0 %vm508_vm2, %v2618_v22  ;;  %v2956_v22 = vshrl.u32 %v12175_v2, 16 }
 0x1df   : > { %10100 = vmatprep.mubr.msk.bf16.mxu0 %vm508_vm2, %v2620_v26  ;;  %v2959_v26 = vshll.u32 %v12175_v2, 16 }
 0x1e0   : > { %v2958_v56 = vrot.slane %v2956_v22, 2  ;;  %v3021_v22 = vrot.slane %v3019_v33, 2 }
 0x1e1   : > { %v2961_v29 = vrot.slane %v2959_v26, 3  ;;  %v3024_v26 = vrot.slane %v3022_v12, 3 }
 0x1e6   : > { %10101 = vmatmul.mubr.msk.bf16.gmra.mrb[12].mxu0 %vm508_vm2, %v2622_v31  ;;  %v2968_v31 = vshll.u32 %v12181_v10, 16 }
 0x1e7   : > { %10104 = vmatprep.mubr.msk.bf16.mxu0 %vm508_vm2, %v2624_v39  ;;  %v2945_v39 = vsel %vm15039_vm6, %v2935_v58, %v2944_v13 }
 0x1e8   : > { %v2970_v0 = vrot.slane %v2968_v31, 3  ;;  %v3031_v31 = vshll.u32 %v12232_v1, 16 }
 0x1ea   : > { %v2971_v38 = vor.u32 %v2970_v0, %v2967_v59  ;;  %v3033_v59 = vrot.slane %v3031_v31, 3 }
 0x1ee   : > { %10105 = vmatmul.mubr.msk.bf16.gmra.mrb[16].mxu0 %vm508_vm2, %v2626_v32  ;;  %v3459_v32 = vsel %vm15042_vm0, %v12186_v5, 0 }
 0x1ef   : > { %10108 = vmatprep.mubr.msk.bf16.mxu0 %vm508_vm2, %v2628_v34  ;;  %v2954_v34 = vsel %vm15039_vm6, %v2944_v13, %v2953_v44 }
 0x1f6   : > { %10109 = vmatmul.mubr.msk.bf16.gmra.mrb[20].mxu0 %vm508_vm2, %v2630_v49  ;;  %v2962_v49 = vor.u32 %v2961_v29, %v2958_v56  ;;  %v3037_v56 = vshrl.u32 %v12236_v36, 16  ;;  %v3040_v29 = vshll.u32 %v12236_v36, 16 }
 0x1f7   : > { %10112 = vmatprep.mubr.msk.bf16.mxu0 %vm508_vm2, %v2632_v37  ;;  %v2974_v37 = vshrl.u32 %v12196_v4, 16 }
 0x1f8   : > { %v2963_v5 = vsel %vm15039_vm6, %v2953_v44, %v2962_v49  ;;  %v2972_v63 = vsel %vm15039_vm6, %v2962_v49, %v2971_v38  ;;  %v3016_v44 = vor.u32 %v3015_v6, %v3012_v19  ;;  %v3039_v49 = vrot.slane %v3037_v56, 2  ;;  %v3360_v19 = vld [vmem:[%s11628_s27 + $0x10] sm:$0x8] }
 0x1f9   : > { %v2976_v21 = vrot.slane %v2974_v37, 2  ;;  %v3042_v37 = vrot.slane %v3040_v29, 3 }
 0x1fb   : > { %v2980_v25 = vor.u32 %v2979_v7, %v2976_v21  ;;  %v3058_v21 = vshll.u32 %v12248_v9, 16 }
 0x1fd   : > { %v2981_v48 = vsel %vm15039_vm6, %v2971_v38, %v2980_v25  ;;  %v3046_v38 = vshrl.u32 %v12244_v51, 16 }
 0x1fe   : > { %10113 = vmatmul.mubr.msk.bf16.gmra.mrb[24].mxu0 %vm508_vm2, %v2634_v42  ;;  %v2983_v42 = vshrl.u32 %v12200_v20, 16 }
 0x1ff   : > { %10116 = vmatprep.mubr.msk.bf16.mxu0 %vm508_vm2, %v2636_v60  ;;  %v2986_v60 = vshll.u32 %v12200_v20, 16 }
 0x200   : > { %v2985_v43 = vrot.slane %v2983_v42, 2  ;;  %v3049_v42 = vshll.u32 %v12244_v51, 16 }
 0x201   : > { %v2988_v18 = vrot.slane %v2986_v60, 3  ;;  %v3043_v60 = vor.u32 %v3042_v37, %v3039_v49 }
 0x203   : > { %v2989_v30 = vor.u32 %v2988_v18, %v2985_v43  ;;  %v3051_v43 = vrot.slane %v3049_v42, 3 }
 0x205   : > { %v2990_v41 = vsel %vm15039_vm6, %v2980_v25, %v2989_v30 }
 0x206   : > { %10117 = vmatmul.mubr.msk.bf16.gmra.mrb[28].mxu0 %vm508_vm2, %v2638_v27  ;;  %v2992_v27 = vshrl.u32 %v12208_v24, 16 }
 0x207   : > { %10120 = vmatprep.mubr.msk.bf16.mxu0 %vm508_vm2, %v2640_v28  ;;  %v2995_v28 = vshll.u32 %v12208_v24, 16 }
 0x208   : > { %v2994_v52 = vrot.slane %v2992_v27, 2  ;;  %v3060_v27 = vrot.slane %v3058_v21, 3 }
 0x209   : > { %v2997_v45 = vrot.slane %v2995_v28, 3 }
 0x20b   : > { %v2998_v58 = vor.u32 %v2997_v45, %v2994_v52  ;;  %v3076_v52 = vshll.u32 %v12259_v17, 16 }
 0x20d   : > { %v3078_v3 = vrot.slane %v3076_v52, 3  ;;  %v11418_v52 = vld [vmem:[%s15034_s3 + $0x60] sm:$0xff]  }
 0x20e   : > { %10121 = vmatmul.mubr.msk.bf16.gmra.mrb[32].mxu0 %vm508_vm2, %v2642_v8  ;;  %v3007_v8 = vor.u32 %v3006_v61, %v3003_v57  ;;  %v3069_v57 = vrot.slane %v3067_v35, 3  ;;  %v12339_v61 = vld [vmem:[%s11628_s27 + $0xa0] ss:$0 sps:$4 sm:$0x77]   ;;  %v11417_v35 = vld [vmem:[%s15034_s3 + $0x58] sm:$0xff]  }
 0x20f   : > { %10126 = vmatprep.mubr.msk.bf16.mxu0 %vm508_vm2, %v2936_v16  ;;  %v2999_v16 = vsel %vm15039_vm6, %v2989_v30, %v2998_v58  ;;  %v3064_v30 = vshrl.u32 %v12256_v14, 16  ;;  %v3082_v33 = vshrl.u32 %v12339_v61, 16  ;;  %v3085_v12 = vshll.u32 %v12339_v61, 16 }
 0x210   : > { %v3008_v13 = vsel %vm15039_vm6, %v2998_v58, %v3007_v8 }
 0x216   : > { %10127 = vmatmul.mubr.msk.bf16.vlgmr.msra.gmra.mrb[0].mxu0 %vm508_vm2, %v2945_v39  ;;  %v3025_v39 = vor.u32 %v3024_v26, %v3021_v22  ;;  %v3087_v22 = vrot.slane %v3085_v12, 3  ;;  %v11420_v12 = vld [vmem:[%s15034_s3 + $0x70] sm:$0xff]  }
 0x217   : > { %10163 = vmatpush3.bf16.msra.mxu0 %v3459_v32  ;;  %10130 = vmatprep.mubr.msk.bf16.mxu0 %vm508_vm2, %v2954_v34  ;;  %v3017_v32 = vsel %vm15039_vm6, %v3007_v8, %v3016_v44  ;;  %v3030_v34 = vrot.slane %v3028_v23, 2 }
 0x218   : > { %v3026_v0 = vsel %vm15039_vm6, %v3016_v44, %v3025_v39  ;;  %v9096_v44 = vcombine.low %v3360_v19, %v12146_v40  ;;  %v3372_v40 = vrot.slane %v12167_v54, 3  ;;  %v3380_v54 = vrot.slane %v12200_v20, 3 }
 0x219   : > { %v3034_v11 = vor.u32 %v3033_v59, %v3030_v34  ;;  %v3388_v20 = vrot.slane %v12224_v53, 3  ;;  %v3396_v53 = vrot.slane %v12248_v9, 3 }
 0x21a   : > { %v3367_v31 = vrot.slane %v9096_v44, 3 }
 0x21b   : > { %v3035_v7 = vsel %vm15039_vm6, %v3025_v39, %v3034_v11  ;;  %v3044_v18 = vsel %vm15039_vm6, %v3034_v11, %v3043_v60  ;;  %v3368_v39 = vrot.slane %v12154_v50, 3  ;;  %v3374_v50 = vrot.slane %v12175_v2, 3 }
 0x21c   : > { %v3382_v2 = vrot.slane %v12208_v24, 3  ;;  %v3390_v24 = vrot.slane %v12232_v1, 3  ;;  %v3398_v1 = vrot.slane %v12256_v14, 3  ;;  %v11414_v14 = vld [vmem:[%s15034_s3 + $0x40] sm:$0xff]  }
 0x21d   : > { %v3369_v29 = vsel %vm15037_vm7, %v3367_v31, %v3368_v39  ;;  %v3375_v49 = vsel %vm15037_vm7, %v3372_v40, %v3374_v50  ;;  %10200 = vmatprep.subr.bf16.mxu0 %v11414_v14  ;;  %10668 = vmatprep.subr.bf16.mxu1 %v11414_v14  ;;  %v11421_v31 = vld [vmem:[%s15034_s3 + $0x78] sm:$0xff]  }
 0x21e   : > { %10131 = vmatmul.mubr.msk.bf16.gmra.mrb[4].mxu0 %vm508_vm2, %v2963_v5  ;;  %v3055_v5 = vshrl.u32 %v12248_v9, 16  ;;  %v3383_v42 = vsel %vm15037_vm7, %v3380_v54, %v3382_v2  ;;  %10676 = vmatpush3.bf16.msra.mxu1 %v11414_v14 }
 0x21f   : > { %10134 = vmatprep.mubr.msk.bf16.mxu0 %vm508_vm2, %v2972_v63  ;;  %v3048_v63 = vrot.slane %v3046_v38, 2 }
 0x220   : > { %v3057_v25 = vrot.slane %v3055_v5, 2 }
 0x221   : > { %v3052_v28 = vor.u32 %v3051_v43, %v3048_v63 }
 0x222   : > { %v3061_v46 = vor.u32 %v3060_v27, %v3057_v25  ;;  %v3399_v25 = vsel %vm15037_vm7, %v3396_v53, %v3398_v1 }
 0x223   : > { %v3053_v45 = vsel %vm15039_vm6, %v3043_v60, %v3052_v28 }
 0x224   : > { %v3062_v58 = vsel %vm15039_vm6, %v3052_v28, %v3061_v46  ;;  %v11574_v28 = vmov 0  }
 0x225   : > { %4440 = vst [vmem:[#allocation2 + $0x8] sm:$0xf] %v11574_v28  ;;  %4438 = vst [vmem:[#allocation2] sm:$0xf] %v11574_v28 }
 0x226   : > { %10135 = vmatmul.mubr.msk.bf16.gmra.mrb[8].mxu0 %vm508_vm2, %v2981_v48  ;;  %v3073_v48 = vshrl.u32 %v12259_v17, 16  ;;  %4439 = vst [vmem:[#allocation2 + $0x4] sm:$0xf] %v11574_v28  ;;  %4441 = vst [vmem:[#allocation2 + $0xc] sm:$0xf] %v11574_v28 }
 0x227   : > { %10138 = vmatprep.mubr.msk.bf16.mxu0 %vm508_vm2, %v2990_v41  ;;  %v3066_v41 = vrot.slane %v3064_v30, 2  ;;  %4442 = vst [vmem:[#allocation2 + $0x10] sm:$0xf] %v11574_v28  ;;  %4443 = vst [vmem:[#allocation2 + $0x14] sm:$0xf] %v11574_v28  ;;  %v11416_v30 = vld [vmem:[%s15034_s3 + $0x50] sm:$0xff]  }
 0x228   : > { %v3075_v62 = vrot.slane %v3073_v48, 2  ;;  %4444 = vst [vmem:[#allocation2 + $0x18] sm:$0xf] %v11574_v28  ;;  %4445 = vst [vmem:[#allocation2 + $0x1c] sm:$0xf] %v11574_v28 }
 0x229   : > { %v3070_v8 = vor.u32 %v3069_v57, %v3066_v41  ;;  %4446 = vst [vmem:[#allocation2 + $0x20] sm:$0xf] %v11574_v28  ;;  %4447 = vst [vmem:[#allocation2 + $0x24] sm:$0xf] %v11574_v28  ;;  %v11419_v41 = vld [vmem:[%s15034_s3 + $0x68] sm:$0xff]  }
 0x22a   : > { %4448 = vst [vmem:[#allocation2 + $0x28] sm:$0xf] %v11574_v28  ;;  %4449 = vst [vmem:[#allocation2 + $0x2c] sm:$0xf] %v11574_v28 }
 0x22b   : > { %v3071_v6 = vsel %vm15039_vm6, %v3061_v46, %v3070_v8  ;;  %4450 = vst [vmem:[#allocation2 + $0x30] sm:$0xf] %v11574_v28  ;;  %4451 = vst [vmem:[#allocation2 + $0x34] sm:$0xf] %v11574_v28  ;;  %v3753_v46 = vlaneseq }
 0x22c   : > { %4452 = vst [vmem:[#allocation2 + $0x38] sm:$0xf] %v11574_v28  ;;  %4453 = vst [vmem:[#allocation2 + $0x3c] sm:$0xf] %v11574_v28 }
 0x22d   : > { %4454 = vst [vmem:[#allocation2 + $0x40] sm:$0xf] %v11574_v28  ;;  %4455 = vst [vmem:[#allocation2 + $0x44] sm:$0xf] %v11574_v28  ;;  %v12420_v48 = vshrl.u32 %v3753_v46, 7 }
 0x22e   : > { %10139 = vmatmul.mubr.msk.bf16.gmra.mrb[12].mxu0 %vm508_vm2, %v2999_v16  ;;  %v3079_v16 = vor.u32 %v3078_v3, %v3075_v62  ;;  %4456 = vst [vmem:[#allocation2 + $0x48] sm:$0xf] %v11574_v28  ;;  %4457 = vst [vmem:[#allocation2 + $0x4c] sm:$0xf] %v11574_v28 }
 0x22f   : > { %10142 = vmatprep.mubr.msk.bf16.mxu0 %vm508_vm2, %v3008_v13  ;;  %v3084_v13 = vrot.slane %v3082_v33, 2  ;;  %4458 = vst [vmem:[#allocation2 + $0x50] sm:$0xf] %v11574_v28  ;;  %4459 = vst [vmem:[#allocation2 + $0x54] sm:$0xf] %v11574_v28  ;;  %v3757_v57 = vadd.s32 24, %v12420_v48 }
 0x230   : > { %v3080_v26 = vsel %vm15039_vm6, %v3070_v8, %v3079_v16  ;;  %4460 = vst [vmem:[#allocation2 + $0x58] sm:$0xf] %v11574_v28  ;;  %4461 = vst [vmem:[#allocation2 + $0x5c] sm:$0xf] %v11574_v28  ;;  %v3755_v62 = vadd.s32 8, %v12420_v48  ;;  %v3760_v33 = vadd.s32 48, %v12420_v48 }
 0x231   : > { %v3088_v23 = vor.u32 %v3087_v22, %v3084_v13  ;;  %4462 = vst [vmem:[#allocation2 + $0x60] sm:$0xf] %v11574_v28  ;;  %4463 = vst [vmem:[#allocation2 + $0x64] sm:$0xf] %v11574_v28  ;;  %v12435_v3 = vmul.u32.u64.low 3817748708, %v12420_v48  ;;  %v12436_v8 = vmul.u32.u64.high 3817748708, %v12420_v48, %v12435_v3 }
 0x232   : > { %4464 = vst [vmem:[#allocation2 + $0x68] sm:$0xf] %v11574_v28  ;;  %4465 = vst [vmem:[#allocation2 + $0x6c] sm:$0xf] %v11574_v28  ;;  %v3758_v22 = vadd.s32 32, %v12420_v48 }
 0x233   : > { %v3089_v56 = vsel %vm15039_vm6, %v3079_v16, %v3088_v23  ;;  %4466 = vst [vmem:[#allocation2 + $0x70] sm:$0xf] %v11574_v28  ;;  %4467 = vst [vmem:[#allocation2 + $0x74] sm:$0xf] %v11574_v28  ;;  %v12442_v16 = vmul.u32.u64.low 3817748708, %v3757_v57  ;;  %v12443_v19 = vmul.u32.u64.high 3817748708, %v3757_v57, %v12442_v16 }
 0x234   : > { %4468 = vst [vmem:[#allocation2 + $0x78] sm:$0xf] %v11574_v28  ;;  %4469 = vst [vmem:[#allocation2 + $0x7c] sm:$0xf] %v11574_v28  ;;  %v3761_v23 = vadd.s32 56, %v12420_v48  ;;  %v12561_v16 = vadd.s32 120, %v12420_v48 }
 0x235   : > { %4470 = vst [vmem:[#allocation2 + $0x80] sm:$0xf] %v11574_v28  ;;  %4471 = vst [vmem:[#allocation2 + $0x84] sm:$0xf] %v11574_v28 }
 0x236   : > { %10143 = vmatmul.mubr.msk.bf16.gmra.mrb[16].mxu0 %vm508_vm2, %v3017_v32  ;;  %v3370_v32 = vrot.slane %v12163_v55, 3  ;;  %v3378_v55 = vrot.slane %v12196_v4, 3  ;;  %v3386_v4 = vrot.slane %v12220_v47, 3  ;;  %v3394_v47 = vrot.slane %v12244_v51, 3  ;;  %4472 = vst [vmem:[#allocation2 + $0x88] sm:$0xf] %v11574_v28 }
 0x237   : > { %10146 = vmatprep.mubr.msk.bf16.mxu0 %vm508_vm2, %v3026_v0  ;;  %v3376_v0 = vrot.slane %v12181_v10, 3  ;;  %v3384_v10 = vrot.slane %v12212_v15, 3  ;;  %v3392_v15 = vrot.slane %v12236_v36, 3  ;;  %v3400_v36 = vrot.slane %v12259_v17, 3  ;;  %v11415_v17 = vld [vmem:[%s15034_s3 + $0x48] sm:$0xff]  }
 0x238   : > { %v3371_v34 = vsel %vm15037_vm7, %v3368_v39, %v3370_v32  ;;  %v3373_v59 = vsel %vm15037_vm7, %v3370_v32, %v3372_v40  ;;  %v3381_v38 = vsel %vm15037_vm7, %v3378_v55, %v3380_v54  ;;  %v3389_v21 = vsel %vm15037_vm7, %v3386_v4, %v3388_v20  ;;  %10669 = vmatprep.subr.bf16.mxu1 %v11415_v17 }
 0x239   : > { %v3377_v37 = vsel %vm15037_vm7, %v3374_v50, %v3376_v0  ;;  %v3379_v11 = vsel %vm15037_vm7, %v3376_v0, %v3378_v55  ;;  %v3385_v60 = vsel %vm15037_vm7, %v3382_v2, %v3384_v10  ;;  %v3387_v5 = vsel %vm15037_vm7, %v3384_v10, %v3386_v4  ;;  %4473 = vst [vmem:[#allocation2 + $0x8c] sm:$0xf] %v11574_v28 }
 0x23a   : > { %v3393_v63 = vsel %vm15037_vm7, %v3390_v24, %v3392_v15  ;;  %v3395_v43 = vsel %vm15037_vm7, %v3392_v15, %v3394_v47  ;;  %v3401_v27 = vsel %vm15037_vm7, %v3398_v1, %v3400_v36  ;;  %v3402_v51 = vrot.slane %v12339_v61, 3  ;;  %4474 = vst [vmem:[#allocation2 + $0x90] sm:$0xf] %v11574_v28  ;;  %4475 = vst [vmem:[#allocation2 + $0x94] sm:$0xf] %v11574_v28 }
 0x23b   : > { %4476 = vst [vmem:[#allocation2 + $0x98] sm:$0xf] %v11574_v28  ;;  %4477 = vst [vmem:[#allocation2 + $0x9c] sm:$0xf] %v11574_v28  ;;  %10677 = vmatpush3.bf16.msra.mxu1 %v11415_v17  ;;  %v3759_v39 = vadd.s32 40, %v12420_v48  ;;  %v3829_v50 = vshrl.u32 %v12443_v19, 4 }
 0x23c   : > { %v3403_v9 = vsel %vm15037_vm7, %v3400_v36, %v3402_v51  ;;  %4478 = vst [vmem:[#allocation2 + $0xa0] sm:$0x7] %v11574_v28  ;;  %10670 = vmatprep.subr.bf16.mxu1 %v11416_v30  ;;  %v12459_v32 = vmul.u32.u64.low 3817748708, %v3758_v22  ;;  %v12460_v40 = vmul.u32.u64.high 3817748708, %v3758_v22, %v12459_v32  ;;  %v12503_v36 = vadd.s32 88, %v12420_v48 }
 0x23d   : > { %v3830_v2 = vmul.u32 18, %v3829_v50  ;;  %v12522_v28 = vadd.s32 112, %v12420_v48 }
 0x23e   : > { %10147 = vmatmul.mubr.msk.bf16.gmra.mrb[20].mxu0 %vm508_vm2, %v3035_v7  ;;  %v3391_v7 = vsel %vm15037_vm7, %v3388_v20, %v3390_v24  ;;  %v3840_v20 = vshrl.u32 %v12460_v40, 4  ;;  %v12616_v32 = vmul.u32.u64.low 3817748708, %v12561_v16  ;;  %v12617_v40 = vmul.u32.u64.high 3817748708, %v12561_v16, %v12616_v32 }
 0x23f   : > { %10150 = vmatprep.mubr.msk.bf16.mxu0 %vm508_vm2, %v3044_v18  ;;  %v3397_v18 = vsel %vm15037_vm7, %v3394_v47, %v3396_v53  ;;  %10678 = vmatpush3.bf16.msra.mxu1 %v11416_v30 }
 0x240   : > { %10671 = vmatprep.subr.bf16.mxu1 %v11417_v35  ;;  %v3841_v1 = vmul.u32 18, %v3840_v20  ;;  %v15167_v20 = vmov 0 }
 0x243   : > { %10679 = vmatpush3.bf16.msra.mxu1 %v11417_v35 }
 0x244   : > { %10672 = vmatprep.subr.bf16.mxu1 %v11418_v52 }
 0x246   : > { %10151 = vmatmul.mubr.msk.bf16.gmra.mrb[24].mxu0 %vm508_vm2, %v3053_v45  ;;  %v3756_v45 = vadd.s32 16, %v12420_v48 }
 0x247   : > { %10154 = vmatprep.mubr.msk.bf16.mxu0 %vm508_vm2, %v3062_v58  ;;  %10680 = vmatpush3.bf16.msra.mxu1 %v11418_v52 }
 0x248   : > { %10673 = vmatprep.subr.bf16.mxu1 %v11419_v41  ;;  %v12430_v61 = vmul.u32.u64.low 3817748708, %v3756_v45  ;;  %v12431_v58 = vmul.u32.u64.high 3817748708, %v3756_v45, %v12430_v61 }
 0x24b   : > { %10681 = vmatpush3.bf16.msra.mxu1 %v11419_v41 }
 0x24c   : > { %10674 = vmatprep.subr.bf16.mxu1 %v11420_v12 }
 0x24e   : > { %10155 = vmatmul.mubr.msk.bf16.gmra.mrb[28].mxu0 %vm508_vm2, %v3071_v6  ;;  %v12445_v6 = vmul.u32.u64.low 3817748708, %v3755_v62  ;;  %v12446_v13 = vmul.u32.u64.high 3817748708, %v3755_v62, %v12445_v6 }
 0x24f   : > { %10158 = vmatprep.mubr.msk.bf16.mxu0 %vm508_vm2, %v3080_v26  ;;  %10682 = vmatpush3.bf16.msra.mxu1 %v11420_v12  ;;  %v12449_v26 = vmul.u32.u64.low 3817748708, %v3760_v33  ;;  %v12450_v44 = vmul.u32.u64.high 3817748708, %v3760_v33, %v12449_v26 }
 0x250   : > { %10675 = vmatprep.subr.bf16.mxu1 %v11421_v31  ;;  %v3807_v55 = vshrl.u32 %v12446_v13, 4  ;;  %v12577_v13 = vadd.s32 104, %v12420_v48 }
 0x253   : > { %10683 = vmatpush3.bf16.msra.mxu1 %v11421_v31 }
 0x256   : > { %10159 = vmatmul.mubr.msk.bf16.gmra.mrb[32].mxu0 %vm508_vm2, %v3089_v56  ;;  %v3818_v56 = vshrl.u32 %v12431_v58, 4 }
 0x257   : > { %10164 = vmatprep.mubr.msk.bf16.mxu0 %vm508_vm2, %v3369_v29  ;;  %v3796_v29 = vshrl.u32 %v12436_v8, 4 }
 0x259   : > { %v3797_v54 = vmul.u32 18, %v3796_v29 }
 0x25b   : > { %v12480_v4 = vsub.s32 %v12420_v48, %v3797_v54 }
 0x25d   : > { %vm4186_vm10 = vcmp.ne.s32.totalorder %v12480_v4, 0  ;;  %vm4222_vm11 = vcmp.lt.s32.totalorder %v12480_v4, 0  ;;  %v12510_v51 = vadd.s32 18, %v12480_v4 }
 0x25e   : > { %10165 = vmatmul.mubr.msk.bf16.vlgmr.msra.gmra.mrb[0].mxu0 %vm508_vm2, %v3371_v34  ;;  %vm12567_vm3 = vmand %vm4222_vm11, %vm4186_vm10 }
 0x25f   : > { %10168 = vmatprep.mubr.msk.bf16.mxu0 %vm508_vm2, %v3373_v59  ;;  %10201 = vmatpush3.bf16.msra.mxu0 %v11414_v14  ;;  %v12462_v34 = vmul.u32.u64.low 3817748708, %v3761_v23  ;;  %v12463_v59 = vmul.u32.u64.high 3817748708, %v3761_v23, %v12462_v34  ;;  %v12514_v14 = vadd.s32 72, %v12420_v48 }
 0x260   : > { %10202 = vmatprep.subr.bf16.mxu0 %v11415_v17  ;;  %v15157_v34 = vmov 0 }
 0x261   : > { %v12541_v61 = vmul.u32.u64.low 3817748708, %v12514_v14  ;;  %v12542_v58 = vmul.u32.u64.high 3817748708, %v12514_v14, %v12541_v61 }
 0x263   : > { %10203 = vmatpush3.bf16.msra.mxu0 %v11415_v17 }
 0x264   : > { %10204 = vmatprep.subr.bf16.mxu0 %v11416_v30 }
 0x266   : > { %10169 = vmatmul.mubr.msk.bf16.gmra.mrb[4].mxu0 %vm508_vm2, %v3375_v49  ;;  %v12466_v0 = vmul.u32.u64.low 3817748708, %v3759_v39  ;;  %v12467_v49 = vmul.u32.u64.high 3817748708, %v3759_v39, %v12466_v0 }
 0x267   : > { %10172 = vmatprep.mubr.msk.bf16.mxu0 %vm508_vm2, %v3377_v37  ;;  %10205 = vmatpush3.bf16.msra.mxu0 %v11416_v30  ;;  %v3819_v37 = vmul.u32 18, %v3818_v56  ;;  %v12525_v30 = vsub.s32 %v3758_v22, %v3841_v1  ;;  %v15155_v56 = vmov 0  ;;  %v15286_v22 = vmov 0 }
 0x268   : > { %10206 = vmatprep.subr.bf16.mxu0 %v11417_v35 }
 0x269   : > { %v12474_v10 = vsub.s32 %v3756_v45, %v3819_v37  ;;  %15144 = vst [vmem:[#allocation3_spill] sm:$0xff] %v12525_v30  ;;  %vm4226_vm10 = vcmp.lt.s32.totalorder %v12525_v30, 0 }
 0x26b   : > { %10207 = vmatpush3.bf16.msra.mxu0 %v11417_v35  ;;  %vm4188_vm8 = vcmp.ne.s32.totalorder %v12474_v10, 0  ;;  %vm4224_vm9 = vcmp.lt.s32.totalorder %v12474_v10, 0  ;;  %v12528_v35 = vmul.u32.u64.low 3817748708, %v12503_v36  ;;  %v12529_v46 = vmul.u32.u64.high 3817748708, %v12503_v36, %v12528_v35 }
 0x26c   : > { %10208 = vmatprep.subr.bf16.mxu0 %v11418_v52  ;;  %vm12551_vm7 = vmand %vm4224_vm9, %vm4188_vm8  ;;  %vm4190_vm9 = vcmp.ne.s32.totalorder %v12525_v30, 0  ;;  %v5033_v35 = vld [vmem:[#allocation2 + $0x4] sm:$0xf] }
 0x26d   : > { %v3917_v50 = vshrl.u32 %v12529_v46, 4  ;;  %v12702_v46 = vadd.s32 152, %v12420_v48 }
 0x26e   : > { %10173 = vmatmul.mubr.msk.bf16.gmra.mrb[8].mxu0 %vm508_vm2, %v3379_v11  ;;  %v3862_v11 = vshrl.u32 %v12450_v44, 4 }
 0x26f   : > { %10176 = vmatprep.mubr.msk.bf16.mxu0 %vm508_vm2, %v3381_v38  ;;  %10209 = vmatpush3.bf16.msra.mxu0 %v11418_v52  ;;  %v12472_v38 = vadd.s32 80, %v12420_v48 }
 0x270   : > { %10210 = vmatprep.subr.bf16.mxu0 %v11419_v41 }
 0x271   : > { %v12485_v24 = vmul.u32.u64.low 3817748708, %v12472_v38  ;;  %v12486_v15 = vmul.u32.u64.high 3817748708, %v12472_v38, %v12485_v24 }
 0x273   : > { %10211 = vmatpush3.bf16.msra.mxu0 %v11419_v41  ;;  %v3906_v41 = vshrl.u32 %v12486_v15, 4 }
 0x274   : > { %10212 = vmatprep.subr.bf16.mxu0 %v11420_v12 }
 0x275   : > { %v3907_v26 = vmul.u32 18, %v3906_v41 }
 0x276   : > { %10177 = vmatmul.mubr.msk.bf16.gmra.mrb[12].mxu0 %vm508_vm2, %v3383_v42  ;;  %v3808_v42 = vmul.u32 18, %v3807_v55  ;;  %v15161_v55 = vmov 0 }
 0x277   : > { %10180 = vmatprep.mubr.msk.bf16.mxu0 %vm508_vm2, %v3385_v60  ;;  %10213 = vmatpush3.bf16.msra.mxu0 %v11420_v12  ;;  %v12477_v60 = vadd.s32 64, %v12420_v48 }
 0x278   : > { %10214 = vmatprep.subr.bf16.mxu0 %v11421_v31  ;;  %v12492_v47 = vsub.s32 %v3755_v62, %v3808_v42  ;;  %v12545_v62 = vadd.s32 96, %v12420_v48 }
 0x27a   : > { %vm4187_vm14 = vcmp.ne.s32.totalorder %v12492_v47, 0  ;;  %vm4223_vm15 = vcmp.lt.s32.totalorder %v12492_v47, 0  ;;  %v12532_v52 = vadd.s32 18, %v12492_v47 }
 0x27b   : > { %10215 = vmatpush3.bf16.msra.mxu0 %v11421_v31  ;;  %vm12594_vm4 = vmand %vm4223_vm15, %vm4187_vm14 }
 0x27c   : > { %vm12621_vm15 = vmand %vm4226_vm10, %vm4190_vm9 }
 0x27d   : > { %v15158_v34 = vsel %vm12621_vm15, 4294967295, %v15157_v34 }
 0x27e   : > { %10181 = vmatmul.mubr.msk.bf16.gmra.mrb[16].mxu0 %vm508_vm2, %v3387_v5  ;;  %v3863_v5 = vmul.u32 18, %v3862_v11  ;;  %15159 = vst [vmem:[#allocation6_spill] sm:$0xff] %v15158_v34 }
 0x27f   : > { %10184 = vmatprep.mubr.msk.bf16.mxu0 %vm508_vm2, %v3389_v21  ;;  %v3873_v21 = vshrl.u32 %v12463_v59, 4  ;;  %v12626_v59 = vadd.s32 18, %v12525_v30 }
 0x281   : > { %15160 = vst [vmem:[#allocation7_spill] sm:$0xff] %v12626_v59 }
 0x286   : > { %10185 = vmatmul.mubr.msk.bf16.gmra.mrb[20].mxu0 %vm508_vm2, %v3391_v7  ;;  %v12488_v7 = vsub.s32 %v3757_v57, %v3830_v2  ;;  %v12652_v2 = vsub.s32 %v12472_v38, %v3907_v26 }
 0x287   : > { %10188 = vmatprep.mubr.msk.bf16.mxu0 %vm508_vm2, %v3393_v63  ;;  %v3851_v63 = vshrl.u32 %v12467_v49, 4  ;;  %v12630_v0 = vmul.u32.u64.low 3817748708, %v12577_v13  ;;  %v12631_v49 = vmul.u32.u64.high 3817748708, %v12577_v13, %v12630_v0 }
 0x288   : > { %vm4189_vm12 = vcmp.ne.s32.totalorder %v12488_v7, 0  ;;  %vm4225_vm13 = vcmp.lt.s32.totalorder %v12488_v7, 0  ;;  %v12518_v17 = vadd.s32 18, %v12488_v7  ;;  %15166 = vst [vmem:[#allocation11_spill] sm:$0xff] %v12652_v2  ;;  %vm4232_vm9 = vcmp.lt.s32.totalorder %v12652_v2, 0 }
 0x289   : > { %vm12583_vm6 = vmand %vm4225_vm13, %vm4189_vm12  ;;  %v12706_v41 = vadd.s32 18, %v12652_v2  ;;  %v12732_v0 = vadd.s32 176, %v12420_v48 }
 0x28b   : > { %15171 = vst [vmem:[#allocation14_spill] sm:$0xff] %v12706_v41 }
 0x28e   : > { %10189 = vmatmul.mubr.msk.bf16.gmra.mrb[24].mxu0 %vm508_vm2, %v3395_v43  ;;  %v12495_v53 = vmul.u32.u64.low 3817748708, %v12477_v60  ;;  %v12496_v43 = vmul.u32.u64.high 3817748708, %v12477_v60, %v12495_v53 }
 0x28f   : > { %10192 = vmatprep.mubr.msk.bf16.mxu0 %vm508_vm2, %v3397_v18  ;;  %v12500_v18 = vadd.s32 18, %v12474_v10 }
 0x290   : > { %v3884_v8 = vshrl.u32 %v12496_v43, 4 }
 0x292   : > { %v3885_v29 = vmul.u32 18, %v3884_v8 }
 0x296   : > { %10193 = vmatmul.mubr.msk.bf16.gmra.mrb[28].mxu0 %vm508_vm2, %v3399_v25  ;;  %v12507_v25 = vsub.s32 %v3760_v33, %v3863_v5  ;;  %v12557_v33 = vmul.u32.u64.low 3817748708, %v12522_v28  ;;  %v12558_v12 = vmul.u32.u64.high 3817748708, %v12522_v28, %v12557_v33  ;;  %v3895_v5 = vshrl.u32 %v12542_v58, 4 }
 0x297   : > { %10196 = vmatprep.mubr.msk.bf16.mxu0 %vm508_vm2, %v3401_v27  ;;  %v3874_v27 = vmul.u32 18, %v3873_v21  ;;  %v3961_v33 = vshrl.u32 %v12617_v40, 4 }
 0x298   : > { %vm4228_vm8 = vcmp.lt.s32.totalorder %v12507_v25, 0  ;;  %v12573_v6 = vadd.s32 18, %v12507_v25  ;;  %v3950_v53 = vshrl.u32 %v12558_v12, 4  ;;  %v3896_v61 = vmul.u32 18, %v3895_v5 }
 0x299   : > { %v12535_v45 = vsub.s32 %v3761_v23, %v3874_v27  ;;  %v12600_v23 = vmul.u32.u64.low 3817748708, %v12545_v62  ;;  %v12601_v31 = vmul.u32.u64.high 3817748708, %v12545_v62, %v12600_v23  ;;  %v3918_v27 = vmul.u32 18, %v3917_v50 }
 0x29a   : > { %v3951_v8 = vmul.u32 18, %v3950_v53  ;;  %v12712_v12 = vadd.s32 136, %v12420_v48  ;;  %v3939_v23 = vshrl.u32 %v12631_v49, 4  ;;  %v15173_v50 = vmov 0  ;;  %v5032_v53 = vld [vmem:[#allocation2] sm:$0xf] }
 0x29b   : > { %15145 = vst [vmem:[#allocation4_spill] sm:$0xff] %v12535_v45  ;;  %vm4193_vm11 = vcmp.ne.s32.totalorder %v12535_v45, 0  ;;  %vm4229_vm5 = vcmp.lt.s32.totalorder %v12535_v45, 0  ;;  %v12646_v54 = vadd.s32 18, %v12535_v45  ;;  %v3928_v58 = vshrl.u32 %v12601_v31, 4 }
 0x29c   : > { %v12715_v26 = vsub.s32 %v12503_v36, %v3918_v27  ;;  %v12728_v31 = vmul.u32.u64.low 3817748708, %v12702_v46  ;;  %v12729_v40 = vmul.u32.u64.high 3817748708, %v12702_v46, %v12728_v31  ;;  %v12738_v49 = vsub.s32 %v12514_v14, %v3896_v61  ;;  %v11426_v27 = vld [vmem:[%s15034_s3] sm:$0xff]  }
 0x29d   : > { %15164 = vst [vmem:[#allocation9_spill] sm:$0xff] %v12646_v54  ;;  %v3929_v5 = vmul.u32 18, %v3928_v58  ;;  %v3962_v31 = vmul.u32 18, %v3961_v33  ;;  %v12757_v61 = vadd.s32 160, %v12420_v48  ;;  %10252 = vmatprep.subr.bf16.mxu1 %v11426_v27 }
 0x29e   : > { %10197 = vmatmul.mubr.msk.bf16.gmra.mrb[32].mxu0 %vm508_vm2, %v3403_v9  ;;  %v3852_v9 = vmul.u32 18, %v3851_v63  ;;  %vm4192_vm2 = vcmp.ne.s32.totalorder %v12507_v25, 0  ;;  %v12678_v63 = vsub.s32 %v12477_v60, %v3885_v29  ;;  %15172 = vst [vmem:[#allocation15_spill] sm:$0xff] %v12715_v26  ;;  %15177 = vst [vmem:[#allocation18_spill] sm:$0xff] %v12738_v49  ;;  %v12775_v27 = vadd.s32 18, %v12738_v49 }
 0x29f   : > { %vm12610_vm13 = vmand %vm4228_vm8, %vm4192_vm2  ;;  %vm4196_vm8 = vcmp.ne.s32.totalorder %v12652_v2, 0  ;;  %v12748_v60 = vmul.u32.u64.low 3817748708, %v12712_v12  ;;  %v12749_v1 = vmul.u32.u64.high 3817748708, %v12712_v12, %v12748_v60  ;;  %v12779_v14 = vsub.s32 %v12561_v16, %v3962_v31 }
 0x2a0   : > { %v12538_v57 = vsub.s32 %v3759_v39, %v3852_v9  ;;  %v12604_v39 = vadd.s32 144, %v12420_v48  ;;  %v15156_v56 = vsel %vm12610_vm13, 4294967295, %v15155_v56  ;;  %vm12641_vm2 = vmand %vm4229_vm5, %vm4193_vm11  ;;  %15170 = vst [vmem:[#allocation13_spill] sm:$0xff] %v12678_v63  ;;  %v12690_v9 = vadd.s32 128, %v12420_v48 }
 0x2a1   : > { %v15162_v55 = vsel %vm12641_vm2, 4294967295, %v15161_v55  ;;  %vm4194_vm10 = vcmp.ne.s32.totalorder %v12678_v63, 0  ;;  %vm12722_vm11 = vmand %vm4232_vm9, %vm4196_vm8  ;;  %v12735_v36 = vadd.s32 18, %v12678_v63  ;;  %vm4233_vm8 = vcmp.lt.s32.totalorder %v12715_v26, 0  ;;  %15182 = vst [vmem:[#allocation23_spill] sm:$0xff] %v12775_v27 }
 0x2a2   : > { %15146 = vst [vmem:[#allocation5_spill] sm:$0xff] %v12538_v57  ;;  %vm4191_vm12 = vcmp.ne.s32.totalorder %v12538_v57, 0  ;;  %vm4227_vm14 = vcmp.lt.s32.totalorder %v12538_v57, 0  ;;  %15163 = vst [vmem:[#allocation8_spill] sm:$0xff] %v15162_v55  ;;  %v12649_v11 = vadd.s32 18, %v12538_v57  ;;  %v15174_v50 = vsel %vm12722_vm11, 4294967295, %v15173_v50 }
 0x2a3   : > { %vm12660_vm5 = vmand %vm4227_vm14, %vm4191_vm12  ;;  %v12666_v21 = vmul.u32.u64.low 3817748708, %v12604_v39  ;;  %v12667_v24 = vmul.u32.u64.high 3817748708, %v12604_v39, %v12666_v21  ;;  %v12719_v29 = vmul.u32.u64.low 3817748708, %v12690_v9  ;;  %v12720_v32 = vmul.u32.u64.high 3817748708, %v12690_v9, %v12719_v29  ;;  %15175 = vst [vmem:[#allocation16_spill] sm:$0xff] %v15174_v50 }
 0x2a4   : > { %15165 = vst [vmem:[#allocation10_spill] sm:$0xff] %v12649_v11  ;;  %v15168_v20 = vsel %vm12660_vm5, 4294967295, %v15167_v20  ;;  %vm4230_vm12 = vcmp.lt.s32.totalorder %v12678_v63, 0  ;;  %15176 = vst [vmem:[#allocation17_spill] sm:$0xff] %v12735_v36  ;;  %v12745_v29 = vsub.s32 %v12522_v28, %v3951_v8  ;;  %vm4197_vm14 = vcmp.ne.s32.totalorder %v12715_v26, 0 }
 0x2a5   : > { %15169 = vst [vmem:[#allocation12_spill] sm:$0xff] %v15168_v20  ;;  %v3994_v21 = vshrl.u32 %v12667_v24, 4  ;;  %v3940_v24 = vmul.u32 18, %v3939_v23  ;;  %v12761_v28 = vadd.s32 18, %v12715_v26  ;;  %v12769_v8 = vsub.s32 %v12545_v62, %v3929_v5  ;;  %15183 = vst [vmem:[#allocation24_spill] sm:$0xff] %v12779_v14 }
 0x2a6   : > { %15178 = vst [vmem:[#allocation19_spill] sm:$0xff] %v12745_v29  ;;  %v12764_v58 = vmul.u32.u64.low 3817748708, %v12732_v0  ;;  %v12765_v60 = vmul.u32.u64.high 3817748708, %v12732_v0, %v12764_v58  ;;  %v12771_v23 = vcombine.low %v5032_v53, %v5033_v35  ;;  %v3972_v43 = vshrl.u32 %v12720_v32, 4  ;;  %vm12801_vm1 = vmand %vm4230_vm12, %vm4194_vm10 }
 0x2a7   : > { %15179 = vst [vmem:[#allocation20_spill] sm:$0xff] %v12761_v28  ;;  %15180 = vst [vmem:[#allocation21_spill] sm:$0xff] %v12769_v8  ;;  %v3995_v33 = vmul.u32 18, %v3994_v21  ;;  %v12782_v58 = vsub.s32 %v12577_v13, %v3940_v24  ;;  %v12786_v62 = vmul.u32.u64.low 3817748708, %v12757_v61  ;;  %v12787_v5 = vmul.u32.u64.high 3817748708, %v12757_v61, %v12786_v62 }
 0x2a8   : > { %15181 = vst [vmem:[#allocation22_spill] sm:$0xff] %v12771_v23  ;;  %v12791_v35 = vadd.s32 18, %v12745_v29  ;;  %v4005_v21 = vshrl.u32 %v12729_v40, 4  ;;  %v12795_v53 = vadd.s32 184, %v12420_v48  ;;  %v15186_v16 = vmov 0  ;;  %vm12815_vm9 = vmand %vm4233_vm8, %vm4197_vm14 }
 0x2a9   : > { %15184 = vst [vmem:[#allocation25_spill] sm:$0xff] %v12782_v58  ;;  %v15187_v16 = vsel %vm12801_vm1, 4294967295, %v15186_v16  ;;  %v12807_v13 = vsub.s32 %v12604_v39, %v3995_v33  ;;  %v5196_v32 = vshrl.u32 %v12771_v23, 16  ;;  %v5198_v40 = vshll.u32 %v12771_v23, 16  ;;  %v15346_v3 = vld [vmem:[#allocation8_spill] sm:$0xff] }
 0x2aa   : > { %15185 = vst [vmem:[#allocation26_spill] sm:$0xff] %v12791_v35  ;;  %15188 = vst [vmem:[#allocation27_spill] sm:$0xff] %v15187_v16  ;;  %v15190_v31 = vmov 0  ;;  %vm4234_vm10 = vcmp.lt.s32.totalorder %v12769_v8, 0  ;;  %v12821_v24 = vadd.s32 18, %v12769_v8  ;;  %v3983_v39 = vshrl.u32 %v12749_v1, 4 }
 0x2ab   : > { %15189 = vst [vmem:[#allocation28_spill] sm:$0xff] %v12807_v13  ;;  %v15191_v31 = vsel %vm12815_vm9, 4294967295, %v15190_v31  ;;  %vm15194_vm0 = vcmp.ne.s32.totalorder %v12738_v49, 0  ;;  %vm15195_vm11 = vcmp.lt.s32.totalorder %v12738_v49, 0  ;;  %v15196_v33 = vmov 0 }
 0x2ac   : > { %15192 = vst [vmem:[#allocation29_spill] sm:$0xff] %v15191_v31  ;;  %15193 = vst [vmem:[#allocation30_spill] sm:$0xff] %v12821_v24  ;;  %vm4237_vm14 = vcmp.lt.s32.totalorder %v12779_v14, 0  ;;  %vm4199_vm8 = vcmp.ne.s32.totalorder %v12782_v58, 0  ;;  %v3973_v62 = vmul.u32 18, %v3972_v43  ;;  %vm15199_vm15 = vcmp.ne.s32.totalorder %v12745_v29, 0 }
 0x2ad   : > { %vm12829_vm5 = vmand %vm15195_vm11, %vm15194_vm0  ;;  %vm15200_vm12 = vcmp.lt.s32.totalorder %v12745_v29, 0  ;;  %v15201_v1 = vmov 0  ;;  %v4006_v15 = vmul.u32 18, %v4005_v21  ;;  %v4038_v38 = vshrl.u32 %v12765_v60, 4 }
 0x2ae   : > { %v15197_v33 = vsel %vm12829_vm5, 4294967295, %v15196_v33  ;;  %vm12840_vm13 = vmand %vm15200_vm12, %vm15199_vm15  ;;  %v12846_v42 = vmul.u32.u64.low 3817748708, %v12795_v53  ;;  %v12847_v37 = vmul.u32.u64.high 3817748708, %v12795_v53, %v12846_v42  ;;  %vm15204_vm0 = vcmp.ne.s32.totalorder %v12769_v8, 0 }
 0x2af   : > { %15198 = vst [vmem:[#allocation31_spill] sm:$0xff] %v15197_v33  ;;  %v15202_v1 = vsel %vm12840_vm13, 4294967295, %v15201_v1  ;;  %vm12851_vm11 = vmand %vm4234_vm10, %vm15204_vm0  ;;  %v15205_v23 = vmov 0  ;;  %v12856_v43 = vadd.s32 18, %v12779_v14  ;;  %vm4204_vm15 = vcmp.ne.s32.totalorder %v12807_v13, 0 }
 0x2b0   : > { %15203 = vst [vmem:[#allocation32_spill] sm:$0xff] %v15202_v1  ;;  %v15206_v23 = vsel %vm12851_vm11, 4294967295, %v15205_v23  ;;  %vm4240_vm12 = vcmp.lt.s32.totalorder %v12807_v13, 0  ;;  %v5200_v21 = vrot.slane %v5198_v40, 1  ;;  %vm15209_vm2 = vcmp.ne.s32.totalorder %v12779_v14, 0 }
 0x2b1   : > { %15207 = vst [vmem:[#allocation33_spill] sm:$0xff] %v15206_v23  ;;  %15208 = vst [vmem:[#allocation34_spill] sm:$0xff] %v12856_v43  ;;  %v15210_v42 = vmov 0  ;;  %v12873_v2 = vadd.s32 18, %v12782_v58  ;;  %v3984_v41 = vmul.u32 18, %v3983_v39  ;;  %v12876_v50 = vadd.s32 168, %v12420_v48 }
 0x2b2   : > { %vm12868_vm10 = vmand %vm4237_vm14, %vm15209_vm2  ;;  %vm15214_vm0 = vcmp.lt.s32.totalorder %v12782_v58, 0  ;;  %v15215_v60 = vmov 0  ;;  %v12891_v63 = vadd.s32 18, %v12807_v13  ;;  %v12894_v39 = vsub.s32 %v12690_v9, %v3973_v62 }
 0x2b3   : > { %v15211_v42 = vsel %vm12868_vm10, 4294967295, %v15210_v42  ;;  %15213 = vst [vmem:[#allocation36_spill] sm:$0xff] %v12873_v2  ;;  %vm12886_vm2 = vmand %vm15214_vm0, %vm4199_vm8  ;;  %v4016_v36 = vshrl.u32 %v12787_v5, 4  ;;  %v15220_v28 = vmov 0  ;;  %v12912_v9 = vsub.s32 %v12702_v46, %v4006_v15 }
 0x2b4   : > { %15212 = vst [vmem:[#allocation35_spill] sm:$0xff] %v15211_v42  ;;  %v15216_v60 = vsel %vm12886_vm2, 4294967295, %v15215_v60  ;;  %15218 = vst [vmem:[#allocation38_spill] sm:$0xff] %v12891_v63  ;;  %v4039_v5 = vmul.u32 18, %v4038_v38  ;;  %v12922_v40 = vor.u32 %v5200_v21, %v5196_v32  ;;  %v12925_v29 = vadd.s32 208, %v12420_v48 }
 0x2b5   : > { %15217 = vst [vmem:[#allocation37_spill] sm:$0xff] %v15216_v60  ;;  %15219 = vst [vmem:[#allocation39_spill] sm:$0xff] %v12894_v39  ;;  %v12932_v15 = vsub.s32 %v12712_v12, %v3984_v41  ;;  %v12935_v46 = vmul.u32.u64.low 3817748708, %v12876_v50  ;;  %v12936_v62 = vmul.u32.u64.high 3817748708, %v12876_v50, %v12935_v46  ;;  %vm4202_vm8 = vcmp.ne.s32.totalorder %v12894_v39, 0 }
 0x2b6   : > { %vm12907_vm14 = vmand %vm4240_vm12, %vm4204_vm15  ;;  %15223 = vst [vmem:[#allocation41_spill] sm:$0xff] %v12922_v40  ;;  %v12945_v21 = vadd.s32 18, %v12894_v39  ;;  %v4017_v38 = vmul.u32 18, %v4016_v36  ;;  %v12948_v41 = vadd.s32 192, %v12420_v48  ;;  %v12953_v12 = vsub.s32 %v12732_v0, %v4039_v5 }
 0x2b7   : > { %v15221_v28 = vsel %vm12907_vm14, 4294967295, %v15220_v28  ;;  %v4049_v46 = vshrl.u32 %v12847_v37, 4  ;;  %v12957_v32 = vadd.s32 18, %v12912_v9  ;;  %v12964_v36 = vadd.s32 216, %v12420_v48 }
 0x2b8   : > { %15222 = vst [vmem:[#allocation40_spill] sm:$0xff] %v15221_v28  ;;  %v12960_v26 = vmul.u32.u64.low 3817748708, %v12925_v29  ;;  %v12961_v40 = vmul.u32.u64.high 3817748708, %v12925_v29, %v12960_v26  ;;  %v12969_v13 = vadd.s32 18, %v12932_v15  ;;  %v12972_v0 = vadd.s32 200, %v12420_v48 }
 0x2b9   : > { %v12975_v37 = vsub.s32 %v12757_v61, %v4017_v38  ;;  %v12978_v5 = vmul.u32.u64.low 3817748708, %v12948_v41  ;;  %v12979_v63 = vmul.u32.u64.high 3817748708, %v12948_v41, %v12978_v5  ;;  %v12982_v26 = vadd.s32 240, %v12420_v48 }
 0x2ba   : > { %v4050_v28 = vmul.u32 18, %v4049_v46  ;;  %v12987_v58 = vadd.s32 224, %v12420_v48  ;;  %v12990_v2 = vadd.s32 18, %v12953_v12  ;;  %v12997_v5 = vadd.s32 248, %v12420_v48 }
 0x2bb   : > { %v12993_v61 = vmul.u32.u64.low 3817748708, %v12964_v36  ;;  %v12994_v38 = vmul.u32.u64.high 3817748708, %v12964_v36, %v12993_v61  ;;  %v4027_v60 = vshrl.u32 %v12936_v62, 4  ;;  %v13005_v46 = vadd.s32 232, %v12420_v48 }
 0x2bc   : > { %v13001_v14 = vmul.u32.u64.low 3817748708, %v12972_v0  ;;  %v13002_v43 = vmul.u32.u64.high 3817748708, %v12972_v0, %v13001_v14  ;;  %v13009_v42 = vmul.u32.u64.low 3817748708, %v12982_v26  ;;  %v13010_v8 = vmul.u32.u64.high 3817748708, %v12982_v26, %v13009_v42 }
 0x2bd   : > { %v13013_v61 = vadd.s32 272, %v12420_v48  ;;  %v13016_v24 = vsub.s32 %v12795_v53, %v4050_v28  ;;  %v13019_v62 = vmul.u32.u64.low 3817748708, %v12987_v58  ;;  %v13020_v23 = vmul.u32.u64.high 3817748708, %v12987_v58, %v13019_v62 }
 0x2be   : > { %v13023_v14 = vadd.s32 256, %v12420_v48  ;;  %v4082_v35 = vshrl.u32 %v12961_v40, 4  ;;  %v13028_v1 = vmul.u32.u64.low 3817748708, %v12997_v5  ;;  %v13029_v42 = vmul.u32.u64.high 3817748708, %v12997_v5, %v13028_v1 }
 0x2bf   : > { %vm15224_vm12 = vcmp.lt.s32.totalorder %v12894_v39, 0  ;;  %v15225_v28 = vmov 0  ;;  %v4028_v53 = vmul.u32 18, %v4027_v60  ;;  %v13044_v27 = vadd.s32 280, %v12420_v48 }
 0x2c0   : > { %vm13035_vm0 = vmand %vm15224_vm12, %vm4202_vm8  ;;  %v13040_v62 = vmul.u32.u64.low 3817748708, %v13005_v46  ;;  %v13041_v49 = vmul.u32.u64.high 3817748708, %v13005_v46, %v13040_v62  ;;  %vm15227_vm15 = vcmp.ne.s32.totalorder %v12912_v9, 0  ;;  %vm15228_vm14 = vcmp.lt.s32.totalorder %v12912_v9, 0 }
 0x2c1   : > { %v15226_v28 = vsel %vm13035_vm0, 4294967295, %v15225_v28  ;;  %vm13050_vm2 = vmand %vm15228_vm14, %vm15227_vm15  ;;  %v15229_v1 = vmov 0  ;;  %v4060_v40 = vshrl.u32 %v12979_v63, 4  ;;  %v13060_v31 = vadd.s32 264, %v12420_v48 }
 0x2c2   : > { %v15230_v1 = vsel %vm13050_vm2, 4294967295, %v15229_v1  ;;  %v13056_v33 = vmul.u32.u64.low 3817748708, %v13013_v61  ;;  %v13057_v60 = vmul.u32.u64.high 3817748708, %v13013_v61, %v13056_v33  ;;  %vm15231_vm8 = vcmp.ne.s32.totalorder %v12932_v15, 0 }
 0x2c3   : > { %vm15232_vm12 = vcmp.lt.s32.totalorder %v12932_v15, 0  ;;  %v15233_v62 = vmov 0  ;;  %vm4245_vm15 = vcmp.lt.s32.totalorder %v13016_v24, 0  ;;  %vm15235_vm11 = vcmp.ne.s32.totalorder %v12953_v12, 0 }
 0x2c4   : > { %vm13066_vm10 = vmand %vm15232_vm12, %vm15231_vm8  ;;  %v13073_v63 = vmul.u32.u64.low 3817748708, %v13023_v14  ;;  %v13074_v16 = vmul.u32.u64.high 3817748708, %v13023_v14, %v13073_v63  ;;  %vm15236_vm13 = vcmp.lt.s32.totalorder %v12953_v12, 0  ;;  %v15237_v48 = vmov 0 }
 0x2c5   : > { %v15234_v62 = vsel %vm13066_vm10, 4294967295, %v15233_v62  ;;  %vm13080_vm5 = vmand %vm15236_vm13, %vm15235_vm11  ;;  %v4083_v33 = vmul.u32 18, %v4082_v35  ;;  %v4093_v57 = vshrl.u32 %v12994_v38, 4  ;;  %vm15240_vm8 = vcmp.ne.s32.totalorder %v12975_v37, 0 }
 0x2c6   : > { %v15238_v48 = vsel %vm13080_vm5, 4294967295, %v15237_v48  ;;  %v13086_v11 = vmul.u32.u64.low 3817748708, %v13044_v27  ;;  %v13087_v20 = vmul.u32.u64.high 3817748708, %v13044_v27, %v13086_v11  ;;  %vm15241_vm12 = vcmp.lt.s32.totalorder %v12975_v37, 0 }
 0x2c7   : > { %15239 = vst [vmem:[#allocation42_spill] sm:$0xff] %v15238_v48  ;;  %vm13093_vm14 = vmand %vm15241_vm12, %vm15240_vm8  ;;  %v15242_v63 = vmov 0  ;;  %v13098_v45 = vadd.s32 18, %v12975_v37  ;;  %v13101_v54 = vadd.s32 18, %v13016_v24  ;;  %v13104_v35 = vsub.s32 %v12876_v50, %v4028_v53 }
 0x2c8   : > { %v15243_v63 = vsel %vm13093_vm14, 4294967295, %v15242_v63  ;;  %v4071_v38 = vshrl.u32 %v13002_v43, 4  ;;  %vm15244_vm13 = vcmp.ne.s32.totalorder %v13016_v24, 0  ;;  %v15245_v11 = vmov 0 }
 0x2c9   : > { %vm13109_vm11 = vmand %vm4245_vm15, %vm15244_vm13  ;;  %v4061_v55 = vmul.u32 18, %v4060_v40  ;;  %v4126_v30 = vshrl.u32 %v13010_v8, 4  ;;  %v13115_v59 = vmul.u32.u64.low 3817748708, %v13060_v31  ;;  %v13116_v34 = vmul.u32.u64.high 3817748708, %v13060_v31, %v13115_v59 }
 0x2ca   : > { %v15246_v11 = vsel %vm13109_vm11, 4294967295, %v15245_v11  ;;  %v4104_v8 = vshrl.u32 %v13020_v23, 4  ;;  %v13136_v40 = vsub.s32 %v12925_v29, %v4083_v33  ;;  %v4094_v50 = vmul.u32 18, %v4093_v57 }
 0x2cb   : > { %v4137_v39 = vshrl.u32 %v13029_v42, 4  ;;  %v4072_v53 = vmul.u32 18, %v4071_v38  ;;  %v4115_v48 = vshrl.u32 %v13041_v49, 4  ;;  %vm4207_vm15 = vcmp.ne.s32.totalorder %v13104_v35, 0 }
 0x2cc   : > { %v13150_v29 = vsub.s32 %v12948_v41, %v4061_v55  ;;  %v4127_v57 = vmul.u32 18, %v4126_v30  ;;  %v4170_v42 = vshrl.u32 %v13057_v60, 4  ;;  %v13155_v33 = vadd.s32 18, %v13104_v35 }
 0x2cd   : > { %v4105_v43 = vmul.u32 18, %v4104_v8  ;;  %v4148_v59 = vshrl.u32 %v13074_v16, 4  ;;  %v13160_v49 = vsub.s32 %v12964_v36, %v4094_v50  ;;  %v4138_v38 = vmul.u32 18, %v4137_v39 }
 0x2ce   : > { %v4181_v55 = vshrl.u32 %v13087_v20, 4  ;;  %v13165_v30 = vsub.s32 %v12972_v0, %v4072_v53  ;;  %v4116_v41 = vmul.u32 18, %v4115_v48  ;;  %v4159_v60 = vshrl.u32 %v13116_v34, 4 }
 0x2cf   : > { %15247 = vst [vmem:[#allocation43_spill] sm:$0xff] %v13160_v49  ;;  %v13169_v8 = vadd.s32 18, %v13136_v40  ;;  %v13173_v16 = vsub.s32 %v12982_v26, %v4127_v57  ;;  %v4171_v36 = vmul.u32 18, %v4170_v42  ;;  %vm15250_vm12 = vcmp.lt.s32.totalorder %v13104_v35, 0 }
 0x2d0   : > { %15248 = vst [vmem:[#allocation44_spill] sm:$0xff] %v13165_v30  ;;  %vm13179_vm13 = vmand %vm15250_vm12, %vm4207_vm15  ;;  %v15251_v20 = vmov 0  ;;  %v13185_v34 = vadd.s32 18, %v13150_v29  ;;  %v13188_v39 = vsub.s32 %v12987_v58, %v4105_v43  ;;  %v4149_v0 = vmul.u32 18, %v4148_v59 }
 0x2d1   : > { %15249 = vst [vmem:[#allocation45_spill] sm:$0xff] %v13173_v16  ;;  %v15252_v20 = vsel %vm13179_vm13, 4294967295, %v15251_v20  ;;  %v13193_v26 = vsub.s32 %v12997_v5, %v4138_v38  ;;  %v4182_v48 = vmul.u32 18, %v4181_v55  ;;  %vm15255_vm15 = vcmp.ne.s32.totalorder %v13136_v40, 0 }
 0x2d2   : > { %15253 = vst [vmem:[#allocation46_spill] sm:$0xff] %v13188_v39  ;;  %vm15256_vm12 = vcmp.lt.s32.totalorder %v13136_v40, 0  ;;  %v15257_v50 = vmov 0  ;;  %v13206_v58 = vsub.s32 %v13005_v46, %v4116_v41  ;;  %v4160_v43 = vmul.u32 18, %v4159_v60 }
 0x2d3   : > { %15254 = vst [vmem:[#allocation47_spill] sm:$0xff] %v13193_v26  ;;  %vm13199_vm11 = vmand %vm15256_vm12, %vm15255_vm15  ;;  %v15260_v5 = vsel %vm12551_vm7, %v12500_v18, %v12474_v10  ;;  %vm15263_vm15 = vcmp.ne.s32.totalorder %v13150_v29, 0  ;;  %vm15264_vm12 = vcmp.lt.s32.totalorder %v13150_v29, 0  ;;  %v15265_v46 = vmov 0 }
 0x2d4   : > { %v15258_v50 = vsel %vm13199_vm11, 4294967295, %v15257_v50  ;;  %15259 = vst [vmem:[#allocation48_spill] sm:$0xff] %v13206_v58  ;;  %vm13213_vm14 = vcmp.lt.s32.totalorder %v15260_v5, 16  ;;  %vm13225_vm10 = vmand %vm15264_vm12, %vm15263_vm15  ;;  %v13232_v10 = vsub.s32 %v13013_v61, %v4171_v36  ;;  %v15268_v18 = vsel %vm12567_vm3, %v12510_v51, %v12480_v4 }
 0x2d5   : > { %v15266_v46 = vsel %vm13225_vm10, 4294967295, %v15265_v46  ;;  %vm13239_vm8 = vcmp.lt.s32.totalorder %v15268_v18, 16  ;;  %vm15271_vm15 = vcmp.ne.s32.totalorder %v13160_v49, 0  ;;  %vm15272_vm12 = vcmp.lt.s32.totalorder %v13160_v49, 0 }
 0x2d6   : > { %15267 = vst [vmem:[#allocation49_spill] sm:$0xff] %v13232_v10  ;;  %vm13247_vm13 = vmand %vm15272_vm12, %vm15271_vm15  ;;  %v15273_v57 = vmov 0  ;;  %v13252_v61 = vadd.s32 18, %v13160_v49  ;;  %v13257_v4 = vsub.s32 %v13023_v14, %v4149_v0  ;;  %v15276_v51 = vsel %vm12583_vm6, %v12518_v17, %v12488_v7 }
 0x2d7   : > { %v15274_v57 = vsel %vm13247_vm13, 4294967295, %v15273_v57  ;;  %vm13264_vm3 = vcmp.lt.s32.totalorder %v15276_v51, 16  ;;  %vm15279_vm15 = vcmp.ne.s32.totalorder %v13165_v30, 0  ;;  %vm15280_vm12 = vcmp.lt.s32.totalorder %v13165_v30, 0 }
 0x2d8   : > { %15275 = vst [vmem:[#allocation50_spill] sm:$0xff] %v13257_v4  ;;  %vm13276_vm5 = vmand %vm15280_vm12, %vm15279_vm15  ;;  %v15281_v14 = vmov 0  ;;  %v13283_v7 = vsub.s32 %v13044_v27, %v4182_v48  ;;  %v15285_v17 = vsel %vm12594_vm4, %v12532_v52, %v12492_v47  ;;  %vm15288_vm15 = vcmp.ne.s32.totalorder %v13173_v16, 0  ;;  %v13314_v52 = vld [vmem:[%s15033_s2] ss:$0 sm:$0xff] }
 0x2d9   : > { %v15282_v14 = vsel %vm13276_vm5, 4294967295, %v15281_v14  ;;  %vm13290_vm11 = vcmp.lt.s32.totalorder %v15285_v17, 16  ;;  %vm15289_vm12 = vcmp.lt.s32.totalorder %v13173_v16, 0  ;;  %v15290_v27 = vmov 0 }
 0x2da   : > { %15283 = vst [vmem:[#allocation51_spill] sm:$0xff] %v15282_v14  ;;  %15284 = vst [vmem:[#allocation52_spill] sm:$0xff] %v13283_v7  ;;  %v15287_v22 = vsel %vm13290_vm11, 4294967295, %v15286_v22  ;;  %v13309_v47 = vsub.s32 %v13060_v31, %v4160_v43  ;;  %v13317_v44 = vadd.s32 18, %v13165_v30  ;;  %v13320_v55 = vadd.s32 18, %v13173_v16 }
 0x2db   : > { %vm13302_vm6 = vmand %vm15289_vm12, %vm15288_vm15  ;;  %vm15295_vm15 = vcmp.ne.s32.totalorder %v13188_v39, 0  ;;  %vm15296_vm12 = vcmp.lt.s32.totalorder %v13188_v39, 0  ;;  %v15297_v41 = vmov 0  ;;  %v13337_v60 = vadd.s32 18, %v13188_v39  ;;  %v15404_v39 = vld [vmem:[#allocation33_spill] sm:$0xff] }
 0x2dc   : > { %v15291_v27 = vsel %vm13302_vm6, 4294967295, %v15290_v27  ;;  %15293 = vst [vmem:[#allocation54_spill] sm:$0xff] %v13309_v47  ;;  %15294 = vst [vmem:[#allocation55_spill] sm:$0xff] %v13320_v55  ;;  %vm15301_vm2 = vcmp.ne.s32.totalorder %v13193_v26, 0  ;;  %vm15302_vm0 = vcmp.lt.s32.totalorder %v13193_v26, 0  ;;  %v15303_v36 = vmov 0 }
 0x2dd   : > { %15292 = vst [vmem:[#allocation53_spill] sm:$0xff] %v15291_v27  ;;  %vm13326_vm7 = vmand %vm15296_vm12, %vm15295_vm15  ;;  %v13350_v48 = vadd.s32 18, %v13193_v26  ;;  %vm15307_vm4 = vcmp.ne.s32.totalorder %v13206_v58, 0  ;;  %vm15308_vm13 = vcmp.lt.s32.totalorder %v13206_v58, 0  ;;  %v15309_v43 = vmov 0 }
 0x2de   : > { %v15298_v41 = vsel %vm13326_vm7, 4294967295, %v15297_v41  ;;  %15300 = vst [vmem:[#allocation57_spill] sm:$0xff] %v13337_v60  ;;  %vm13343_vm15 = vmand %vm15302_vm0, %vm15301_vm2  ;;  %v13361_v5 = vadd.s32 18, %v13206_v58  ;;  %vm4221_vm2 = vcmp.ne.s32.totalorder %v13283_v7, 0  ;;  %vm15313_vm1 = vcmp.ne.s32.totalorder %v13232_v10, 0  ;;  %v15341_v58 = vld [vmem:[#allocation7_spill] sm:$0xff] }
 0x2df   : > { %15299 = vst [vmem:[#allocation56_spill] sm:$0xff] %v15298_v41  ;;  %v15304_v36 = vsel %vm13343_vm15, 4294967295, %v15303_v36  ;;  %15306 = vst [vmem:[#allocation59_spill] sm:$0xff] %v13350_v48  ;;  %vm15314_vm11 = vcmp.lt.s32.totalorder %v13232_v10, 0  ;;  %v15315_v17 = vmov 0  ;;  %v13375_v31 = vadd.s32 18, %v13232_v10 }
 0x2e0   : > { %15305 = vst [vmem:[#allocation58_spill] sm:$0xff] %v15304_v36  ;;  %vm13356_vm9 = vmand %vm15308_vm13, %vm15307_vm4  ;;  %vm4219_vm4 = vcmp.ne.s32.totalorder %v13309_v47, 0  ;;  %v15321_v23 = vmov 0  ;;  %vm15325_vm10 = vnez %v15156_v56  ;;  %v15330_v55 = vmov 0  ;;  %v15427_v41 = vld [vmem:[#allocation38_spill] sm:$0xff] }
 0x2e1   : > { %v15310_v43 = vsel %vm13356_vm9, 4294967295, %v15309_v43  ;;  %15312 = vst [vmem:[#allocation61_spill] sm:$0xff] %v13361_v5  ;;  %vm13370_vm13 = vmand %vm15314_vm11, %vm15313_vm1  ;;  %vm15319_vm1 = vcmp.ne.s32.totalorder %v13257_v4, 0  ;;  %vm15320_vm11 = vcmp.lt.s32.totalorder %v13257_v4, 0  ;;  %v15326_v59 = vsel %vm15325_vm10, %v12573_v6, %v12507_v25  ;;  %v15339_v6 = vld [vmem:[#allocation6_spill] sm:$0xff]  ;;  %v15342_v5 = vld [vmem:[#allocation3_spill] sm:$0xff] }
 0x2e2   : > { %15311 = vst [vmem:[#allocation60_spill] sm:$0xff] %v15310_v43  ;;  %v15316_v17 = vsel %vm13370_vm13, 4294967295, %v15315_v17  ;;  %15318 = vst [vmem:[#allocation63_spill] sm:$0xff] %v13375_v31  ;;  %vm13405_vm12 = vcmp.lt.s32.totalorder %v15326_v59, 16  ;;  %v13421_v56 = vadd.s32 18, %v13309_v47  ;;  %vm15335_vm10 = vcmp.lt.s32.totalorder %v13309_v47, 0 }
 0x2e3   : > { %15317 = vst [vmem:[#allocation62_spill] sm:$0xff] %v15316_v17  ;;  %vm13392_vm0 = vmand %vm15320_vm11, %vm15319_vm1  ;;  %vm15329_vm1 = vcmp.lt.s32.totalorder %v13283_v7, 0  ;;  %v15336_v27 = vmov 0  ;;  %vm15373_vm13 = vsmask.f32 1280  ;;  %v15376_v31 = vld [vmem:[#allocation27_spill] sm:$0xff] }
 0x2e4   : > { %v15322_v23 = vsel %vm13392_vm0, 4294967295, %v15321_v23  ;;  %vm13413_vm11 = vmand %vm15329_vm1, %vm4221_vm2  ;;  %15334 = vst [vmem:[#allocation68_spill] sm:$0xff] %v13421_v56  ;;  %v15354_v56 = vld [vmem:[#allocation12_spill] sm:$0xff] }
 0x2e5   : > { %15323 = vst [vmem:[#allocation64_spill] sm:$0xff] %v15322_v23  ;;  %v15331_v55 = vsel %vm13413_vm11, 4294967295, %v15330_v55  ;;  %vm13436_vm2 = vmand %vm15335_vm10, %vm4219_vm4  ;;  %vm15355_vm10 = vnez %v15354_v56  ;;  %vm15369_vm11 = vcmask 1043457  }
 0x2e6   : > { %15332 = vst [vmem:[#allocation66_spill] sm:$0xff] %v15331_v55  ;;  %v15337_v27 = vsel %vm13436_vm2, 4294967295, %v15336_v27  ;;  %vm15368_vm2 = vsmask.f32 7942 }
 0x2e7   : > { %15338 = vst [vmem:[#allocation69_spill] sm:$0xff] %v15337_v27  ;;  %vm13507_vm0 = vmand %vm15369_vm11, %vm15368_vm2 }
 0x331   : > { %v10166_v0 = vpop.f32.mrb[0].mxu0 }
 0x332   : > { %v3683_v18 = vadd.f32 %v10166_v0, %v13314_v52  ;;  %v3495_v51 = vpop.f32.mrb[1].mxu0 }
 0x333   : > { %v3681_v0 = vadd.f32 %v13314_v52, %v3495_v51  ;;  %v10167_v38 = vpop.f32.mrb[2].mxu0  ;;  %v13397_v51 = vadd.s32 18, %v13257_v4 }
 0x334   : > { %v3719_v49 = vmax.f32 %v3683_v18, 0.0  ;;  %v3684_v14 = vadd.f32 %v10167_v38, %v13314_v52  ;;  %v3498_v42 = vpop.f32.mrb[3].mxu0  ;;  %v13418_v38 = vadd.s32 18, %v13283_v7 }
 0x335   : > { %15324 = vst [vmem:[#allocation65_spill] sm:$0xff] %v13397_v51  ;;  %v3717_v18 = vmax.f32 %v3681_v0, 0.0  ;;  %v3682_v25 = vadd.f32 %v13314_v52, %v3498_v42 }
 0x336   : > { %15333 = vst [vmem:[#allocation67_spill] sm:$0xff] %v13418_v38  ;;  %v4404_v42 = vsel %vm13213_vm14, %v3719_v49, 0.0  ;;  %v3720_v0 = vmax.f32 %v3684_v14, 0.0  ;;  %vm15340_vm14 = vnez %v15339_v6 }
 0x337   : > { %v9419_v26 = vpack.c.bf16 %v4404_v42, %v4404_v42  ;;  %v4402_v48 = vsel %vm13239_vm8, %v3717_v18, 0.0  ;;  %v3718_v36 = vmax.f32 %v3682_v25, 0.0  ;;  %v15343_v17 = vsel %vm15340_vm14, %v15341_v58, %v15342_v5  ;;  %v15348_v18 = vld [vmem:[#allocation9_spill] sm:$0xff]  ;;  %v15349_v25 = vld [vmem:[#allocation4_spill] sm:$0xff] }
 0x338   : > { %v9417_v53 = vpack.c.bf16 %v4402_v48, %v4402_v48  ;;  %v4405_v14 = vsel %vm13264_vm3, %v3720_v0, 0.0  ;;  %vm13463_vm4 = vcmp.lt.s32.totalorder %v15343_v17, 16  ;;  %vm15347_vm8 = vnez %v15346_v3 }
 0x339   : > { %v15350_v59 = vsel %vm15347_vm8, %v15348_v18, %v15349_v25  ;;  %v4610_v48 = vshrl.u32 %v9419_v26, 16  ;;  %v4613_v5 = vshll.u32 %v9419_v26, 16  ;;  %v9420_v17 = vpack.c.bf16 %v4405_v14, %v4405_v14 }
 0x33a   : > { %vm13472_vm1 = vcmp.lt.s32.totalorder %v15350_v59, 16  ;;  %vm15353_vm3 = vnez %v15287_v22  ;;  %v10170_v59 = vpop.f32.mrb[4].mxu0  ;;  %v4591_v0 = vshrl.u32 %v9417_v53, 16  ;;  %v4594_v3 = vshll.u32 %v9417_v53, 16  ;;  %v15356_v22 = vld [vmem:[#allocation10_spill] sm:$0xff] }
 0x33b   : > { %v4403_v6 = vsel %vm15353_vm3, %v3718_v36, 0.0  ;;  %v3687_v25 = vadd.f32 %v10170_v59, %v13314_v52  ;;  %v3511_v4 = vpop.f32.mrb[5].mxu0  ;;  %v4612_v55 = vrot.slane %v4610_v48, 6  ;;  %v4615_v19 = vrot.slane %v4613_v5, 7  ;;  %v15357_v36 = vld [vmem:[#allocation5_spill] sm:$0xff]  ;;  %v15363_v48 = vld [vmem:[#allocation14_spill] sm:$0xff] }
 0x33c   : > { %v9418_v18 = vpack.c.bf16 %v4403_v6, %v4403_v6  ;;  %v4620_v7 = vshrl.u32 %v9420_v17, 16  ;;  %v4623_v38 = vshll.u32 %v9420_v17, 16  ;;  %v10171_v51 = vpop.f32.mrb[6].mxu0  ;;  %v4593_v27 = vrot.slane %v4591_v0, 6  ;;  %v15361_v6 = vld [vmem:[#allocation16_spill] sm:$0xff]  ;;  %v15364_v5 = vld [vmem:[#allocation11_spill] sm:$0xff] }
 0x33d   : > { %v4596_v58 = vrot.slane %v4594_v3, 7  ;;  %v3514_v14 = vpop.f32.mrb[7].mxu0  ;;  %v15358_v23 = vsel %vm15355_vm10, %v15356_v22, %v15357_v36  ;;  %vm15362_vm8 = vnez %v15361_v6  ;;  %v4616_v0 = vor.u32 %v4615_v19, %v4612_v55  ;;  %v15397_v59 = vld [vmem:[#allocation32_spill] sm:$0xff] }
 0x33e   : > { %v4600_v47 = vshrl.u32 %v9418_v18, 16  ;;  %v4603_v26 = vshll.u32 %v9418_v18, 16  ;;  %vm13492_vm14 = vcmp.lt.s32.totalorder %v15358_v23, 16  ;;  %v15365_v17 = vsel %vm15362_vm8, %v15363_v48, %v15364_v5  ;;  %v4989_v23 = vld [vmem:[#allocation2 + $0x8] sm:$0xe] }
 0x33f   : > { %vm13501_vm3 = vcmp.lt.s32.totalorder %v15365_v17, 16  ;;  %v4622_v3 = vrot.slane %v4620_v7, 6  ;;  %v4625_v18 = vrot.slane %v4623_v38, 7  ;;  %v3723_v22 = vmax.f32 %v3687_v25, 0.0 }
 0x340   : > { %v4597_v36 = vor.u32 %v4596_v58, %v4593_v27  ;;  %vm15372_vm10 = vsmask.f32 5392  ;;  %v4602_v48 = vrot.slane %v4600_v47, 6  ;;  %v4605_v5 = vrot.slane %v4603_v26, 7  ;;  %v15378_v47 = vld [vmem:[#allocation17_spill] sm:$0xff] }
 0x341   : > { %vm13513_vm9 = vmor %vm15373_vm13, %vm15372_vm10  ;;  %v3685_v55 = vadd.f32 %v13314_v52, %v3511_v4  ;;  %v4618_v19 = vrot.slane %v4616_v0, 4  ;;  %v13518_v17 = vor.u32 %v4625_v18, %v4622_v3  ;;  %v4408_v10 = vsel %vm13405_vm12, %v3723_v22, 0.0  ;;  %v15379_v26 = vld [vmem:[#allocation13_spill] sm:$0xff]  ;;  %v10174_v3 = vpop.f32.mrb[8].mxu0 }
 0x342   : > { %v3688_v7 = vadd.f32 %v10171_v51, %v13314_v52  ;;  %v4598_v38 = vrot.slane %v4597_v36, 4  ;;  %v4990_v27 = vsel %vm13507_vm0, %v4597_v36, %v4989_v23  ;;  %v4606_v58 = vor.u32 %v4605_v5, %v4602_v48  ;;  %v3527_v22 = vpop.f32.mrb[9].mxu0 }
 0x343   : > { %v9423_v25 = vpack.c.bf16 %v4408_v10, %v4408_v10  ;;  %vm15377_vm13 = vnez %v15376_v31  ;;  %4991 = vst [vmem:[#allocation2 + $0x8] sm:$0xe] %v4990_v27  ;;  %v4627_v16 = vsel %vm13513_vm9, %v4618_v19, %v13518_v17  ;;  %v4628_v51 = vrot.slane %v13518_v17, 4  ;;  %v10175_v19 = vpop.f32.mrb[10].mxu0  ;;  %v15383_v17 = vld [vmem:[#allocation29_spill] sm:$0xff] }
 0x344   : > { %v15380_v43 = vsel %vm15377_vm13, %v15378_v47, %v15379_v26  ;;  %v3721_v56 = vmax.f32 %v3685_v55, 0.0  ;;  %v3724_v23 = vmax.f32 %v3688_v7, 0.0  ;;  %4994 = vst [vmem:[#allocation2 + $0x14] sm:$0xf] %v4627_v16  ;;  %v4607_v10 = vsel %vm13513_vm9, %v4598_v38, %v4606_v58  ;;  %v15385_v7 = vld [vmem:[#allocation20_spill] sm:$0xff]  ;;  %v15386_v38 = vld [vmem:[#allocation15_spill] sm:$0xff] }
 0x345   : > { %vm13530_vm11 = vcmp.lt.s32.totalorder %v15380_v43, 16  ;;  %v4608_v31 = vrot.slane %v4606_v58, 4  ;;  %v4650_v18 = vshrl.u32 %v9423_v25, 16  ;;  %v4653_v43 = vshll.u32 %v9423_v25, 16  ;;  %4992 = vst [vmem:[#allocation2 + $0xc] sm:$0xf] %v4607_v10 }
 0x346   : > { %v4406_v36 = vsel %vm13463_vm4, %v3721_v56, 0.0  ;;  %v4409_v48 = vsel %vm13472_vm1, %v3724_v23, 0.0  ;;  %v3686_v5 = vadd.f32 %v13314_v52, %v3514_v14  ;;  %v3691_v55 = vadd.f32 %v10174_v3, %v13314_v52  ;;  %v3530_v26 = vpop.f32.mrb[11].mxu0 }
 0x347   : > { %vm15384_vm12 = vnez %v15383_v17  ;;  %v4617_v42 = vsel %vm13513_vm9, %v4608_v31, %v4616_v0  ;;  %v4652_v25 = vrot.slane %v4650_v18, 6  ;;  %v4655_v49 = vrot.slane %v4653_v43, 7 }
 0x348   : > { %v15387_v27 = vsel %vm15384_vm12, %v15385_v7, %v15386_v38  ;;  %v9421_v47 = vpack.c.bf16 %v4406_v36, %v4406_v36  ;;  %4993 = vst [vmem:[#allocation2 + $0x10] sm:$0xf] %v4617_v42  ;;  %v9424_v14 = vpack.c.bf16 %v4409_v48, %v4409_v48  ;;  %v3722_v16 = vmax.f32 %v3686_v5, 0.0  ;;  %v15390_v5 = vld [vmem:[#allocation31_spill] sm:$0xff] }
 0x349   : > { %vm13551_vm0 = vcmp.lt.s32.totalorder %v15387_v27, 16  ;;  %v3727_v56 = vmax.f32 %v3691_v55, 0.0  ;;  %v3689_v23 = vadd.f32 %v13314_v52, %v3527_v22  ;;  %v4656_v3 = vor.u32 %v4655_v49, %v4652_v25  ;;  %v15392_v22 = vld [vmem:[#allocation23_spill] sm:$0xff]  ;;  %v15393_v55 = vld [vmem:[#allocation18_spill] sm:$0xff] }
 0x34a   : > { %v4630_v10 = vshrl.u32 %v9421_v47, 16  ;;  %v4633_v17 = vshll.u32 %v9421_v47, 16  ;;  %v3692_v7 = vadd.f32 %v10175_v19, %v13314_v52  ;;  %v4660_v38 = vshrl.u32 %v9424_v14, 16 }
 0x34b   : > { %v4663_v27 = vshll.u32 %v9424_v14, 16  ;;  %v4407_v0 = vsel %vm13492_vm14, %v3722_v16, 0.0  ;;  %v4412_v31 = vsel %vm13501_vm3, %v3727_v56, 0.0  ;;  %v4658_v18 = vrot.slane %v4656_v3, 4  ;;  %v10178_v14 = vpop.f32.mrb[12].mxu0  ;;  %v15399_v16 = vld [vmem:[#allocation26_spill] sm:$0xff] }
 0x34c   : > { %v4632_v43 = vrot.slane %v4630_v10, 6  ;;  %v4635_v36 = vrot.slane %v4633_v17, 7  ;;  %v9422_v48 = vpack.c.bf16 %v4407_v0, %v4407_v0  ;;  %vm15391_vm2 = vnez %v15390_v5  ;;  %v15400_v56 = vld [vmem:[#allocation19_spill] sm:$0xff] }
 0x34d   : > { %v15394_v42 = vsel %vm15391_vm2, %v15392_v22, %v15393_v55  ;;  %v4662_v19 = vrot.slane %v4660_v38, 6  ;;  %v4665_v49 = vrot.slane %v4663_v27, 7  ;;  %v9427_v53 = vpack.c.bf16 %v4412_v31, %v4412_v31  ;;  %v15406_v38 = vld [vmem:[#allocation30_spill] sm:$0xff]  ;;  %v15407_v27 = vld [vmem:[#allocation21_spill] sm:$0xff]  ;;  %v15433_v31 = vld [vmem:[#allocation39_spill] sm:$0xff] }
 0x34e   : > { %vm13568_vm4 = vcmp.lt.s32.totalorder %v15394_v42, 16  ;;  %v3725_v47 = vmax.f32 %v3689_v23, 0.0  ;;  %vm15398_vm1 = vnez %v15397_v59  ;;  %v4636_v0 = vor.u32 %v4635_v36, %v4632_v43  ;;  %v3543_v42 = vpop.f32.mrb[13].mxu0 }
 0x34f   : > { %v15401_v10 = vsel %vm15398_vm1, %v15399_v16, %v15400_v56  ;;  %v4640_v5 = vshrl.u32 %v9422_v48, 16  ;;  %v4643_v22 = vshll.u32 %v9422_v48, 16  ;;  %v3728_v55 = vmax.f32 %v3692_v7, 0.0  ;;  %v10179_v43 = vpop.f32.mrb[14].mxu0 }
 0x350   : > { %vm13577_vm14 = vcmp.lt.s32.totalorder %v15401_v10, 16  ;;  %vm15405_vm8 = vnez %v15404_v39  ;;  %v4666_v59 = vor.u32 %v4665_v49, %v4662_v19  ;;  %v4690_v16 = vshrl.u32 %v9427_v53, 16  ;;  %v3546_v60 = vpop.f32.mrb[15].mxu0 }
 0x351   : > { %v15408_v23 = vsel %vm15405_vm8, %v15406_v38, %v15407_v27  ;;  %v4693_v56 = vshll.u32 %v9427_v53, 16  ;;  %v4410_v10 = vsel %vm13530_vm11, %v3725_v47, 0.0  ;;  %v4637_v7 = vsel %vm13513_vm9, %v4628_v51, %v4636_v0 }
 0x352   : > { %vm13586_vm3 = vcmp.lt.s32.totalorder %v15408_v23, 16  ;;  %v4638_v36 = vrot.slane %v4636_v0, 4  ;;  %v4642_v48 = vrot.slane %v4640_v5, 6  ;;  %v4645_v39 = vrot.slane %v4643_v22, 7  ;;  %4995 = vst [vmem:[#allocation2 + $0x18] sm:$0xf] %v4637_v7 }
 0x353   : > { %v4667_v38 = vsel %vm13513_vm9, %v4658_v18, %v4666_v59  ;;  %v4668_v27 = vrot.slane %v4666_v59, 4  ;;  %v4692_v23 = vrot.slane %v4690_v16, 6  ;;  %v4695_v19 = vrot.slane %v4693_v56, 7  ;;  %v15411_v7 = vld [vmem:[#allocation35_spill] sm:$0xff]  ;;  %v15413_v18 = vld [vmem:[#allocation34_spill] sm:$0xff]  ;;  %v15414_v59 = vld [vmem:[#allocation24_spill] sm:$0xff] }
 0x354   : > { %4998 = vst [vmem:[#allocation2 + $0x24] sm:$0xf] %v4667_v38  ;;  %v4646_v49 = vor.u32 %v4645_v39, %v4642_v48  ;;  %v9425_v53 = vpack.c.bf16 %v4410_v10, %v4410_v10  ;;  %v4413_v4 = vsel %vm13551_vm0, %v3728_v55, 0.0  ;;  %v3690_v47 = vadd.f32 %v13314_v52, %v3530_v26  ;;  %v15418_v48 = vld [vmem:[#allocation37_spill] sm:$0xff] }
 0x355   : > { %v13599_v51 = vor.u32 %v4695_v19, %v4692_v23  ;;  %v9428_v0 = vpack.c.bf16 %v4413_v4, %v4413_v4  ;;  %v3695_v5 = vadd.f32 %v10178_v14, %v13314_v52  ;;  %v3693_v22 = vadd.f32 %v13314_v52, %v3543_v42  ;;  %v15420_v14 = vld [vmem:[#allocation36_spill] sm:$0xff]  ;;  %v15421_v39 = vld [vmem:[#allocation25_spill] sm:$0xff] }
 0x356   : > { %vm15412_vm10 = vnez %v15411_v7  ;;  %v4647_v58 = vsel %vm13513_vm9, %v4638_v36, %v4646_v49  ;;  %v4648_v26 = vrot.slane %v4646_v49, 4  ;;  %v4670_v55 = vshrl.u32 %v9425_v53, 16 }
 0x357   : > { %v15415_v16 = vsel %vm15412_vm10, %v15413_v18, %v15414_v59  ;;  %v4673_v10 = vshll.u32 %v9425_v53, 16  ;;  %vm15419_vm11 = vnez %v15418_v48  ;;  %4996 = vst [vmem:[#allocation2 + $0x1c] sm:$0xf] %v4647_v58  ;;  %v4698_v23 = vrot.slane %v13599_v51, 4  ;;  %v10182_v18 = vpop.f32.mrb[16].mxu0 }
 0x358   : > { %vm13608_vm13 = vcmp.lt.s32.totalorder %v15415_v16, 16  ;;  %v15422_v42 = vsel %vm15419_vm11, %v15420_v14, %v15421_v39  ;;  %v4700_v19 = vshrl.u32 %v9428_v0, 16  ;;  %v4703_v4 = vshll.u32 %v9428_v0, 16  ;;  %v3559_v16 = vpop.f32.mrb[17].mxu0  ;;  %v15428_v0 = vld [vmem:[#allocation28_spill] sm:$0xff] }
 0x359   : > { %vm13619_vm12 = vcmp.lt.s32.totalorder %v15422_v42, 16  ;;  %v3726_v7 = vmax.f32 %v3690_v47, 0.0  ;;  %v4657_v36 = vsel %vm13513_vm9, %v4648_v26, %v4656_v3  ;;  %v4672_v49 = vrot.slane %v4670_v55, 6  ;;  %v15425_v42 = vld [vmem:[#allocation40_spill] sm:$0xff]  ;;  %v13637_v3 = vpop.f32.mrb[18].mxu0 }
 0x35a   : > { %v4675_v53 = vrot.slane %v4673_v10, 7  ;;  %v3731_v59 = vmax.f32 %v3695_v5, 0.0  ;;  %4997 = vst [vmem:[#allocation2 + $0x20] sm:$0xf] %v4657_v36  ;;  %v4702_v48 = vrot.slane %v4700_v19, 6  ;;  %v4705_v14 = vrot.slane %v4703_v4, 7 }
 0x35b   : > { %v4411_v39 = vsel %vm13568_vm4, %v3726_v7, 0.0  ;;  %v3729_v58 = vmax.f32 %v3693_v22, 0.0  ;;  %vm15426_vm0 = vnez %v15425_v42  ;;  %v3696_v25 = vadd.f32 %v10179_v43, %v13314_v52  ;;  %v13642_v10 = vpop.f32.mrb[19].mxu0 }
 0x35c   : > { %v15429_v47 = vsel %vm15426_vm0, %v15427_v41, %v15428_v0  ;;  %v4676_v5 = vor.u32 %v4675_v53, %v4672_v49  ;;  %v9426_v26 = vpack.c.bf16 %v4411_v39, %v4411_v39  ;;  %v4416_v55 = vsel %vm13577_vm14, %v3731_v59, 0.0 }
 0x35d   : > { %vm13633_vm2 = vcmp.lt.s32.totalorder %v15429_v47, 16  ;;  %v4706_v22 = vor.u32 %v4705_v14, %v4702_v48  ;;  %v9431_v19 = vpack.c.bf16 %v4416_v55, %v4416_v55  ;;  %v4414_v41 = vsel %vm13586_vm3, %v3729_v58, 0.0 }
 0x35e   : > { %v3694_v4 = vadd.f32 %v13314_v52, %v3546_v60  ;;  %v4677_v7 = vsel %vm13513_vm9, %v4668_v27, %v4676_v5  ;;  %v4678_v36 = vrot.slane %v4676_v5, 4  ;;  %v4680_v49 = vshrl.u32 %v9426_v26, 16 }
 0x35f   : > { %v4683_v53 = vshll.u32 %v9426_v26, 16  ;;  %4999 = vst [vmem:[#allocation2 + $0x28] sm:$0xf] %v4677_v7  ;;  %v4707_v17 = vsel %vm13513_vm9, %v4698_v23, %v4706_v22  ;;  %v4708_v43 = vrot.slane %v4706_v22, 4  ;;  %v4730_v59 = vshrl.u32 %v9431_v19, 16  ;;  %v13661_v26 = vpop.f32.mrb[20].mxu0 }
 0x360   : > { %v4733_v39 = vshll.u32 %v9431_v19, 16  ;;  %vm15432_vm4 = vnez %v15226_v28  ;;  %5002 = vst [vmem:[#allocation2 + $0x34] sm:$0xf] %v4707_v17  ;;  %v4682_v27 = vrot.slane %v4680_v49, 6  ;;  %v9429_v58 = vpack.c.bf16 %v4414_v41, %v4414_v41  ;;  %v13665_v19 = vpop.f32.mrb[21].mxu0 }
 0x361   : > { %v15434_v48 = vsel %vm15432_vm4, %v12945_v21, %v15433_v31  ;;  %v4685_v14 = vrot.slane %v4683_v53, 7  ;;  %v3732_v42 = vmax.f32 %v3696_v25, 0.0  ;;  %v4732_v0 = vrot.slane %v4730_v59, 6 }
 0x362   : > { %vm13656_vm1 = vcmp.lt.s32.totalorder %v15434_v48, 16  ;;  %v4735_v47 = vrot.slane %v4733_v39, 7  ;;  %v3730_v23 = vmax.f32 %v3694_v4, 0.0  ;;  %v3699_v5 = vadd.f32 %v10182_v18, %v13314_v52  ;;  %v13671_v4 = vpop.f32.mrb[22].mxu0 }
 0x363   : > { %v4686_v28 = vor.u32 %v4685_v14, %v4682_v27  ;;  %v4710_v55 = vshrl.u32 %v9429_v58, 16  ;;  %v4713_v22 = vshll.u32 %v9429_v58, 16  ;;  %v4417_v21 = vsel %vm13608_vm13, %v3732_v42, 0.0  ;;  %v13675_v39 = vpop.f32.mrb[23].mxu0  ;;  %v11423_v14 = vld [vmem:[#allocation2 + $0x8] sm:$0xff]  }
 0x364   : > { %v13667_v7 = vor.u32 %v4735_v47, %v4732_v0  ;;  %v9432_v49 = vpack.c.bf16 %v4417_v21, %v4417_v21  ;;  %v4415_v25 = vsel %vm13619_vm12, %v3730_v23, 0.0  ;;  %v3735_v41 = vmax.f32 %v3699_v5, 0.0 }
 0x365   : > { %v4687_v18 = vsel %vm13513_vm9, %v4678_v36, %v4686_v28  ;;  %v4688_v53 = vrot.slane %v4686_v28, 4  ;;  %v4712_v17 = vrot.slane %v4710_v55, 6  ;;  %v4715_v59 = vrot.slane %v4713_v22, 7 }
 0x366   : > { %5000 = vst [vmem:[#allocation2 + $0x2c] sm:$0xf] %v4687_v18  ;;  %v4738_v56 = vrot.slane %v13667_v7, 4  ;;  %v4740_v31 = vshrl.u32 %v9432_v49, 16  ;;  %v4743_v48 = vshll.u32 %v9432_v49, 16  ;;  %v9430_v27 = vpack.c.bf16 %v4415_v25, %v4415_v25 }
 0x367   : > { %vm15437_vm14 = vnez %v15230_v1  ;;  %v4697_v36 = vsel %vm13513_vm9, %v4688_v53, %v13599_v51  ;;  %v4716_v42 = vor.u32 %v4715_v59, %v4712_v17  ;;  %v4420_v0 = vsel %vm13633_vm2, %v3735_v41, 0.0  ;;  %v15445_v41 = vld [vmem:[#allocation42_spill] sm:$0xff]  ;;  %v13713_v53 = vpop.f32.mrb[24].mxu0 }
 0x368   : > { %v15438_v38 = vsel %vm15437_vm14, %v12957_v32, %v12912_v9  ;;  %v3697_v47 = vadd.f32 %v13314_v52, %v3559_v16  ;;  %5001 = vst [vmem:[#allocation2 + $0x30] sm:$0xf] %v4697_v36  ;;  %v4742_v23 = vrot.slane %v4740_v31, 6  ;;  %v4745_v1 = vrot.slane %v4743_v48, 7  ;;  %v13717_v59 = vpop.f32.mrb[25].mxu0 }
 0x369   : > { %vm13683_vm8 = vcmp.lt.s32.totalorder %v15438_v38, 16  ;;  %v4720_v5 = vshrl.u32 %v9430_v27, 16  ;;  %v4723_v28 = vshll.u32 %v9430_v27, 16  ;;  %v4717_v9 = vsel %vm13513_vm9, %v4708_v43, %v4716_v42  ;;  %v13730_v60 = vpop.f32.mrb[26].mxu0 }
 0x36a   : > { %v4718_v32 = vrot.slane %v4716_v42, 4  ;;  %v9435_v55 = vpack.c.bf16 %v4420_v0, %v4420_v0  ;;  %v3733_v22 = vmax.f32 %v3697_v47, 0.0  ;;  %5003 = vst [vmem:[#allocation2 + $0x38] sm:$0xf] %v4717_v9  ;;  %v4746_v21 = vor.u32 %v4745_v1, %v4742_v23  ;;  %v11424_v0 = vld [vmem:[#allocation2 + $0x10] sm:$0xff]  }
 0x36b   : > { %v4722_v51 = vrot.slane %v4720_v5, 6  ;;  %v4725_v49 = vrot.slane %v4723_v28, 7  ;;  %v5203_v25 = vshll.u32 %v11423_v14, 16  ;;  %vm15441_vm3 = vnez %v15234_v62  ;;  %v15454_v5 = vld [vmem:[#allocation41_spill] sm:$0xff] }
 0x36c   : > { %v15442_v30 = vsel %vm15441_vm3, %v12969_v13, %v12932_v15  ;;  %vm15446_vm13 = vnez %v15445_v41  ;;  %v4770_v17 = vshrl.u32 %v9435_v55, 16  ;;  %v4773_v62 = vshll.u32 %v9435_v55, 16 }
 0x36d   : > { %vm13700_vm10 = vcmp.lt.s32.totalorder %v15442_v30, 16  ;;  %v15447_v43 = vsel %vm15446_vm13, %v12990_v2, %v12953_v12  ;;  %v4418_v13 = vsel %vm13656_vm1, %v3733_v22, 0.0  ;;  %v5207_v15 = vshrl.u32 %v11423_v14, 16  ;;  %v13742_v22 = vld [vmem:[#allocation2 + $0x18] sm:$0xff]  }
 0x36e   : > { %vm13709_vm11 = vcmp.lt.s32.totalorder %v15447_v43, 16  ;;  %v4747_v31 = vsel %vm13513_vm9, %v4738_v56, %v4746_v21  ;;  %v4748_v48 = vrot.slane %v4746_v21, 4  ;;  %v4726_v27 = vor.u32 %v4725_v49, %v4722_v51 }
 0x36f   : > { %v9433_v2 = vpack.c.bf16 %v4418_v13, %v4418_v13  ;;  %vm15450_vm12 = vnez %v15243_v63  ;;  %5006 = vst [vmem:[#allocation2 + $0x44] sm:$0xf] %v4747_v31  ;;  %v4772_v14 = vrot.slane %v4770_v17, 6  ;;  %v4775_v36 = vrot.slane %v4773_v62, 7 }
 0x370   : > { %v15451_v12 = vsel %vm15450_vm12, %v13098_v45, %v12975_v37  ;;  %v5205_v42 = vrot.slane %v5203_v25, 1  ;;  %v3700_v56 = vadd.f32 %v13637_v3, %v13314_v52  ;;  %v4727_v63 = vsel %vm13513_vm9, %v4718_v32, %v4726_v27  ;;  %v13736_v37 = vpop.f32.mrb[27].mxu0 }
 0x371   : > { %vm13726_vm0 = vcmp.lt.s32.totalorder %v15451_v12, 16  ;;  %v4728_v47 = vrot.slane %v4726_v27, 4  ;;  %v4750_v23 = vshrl.u32 %v9433_v2, 16  ;;  %v4753_v45 = vshll.u32 %v9433_v2, 16  ;;  %5004 = vst [vmem:[#allocation2 + $0x3c] sm:$0xf] %v4727_v63 }
 0x372   : > { %v13738_v1 = vor.u32 %v4775_v36, %v4772_v14  ;;  %vm15455_vm2 = vsmask.f32 7424  ;;  %v5209_v9 = vor.u32 %v5207_v15, %v5205_v42  ;;  %v3736_v55 = vmax.f32 %v3700_v56, 0.0  ;;  %v13767_v13 = vpop.f32.mrb[28].mxu0 }
 0x373   : > { %v5206_v28 = vsel %vm15455_vm2, %v15454_v5, %v5205_v42  ;;  %v4737_v3 = vsel %vm13513_vm9, %v4728_v47, %v13667_v7  ;;  %v4752_v32 = vrot.slane %v4750_v23, 6  ;;  %v4755_v21 = vrot.slane %v4753_v45, 7  ;;  %v13770_v27 = vpop.f32.mrb[29].mxu0  ;;  %vm15460_vm14 = vmmov %vm15455_vm2 }
 0x374   : > { %10216 = vmatprep.mubr.bf16.mxu0 %v5206_v28  ;;  %v3698_v51 = vadd.f32 %v13314_v52, %v13642_v10  ;;  %5005 = vst [vmem:[#allocation2 + $0x40] sm:$0xf] %v4737_v3  ;;  %v4778_v49 = vrot.slane %v13738_v1, 4  ;;  %v4421_v25 = vsel %vm13683_vm8, %v3736_v55, 0.0  ;;  %v5211_v30 = vshll.u32 %v11424_v0, 16  ;;  %v13776_v14 = vpop.f32.mrb[30].mxu0 }
 0x375   : > { %v3703_v41 = vadd.f32 %v13661_v26, %v13314_v52  ;;  %vm15456_vm4 = vnez %v15246_v11  ;;  %v13763_v10 = vor.u32 %v4755_v21, %v4752_v32  ;;  %v9436_v17 = vpack.c.bf16 %v4421_v25, %v4421_v25  ;;  %v13792_v63 = vpop.f32.mrb[31].mxu0 }
 0x376   : > { %v15457_v7 = vsel %vm15456_vm4, %v13101_v54, %v13016_v24  ;;  %v3734_v62 = vmax.f32 %v3698_v51, 0.0  ;;  %v3701_v58 = vadd.f32 %v13314_v52, %v13665_v19  ;;  %v5213_v15 = vrot.slane %v5211_v30, 1 }
 0x377   : > { %vm13759_vm1 = vcmp.lt.s32.totalorder %v15457_v7, 16  ;;  %v3739_v26 = vmax.f32 %v3703_v41, 0.0  ;;  %v5215_v31 = vshrl.u32 %v11424_v0, 16  ;;  %v5219_v11 = vshll.u32 %v13742_v22, 16 }
 0x378   : > { %v4757_v54 = vsel %vm13513_vm9, %v4748_v48, %v13763_v10  ;;  %v4758_v24 = vrot.slane %v13763_v10, 4  ;;  %v4780_v2 = vshrl.u32 %v9436_v17, 16  ;;  %v4783_v12 = vshll.u32 %v9436_v17, 16  ;;  %v13810_v10 = vpop.f32.mrb[32].mxu0 }
 0x379   : > { %5007 = vst [vmem:[#allocation2 + $0x48] sm:$0xf] %v4757_v54  ;;  %v4419_v19 = vsel %vm13700_vm10, %v3734_v62, 0.0  ;;  %v5214_v36 = vsel %vm15460_vm14, %v5209_v9, %v5213_v15  ;;  %v4424_v42 = vsel %vm13709_vm11, %v3739_v26, 0.0  ;;  %v3737_v56 = vmax.f32 %v3701_v58, 0.0  ;;  %vm15465_vm10 = vmmov %vm15455_vm2  ;;  %v13818_v26 = vld [vmem:[#allocation2 + $0x20] sm:$0xff]  }
 0x37a   : > { %vm15461_vm8 = vnez %v15252_v20  ;;  %v4782_v47 = vrot.slane %v4780_v2, 6  ;;  %v4785_v16 = vrot.slane %v4783_v12, 7  ;;  %v9434_v23 = vpack.c.bf16 %v4419_v19, %v4419_v19  ;;  %10217 = vmatmul.mubr.bf16.vlgmr.msra.gmra.mrb[36].mxu0 %v5214_v36  ;;  %vm15484_vm14 = vmmov %vm15465_vm10 }
 0x37b   : > { %v15462_v48 = vsel %vm15461_vm8, %v13155_v33, %v13104_v35  ;;  %v9439_v45 = vpack.c.bf16 %v4424_v42, %v4424_v42  ;;  %v4422_v18 = vsel %vm13726_vm0, %v3737_v56, 0.0  ;;  %v5217_v5 = vor.u32 %v5215_v31, %v5213_v15  ;;  %v13812_v15 = vpop.f32.mrb[33].mxu0 }
 0x37c   : > { %vm13788_vm3 = vcmp.lt.s32.totalorder %v15462_v48, 16  ;;  %v5221_v28 = vrot.slane %v5219_v11, 1  ;;  %v3704_v20 = vadd.f32 %v13671_v4, %v13314_v52  ;;  %v4786_v35 = vor.u32 %v4785_v16, %v4782_v47  ;;  %v13830_v2 = vpop.f32.mrb[34].mxu0  ;;  %v11435_v48 = vld [vmem:[%s15034_s3 + $0x18] sm:$0xff]  }
 0x37d   : > { %v4760_v33 = vshrl.u32 %v9434_v23, 16  ;;  %v4763_v9 = vshll.u32 %v9434_v23, 16  ;;  %v4810_v55 = vshrl.u32 %v9439_v45, 16  ;;  %v4813_v3 = vshll.u32 %v9439_v45, 16  ;;  %v13834_v36 = vpop.f32.mrb[35].mxu0 }
 0x37e   : > { %v9437_v32 = vpack.c.bf16 %v4422_v18, %v4422_v18  ;;  %v5222_v21 = vsel %vm15465_vm10, %v5217_v5, %v5221_v28  ;;  %v3740_v51 = vmax.f32 %v3704_v20, 0.0  ;;  %vm15466_vm13 = vnez %v15258_v50  ;;  %v13848_v18 = vld [vmem:[#allocation2 + $0x28] sm:$0xff]  }
 0x37f   : > { %v15467_v38 = vsel %vm15466_vm13, %v13169_v8, %v13136_v40  ;;  %v4787_v4 = vsel %vm13513_vm9, %v4778_v49, %v4786_v35  ;;  %v4788_v30 = vrot.slane %v4786_v35, 4  ;;  %v4762_v41 = vrot.slane %v4760_v33, 6  ;;  %10220 = vmatprep.mubr.bf16.mxu1 %v5222_v21 }
 0x380   : > { %vm13804_vm11 = vcmp.lt.s32.totalorder %v15467_v38, 16  ;;  %v4765_v7 = vrot.slane %v4763_v9, 7  ;;  %5010 = vst [vmem:[#allocation2 + $0x54] sm:$0xf] %v4787_v4  ;;  %v4812_v17 = vrot.slane %v4810_v55, 6  ;;  %v4815_v62 = vrot.slane %v4813_v3, 7 }
 0x381   : > { %v4790_v50 = vshrl.u32 %v9437_v32, 16  ;;  %v4793_v58 = vshll.u32 %v9437_v32, 16  ;;  %v4425_v8 = vsel %vm13759_vm1, %v3740_v51, 0.0  ;;  %v3702_v49 = vadd.f32 %v13314_v52, %v13675_v39  ;;  %v11429_v9 = vld [vmem:[%s15034_s3 + $0x8] sm:$0xff]  }
 0x382   : > { %v4766_v40 = vor.u32 %v4765_v7, %v4762_v41  ;;  %v5223_v31 = vshrl.u32 %v13742_v22, 16  ;;  %vm15470_vm12 = vnez %v15266_v46  ;;  %v13832_v43 = vor.u32 %v4815_v62, %v4812_v17 }
 0x383   : > { %v15471_v11 = vsel %vm15470_vm12, %v13185_v34, %v13150_v29  ;;  %v4792_v12 = vrot.slane %v4790_v50, 6  ;;  %v4795_v19 = vrot.slane %v4793_v58, 7  ;;  %v9440_v39 = vpack.c.bf16 %v4425_v8, %v4425_v8  ;;  %v15475_v29 = vld [vmem:[#allocation43_spill] sm:$0xff] }
 0x384   : > { %vm13826_vm0 = vcmp.lt.s32.totalorder %v15471_v11, 16  ;;  %v4767_v22 = vsel %vm13513_vm9, %v4758_v24, %v4766_v40  ;;  %v4768_v46 = vrot.slane %v4766_v40, 4  ;;  %v3738_v42 = vmax.f32 %v3702_v49, 0.0  ;;  %v11432_v11 = vld [vmem:[%s15034_s3 + $0x10] sm:$0xff]  }
 0x385   : > { %v5225_v56 = vor.u32 %v5223_v31, %v5221_v28  ;;  %vm15474_vm2 = vnez %v15274_v57  ;;  %5008 = vst [vmem:[#allocation2 + $0x4c] sm:$0xf] %v4767_v22  ;;  %v4818_v47 = vrot.slane %v13832_v43, 4  ;;  %v4796_v16 = vor.u32 %v4795_v19, %v4792_v12 }
 0x386   : > { %v15476_v34 = vsel %vm15474_vm2, %v13252_v61, %v15475_v29  ;;  %v4820_v23 = vshrl.u32 %v9440_v39, 16  ;;  %v4823_v45 = vshll.u32 %v9440_v39, 16  ;;  %v4777_v24 = vsel %vm13513_vm9, %v4768_v46, %v13738_v1 }
 0x387   : > { %vm13843_vm4 = vcmp.lt.s32.totalorder %v15476_v34, 16  ;;  %v4423_v57 = vsel %vm13788_vm3, %v3738_v42, 0.0  ;;  %v5227_v61 = vshll.u32 %v13818_v26, 16  ;;  %v3707_v5 = vadd.f32 %v13713_v53, %v13314_v52  ;;  %5009 = vst [vmem:[#allocation2 + $0x50] sm:$0xf] %v4777_v24  ;;  %v15480_v53 = vld [vmem:[#allocation44_spill] sm:$0xff] }
 0x388   : > { %v4797_v28 = vsel %vm13513_vm9, %v4788_v30, %v4796_v16  ;;  %v4798_v20 = vrot.slane %v4796_v16, 4  ;;  %v4822_v35 = vrot.slane %v4820_v23, 6  ;;  %v4825_v33 = vrot.slane %v4823_v45, 7  ;;  %v13898_v34 = vld [vmem:[#allocation2 + $0x30] sm:$0xff]   ;;  %v15487_v16 = vld [vmem:[#allocation55_spill] sm:$0xff] }
 0x389   : > { %5011 = vst [vmem:[#allocation2 + $0x58] sm:$0xf] %v4797_v28  ;;  %v9438_v1 = vpack.c.bf16 %v4423_v57, %v4423_v57  ;;  %v5229_v0 = vrot.slane %v5227_v61, 1  ;;  %v3743_v55 = vmax.f32 %v3707_v5, 0.0  ;;  %v3705_v3 = vadd.f32 %v13314_v52, %v13717_v59  ;;  %v15488_v23 = vld [vmem:[#allocation45_spill] sm:$0xff]  ;;  %v15494_v61 = vld [vmem:[#allocation46_spill] sm:$0xff] }
 0x38a   : > { %v15481_v21 = vsel %vm13276_vm5, %v13317_v44, %v15480_v53  ;;  %v13874_v38 = vor.u32 %v4825_v33, %v4822_v35  ;;  %v5231_v4 = vshrl.u32 %v13818_v26, 16  ;;  %v5235_v30 = vshll.u32 %v13848_v18, 16  ;;  %vm15485_vm5 = vmmov %vm15465_vm10  ;;  %v15493_v57 = vld [vmem:[#allocation57_spill] sm:$0xff] }
 0x38b   : > { %vm13870_vm1 = vcmp.lt.s32.totalorder %v15481_v21, 16  ;;  %v3708_v41 = vadd.f32 %v13730_v60, %v13314_v52  ;;  %v4800_v7 = vshrl.u32 %v9438_v1, 16  ;;  %v4803_v59 = vshll.u32 %v9438_v1, 16  ;;  %v11548_v60 = vld [vmem:[%s15034_s3] sm:$0xff]   ;;  %vm15526_vm2 = vmmov %vm15485_vm5 }
 0x38c   : > { %v5230_v17 = vsel %vm15484_vm14, %v5225_v56, %v5229_v0  ;;  %v4428_v44 = vsel %vm13804_vm11, %v3743_v55, 0.0  ;;  %v4827_v62 = vsel %vm13513_vm9, %v4818_v47, %v13874_v38  ;;  %v4828_v50 = vrot.slane %v13874_v38, 4  ;;  %vm15534_vm14 = vmmov %vm15526_vm2  ;;  %v11447_v47 = vld [vmem:[%s15034_s3 + $0x38] sm:$0xff]  }
 0x38d   : > { %10221 = vmatmul.mubr.bf16.vlgmr.msra.gmra.mrb[0].mxu1 %v5230_v17  ;;  %v9443_v58 = vpack.c.bf16 %v4428_v44, %v4428_v44  ;;  %v3741_v40 = vmax.f32 %v3705_v3, 0.0  ;;  %5014 = vst [vmem:[#allocation2 + $0x64] sm:$0xf] %v4827_v62  ;;  %v4802_v8 = vrot.slane %v4800_v7, 6  ;;  %v4805_v49 = vrot.slane %v4803_v59, 7 }
 0x38e   : > { %10253 = vmatpush3.bf16.msra.mxu1 %v11548_v60  ;;  %v5233_v31 = vor.u32 %v5231_v4, %v5229_v0  ;;  %v5237_v25 = vrot.slane %v5235_v30, 1  ;;  %v3744_v22 = vmax.f32 %v3708_v41, 0.0  ;;  %v3706_v29 = vadd.f32 %v13314_v52, %v13736_v37 }
 0x38f   : > { %v4850_v12 = vshrl.u32 %v9443_v58, 16  ;;  %v4853_v19 = vshll.u32 %v9443_v58, 16  ;;  %v4426_v39 = vsel %vm13826_vm0, %v3741_v40, 0.0  ;;  %10254 = vmatprep.subr.bf16.mxu1 %v11429_v9  ;;  %v4806_v46 = vor.u32 %v4805_v49, %v4802_v8  ;;  %v13938_v8 = vld [vmem:[%s15033_s2] ss:$0 sm:$0xff]  ;;  %v13942_v49 = vld [vmem:[#allocation2 + $0x38] sm:$0xff]  }
 0x390   : > { %v9441_v42 = vpack.c.bf16 %v4426_v39, %v4426_v39  ;;  %v5238_v56 = vsel %vm15485_vm5, %v5233_v31, %v5237_v25  ;;  %v15489_v45 = vsel %vm13302_vm6, %v15487_v16, %v15488_v23  ;;  %v15495_v5 = vsel %vm13326_vm7, %v15493_v57, %v15494_v61  ;;  %v15499_v31 = vld [vmem:[#allocation59_spill] sm:$0xff] }
 0x391   : > { %vm13905_vm8 = vcmp.lt.s32.totalorder %v15489_v45, 16  ;;  %vm13914_vm3 = vcmp.lt.s32.totalorder %v15495_v5, 16  ;;  %v4852_v52 = vrot.slane %v4850_v12, 6  ;;  %v4855_v37 = vrot.slane %v4853_v19, 7  ;;  %10224 = vmatprep.mubr.bf16.mxu1 %v5238_v56  ;;  %v15507_v56 = vld [vmem:[#allocation48_spill] sm:$0xff]  ;;  %v11438_v45 = vld [vmem:[%s15034_s3 + $0x20] sm:$0xff]  }
 0x392   : > { %v4429_v35 = vsel %vm13843_vm4, %v3744_v22, 0.0  ;;  %v5239_v33 = vshrl.u32 %v13848_v18, 16  ;;  %v4807_v1 = vsel %vm13513_vm9, %v4798_v20, %v4806_v46  ;;  %v4808_v0 = vrot.slane %v4806_v46, 4  ;;  %10255 = vmatpush3.bf16.msra.mxu1 %v11429_v9 }
 0x393   : > { %v4830_v55 = vshrl.u32 %v9441_v42, 16  ;;  %v4833_v3 = vshll.u32 %v9441_v42, 16  ;;  %5012 = vst [vmem:[#allocation2 + $0x5c] sm:$0xf] %v4807_v1  ;;  %v13923_v32 = vor.u32 %v4855_v37, %v4852_v52  ;;  %v9444_v53 = vpack.c.bf16 %v4429_v35, %v4429_v35  ;;  %10256 = vmatprep.subr.bf16.mxu1 %v11432_v11  ;;  %v15506_v42 = vld [vmem:[#allocation61_spill] sm:$0xff]  ;;  %v13975_v52 = vld [vmem:[#allocation2 + $0x40] sm:$0xff]  }
 0x394   : > { %v3742_v21 = vmax.f32 %v3706_v29, 0.0  ;;  %v5241_v4 = vor.u32 %v5239_v33, %v5237_v25  ;;  %v4817_v30 = vsel %vm13513_vm9, %v4808_v0, %v13832_v43  ;;  %v5243_v7 = vshll.u32 %v13898_v34, 16  ;;  %v15500_v25 = vld [vmem:[#allocation47_spill] sm:$0xff] }
 0x395   : > { %v4832_v20 = vrot.slane %v4830_v55, 6  ;;  %v4835_v41 = vrot.slane %v4833_v3, 7  ;;  %5013 = vst [vmem:[#allocation2 + $0x60] sm:$0xf] %v4817_v30  ;;  %v4858_v9 = vrot.slane %v13923_v32, 4  ;;  %v4860_v59 = vshrl.u32 %v9444_v53, 16 }
 0x396   : > { %v4863_v17 = vshll.u32 %v9444_v53, 16  ;;  %v4427_v44 = vsel %vm13870_vm1, %v3742_v21, 0.0  ;;  %v5245_v40 = vrot.slane %v5243_v7, 1  ;;  %v3711_v43 = vadd.f32 %v13938_v8, %v13767_v13  ;;  %10257 = vmatpush3.bf16.msra.mxu1 %v11432_v11  ;;  %v15504_v13 = vld [vmem:[#allocation60_spill] sm:$0xff]  ;;  %v15514_v7 = vld [vmem:[#allocation63_spill] sm:$0xff] }
 0x397   : > { %v4836_v62 = vor.u32 %v4835_v41, %v4832_v20  ;;  %v9442_v58 = vpack.c.bf16 %v4427_v44, %v4427_v44  ;;  %v15501_v12 = vsel %vm13343_vm15, %v15499_v31, %v15500_v25  ;;  %v4862_v19 = vrot.slane %v4860_v59, 6  ;;  %10258 = vmatprep.subr.bf16.mxu1 %v11435_v48  ;;  %vm15511_vm15 = vmmov %vm15485_vm5  ;;  %v11441_v30 = vld [vmem:[%s15034_s3 + $0x28] sm:$0xff]   ;;  %v15512_v41 = vld [vmem:[#allocation62_spill] sm:$0xff] }
 0x398   : > { %vm13949_vm7 = vcmp.lt.s32.totalorder %v15501_v12, 16  ;;  %v4865_v39 = vrot.slane %v4863_v17, 7  ;;  %v3709_v22 = vadd.f32 %v13938_v8, %v13770_v27  ;;  %v5247_v46 = vshrl.u32 %v13898_v34, 16  ;;  %v15519_v44 = vld [vmem:[#allocation64_spill] sm:$0xff] }
 0x399   : > { %vm15505_vm6 = vnez %v15504_v13  ;;  %v4837_v11 = vsel %vm13513_vm9, %v4828_v50, %v4836_v62  ;;  %v4838_v16 = vrot.slane %v4836_v62, 4  ;;  %v4840_v23 = vshrl.u32 %v9442_v58, 16  ;;  %v15521_v62 = vld [vmem:[#allocation65_spill] sm:$0xff] }
 0x39a   : > { %v15508_v29 = vsel %vm15505_vm6, %v15506_v42, %v15507_v56  ;;  %v4843_v27 = vshll.u32 %v9442_v58, 16  ;;  %5015 = vst [vmem:[#allocation2 + $0x68] sm:$0xf] %v4837_v11  ;;  %v13972_v54 = vor.u32 %v4865_v39, %v4862_v19  ;;  %v5246_v57 = vsel %vm15511_vm15, %v5241_v4, %v5245_v40  ;;  %10259 = vmatpush3.bf16.msra.mxu1 %v11435_v48  ;;  %v11444_v56 = vld [vmem:[%s15034_s3 + $0x30] sm:$0xff]  }
 0x39b   : > { %vm13961_vm10 = vcmp.lt.s32.totalorder %v15508_v29, 16  ;;  %v3747_v61 = vmax.f32 %v3711_v43, 0.0  ;;  %v3745_v5 = vmax.f32 %v3709_v22, 0.0  ;;  %v4842_v38 = vrot.slane %v4840_v23, 6  ;;  %10225 = vmatmul.mubr.bf16.gmra.mrb[4].mxu1 %v5246_v57  ;;  %10260 = vmatprep.subr.bf16.mxu1 %v11438_v45 }
 0x39c   : > { %v4845_v37 = vrot.slane %v4843_v27, 7  ;;  %v5249_v50 = vor.u32 %v5247_v46, %v5245_v40  ;;  %v5251_v35 = vshll.u32 %v13942_v49, 16  ;;  %v4867_v33 = vsel %vm13513_vm9, %v4858_v9, %v13972_v54  ;;  %v15515_v9 = vld [vmem:[#allocation49_spill] sm:$0xff]  ;;  %v15527_v27 = vld [vmem:[#allocation66_spill] sm:$0xff] }
 0x39d   : > { %v4868_v1 = vrot.slane %v13972_v54, 4  ;;  %v4432_v0 = vsel %vm13905_vm8, %v3747_v61, 0.0  ;;  %v4430_v55 = vsel %vm13914_vm3, %v3745_v5, 0.0  ;;  %5018 = vst [vmem:[#allocation2 + $0x74] sm:$0xf] %v4867_v33  ;;  %v3712_v20 = vadd.f32 %v13938_v8, %v13776_v14  ;;  %v15522_v14 = vld [vmem:[#allocation50_spill] sm:$0xff]  ;;  %vm15542_vm3 = vmmov %vm15526_vm2 }
 0x39e   : > { %v4846_v3 = vor.u32 %v4845_v37, %v4842_v38  ;;  %v9447_v53 = vpack.c.bf16 %v4432_v0, %v4432_v0  ;;  %v9445_v21 = vpack.c.bf16 %v4430_v55, %v4430_v55  ;;  %v5253_v4 = vrot.slane %v5251_v35, 1  ;;  %10261 = vmatpush3.bf16.msra.mxu1 %v11438_v45  ;;  %v15529_v45 = vld [vmem:[#allocation67_spill] sm:$0xff] }
 0x39f   : > { %v3710_v24 = vadd.f32 %v13938_v8, %v13792_v63  ;;  %v5255_v28 = vshrl.u32 %v13942_v49, 16  ;;  %v5259_v48 = vshll.u32 %v13975_v52, 16  ;;  %vm15513_vm13 = vnez %v15512_v41  ;;  %10262 = vmatprep.subr.bf16.mxu1 %v11441_v30 }
 0x3a0   : > { %v15516_v59 = vsel %vm15513_vm13, %v15514_v7, %v15515_v9  ;;  %vm15520_vm12 = vnez %v15519_v44  ;;  %v4847_v40 = vsel %vm13513_vm9, %v4838_v16, %v4846_v3  ;;  %v4848_v43 = vrot.slane %v4846_v3, 4  ;;  %v15535_v44 = vld [vmem:[#allocation69_spill] sm:$0xff]  ;;  %vm15548_vm13 = vmmov %vm15526_vm2 }
 0x3a1   : > { %vm14000_vm11 = vcmp.lt.s32.totalorder %v15516_v59, 16  ;;  %v15523_v58 = vsel %vm15520_vm12, %v15521_v62, %v15522_v14  ;;  %v4890_v60 = vshrl.u32 %v9447_v53, 16  ;;  %v4893_v31 = vshll.u32 %v9447_v53, 16  ;;  %5016 = vst [vmem:[#allocation2 + $0x6c] sm:$0xf] %v4847_v40  ;;  %v15537_v62 = vld [vmem:[#allocation68_spill] sm:$0xff]  ;;  %vm15550_vm12 = vmmov %vm15526_vm2 }
 0x3a2   : > { %vm14009_vm0 = vcmp.lt.s32.totalorder %v15523_v58, 16  ;;  %v4870_v25 = vshrl.u32 %v9445_v21, 16  ;;  %v4873_v12 = vshll.u32 %v9445_v21, 16  ;;  %v5254_v19 = vsel %vm15526_vm2, %v5249_v50, %v5253_v4  ;;  %v14035_v50 = vld [vmem:[#allocation2 + $0x48] sm:$0xff]   ;;  %10263 = vmatpush3.bf16.msra.mxu1 %v11441_v30  ;;  %v15538_v14 = vld [vmem:[#allocation54_spill] sm:$0xff] }
 0x3a3   : > { %v3748_v39 = vmax.f32 %v3712_v20, 0.0  ;;  %v4857_v22 = vsel %vm13513_vm9, %v4848_v43, %v13923_v32  ;;  %v4892_v46 = vrot.slane %v4890_v60, 6  ;;  %v4895_v13 = vrot.slane %v4893_v31, 7  ;;  %10228 = vmatprep.mubr.bf16.mxu1 %v5254_v19  ;;  %v15530_v32 = vld [vmem:[#allocation52_spill] sm:$0xff]  ;;  %10264 = vmatprep.subr.bf16.mxu1 %v11444_v56 }
 0x3a4   : > { %v3746_v42 = vmax.f32 %v3710_v24, 0.0  ;;  %5017 = vst [vmem:[#allocation2 + $0x70] sm:$0xf] %v4857_v22  ;;  %v4872_v29 = vrot.slane %v4870_v25, 6  ;;  %v4875_v11 = vrot.slane %v4873_v12, 7  ;;  %v5257_v23 = vor.u32 %v5255_v28, %v5253_v4  ;;  %v14067_v25 = vld [vmem:[%s15034_s3 + $0x80] sm:$0xff]  }
 0x3a5   : > { %v4433_v16 = vsel %vm13949_vm7, %v3748_v39, 0.0  ;;  %vm15528_vm4 = vnez %v15527_v27  ;;  %v4896_v61 = vor.u32 %v4895_v13, %v4892_v46  ;;  %v5261_v37 = vrot.slane %v5259_v48, 1  ;;  %vm15543_vm7 = vmmov %vm15526_vm2 }
 0x3a6   : > { %v15531_v54 = vsel %vm15528_vm4, %v15529_v45, %v15530_v32  ;;  %v9448_v5 = vpack.c.bf16 %v4433_v16, %v4433_v16  ;;  %v4431_v38 = vsel %vm13961_vm10, %v3746_v42, 0.0  ;;  %v4876_v51 = vor.u32 %v4875_v11, %v4872_v29  ;;  %10265 = vmatpush3.bf16.msra.mxu1 %v11444_v56  ;;  %v14073_v11 = vld [vmem:[#allocation2 + $0x50] sm:$0xff]  }
 0x3a7   : > { %vm14029_vm1 = vcmp.lt.s32.totalorder %v15531_v54, 16  ;;  %v9446_v35 = vpack.c.bf16 %v4431_v38, %v4431_v38  ;;  %v3715_v33 = vadd.f32 %v13938_v8, %v13810_v10  ;;  %v3713_v0 = vadd.f32 %v13938_v8, %v13812_v15  ;;  %10266 = vmatprep.subr.bf16.mxu1 %v11447_v47 }
 0x3a8   : > { %v4898_v55 = vrot.slane %v4896_v61, 4  ;;  %v4900_v3 = vshrl.u32 %v9448_v5, 16  ;;  %v4903_v53 = vshll.u32 %v9448_v5, 16  ;;  %v5262_v21 = vsel %vm15534_vm14, %v5257_v23, %v5261_v37 }
 0x3a9   : > { %v4877_v4 = vsel %vm13513_vm9, %v4868_v1, %v4876_v51  ;;  %v4878_v20 = vrot.slane %v4876_v51, 4  ;;  %v4880_v24 = vshrl.u32 %v9446_v35, 16  ;;  %v4883_v10 = vshll.u32 %v9446_v35, 16  ;;  %10229 = vmatmul.mubr.bf16.gmra.mrb[8].mxu1 %v5262_v21 }
 0x3aa   : > { %5019 = vst [vmem:[#allocation2 + $0x78] sm:$0xf] %v4877_v4  ;;  %v4902_v15 = vrot.slane %v4900_v3, 6  ;;  %v4905_v30 = vrot.slane %v4903_v53, 7  ;;  %v3751_v28 = vmax.f32 %v3715_v33, 0.0  ;;  %v3749_v48 = vmax.f32 %v3713_v0, 0.0  ;;  %10267 = vmatpush3.bf16.msra.mxu1 %v11447_v47 }
 0x3ab   : > { %v4882_v41 = vrot.slane %v4880_v24, 6  ;;  %v4885_v7 = vrot.slane %v4883_v10, 7  ;;  %v5263_v9 = vshrl.u32 %v13975_v52, 16  ;;  %v5267_v59 = vshll.u32 %v14035_v50, 16  ;;  %10304 = vmatprep.subr.bf16.mxu1 %v14067_v25  ;;  %v14084_v0 = vld [vmem:[#allocation2 + $0x58] sm:$0xff]  }
 0x3ac   : > { %vm15536_vm5 = vnez %v15535_v44  ;;  %v4906_v40 = vor.u32 %v4905_v30, %v4902_v15  ;;  %v4436_v43 = vsel %vm14000_vm11, %v3751_v28, 0.0  ;;  %v4434_v60 = vsel %vm14009_vm0, %v3749_v48, 0.0  ;;  %v14095_v48 = vld [vmem:[#allocation2 + $0x68] sm:$0xff]   ;;  %vm15549_vm11 = vmmov %vm15526_vm2 }
 0x3ad   : > { %v15539_v1 = vsel %vm15536_vm5, %v15537_v62, %v15538_v14  ;;  %v3716_v31 = vadd.f32 %v13938_v8, %v13830_v2  ;;  %v4886_v12 = vor.u32 %v4885_v7, %v4882_v41  ;;  %v9451_v19 = vpack.c.bf16 %v4436_v43, %v4436_v43  ;;  %v5029_v7 = vld [vmem:[#allocation2 + $0x98] sm:$0x3]  ;;  %v14107_v43 = vld [vmem:[#allocation2 + $0x70] sm:$0xff]   ;;  %vm15551_vm0 = vmmov %vm15526_vm2 }
 0x3ae   : > { %vm14054_vm8 = vcmp.lt.s32.totalorder %v15539_v1, 16  ;;  %v9449_v39 = vpack.c.bf16 %v4434_v60, %v4434_v60  ;;  %v5265_v22 = vor.u32 %v5263_v9, %v5261_v37  ;;  %v4907_v17 = vsel %vm13513_vm9, %v4898_v55, %v4906_v40  ;;  %vm15552_vm2 = vmmov %vm15551_vm0  ;;  %v6166_v62 = vld [vmem:[#allocation2 + $0x8] sm:$0xe] }
 0x3af   : > { %v4908_v46 = vrot.slane %v4906_v40, 4  ;;  %v5269_v13 = vrot.slane %v5267_v59, 1  ;;  %v3752_v63 = vmax.f32 %v3716_v31, 0.0  ;;  %5022 = vst [vmem:[#allocation2 + $0x84] sm:$0xf] %v4907_v17  ;;  %v4887_v2 = vsel %vm13513_vm9, %v4878_v20, %v4886_v12  ;;  %v14088_v20 = vld [vmem:[#allocation2 + $0x60] sm:$0xff]   ;;  %vm15554_vm4 = vmmov %vm15551_vm0 }
 0x3b0   : > { %v4888_v42 = vrot.slane %v4886_v12, 4  ;;  %v4930_v56 = vshrl.u32 %v9451_v19, 16  ;;  %v4933_v29 = vshll.u32 %v9451_v19, 16  ;;  %5020 = vst [vmem:[#allocation2 + $0x7c] sm:$0xf] %v4887_v2  ;;  %v4910_v16 = vshrl.u32 %v9449_v39, 16 }
 0x3b1   : > { %v4913_v23 = vshll.u32 %v9449_v39, 16  ;;  %v5270_v27 = vsel %vm15542_vm3, %v5265_v22, %v5269_v13  ;;  %v4437_v45 = vsel %vm14029_vm1, %v3752_v63, 0.0  ;;  %v3714_v35 = vadd.f32 %v13938_v8, %v13834_v36  ;;  %vm15555_vm1 = vmmov %vm15551_vm0 }
 0x3b2   : > { %v4897_v32 = vsel %vm13513_vm9, %v4888_v42, %v4896_v61  ;;  %v4932_v54 = vrot.slane %v4930_v56, 6  ;;  %v4935_v5 = vrot.slane %v4933_v29, 7  ;;  %10232 = vmatprep.mubr.bf16.mxu1 %v5270_v27  ;;  %v9452_v38 = vpack.c.bf16 %v4437_v45, %v4437_v45 }
 0x3b3   : > { %5021 = vst [vmem:[#allocation2 + $0x80] sm:$0xf] %v4897_v32  ;;  %v4912_v37 = vrot.slane %v4910_v16, 6  ;;  %v4915_v51 = vrot.slane %v4913_v23, 7  ;;  %v5271_v33 = vshrl.u32 %v14035_v50, 16  ;;  %v5275_v53 = vshll.u32 %v14073_v11, 16 }
 0x3b4   : > { %v4936_v57 = vor.u32 %v4935_v5, %v4932_v54  ;;  %v4940_v55 = vshrl.u32 %v9452_v38, 16  ;;  %v4943_v3 = vshll.u32 %v9452_v38, 16  ;;  %v3750_v21 = vmax.f32 %v3714_v35, 0.0 }
 0x3b5   : > { %v4916_v61 = vor.u32 %v4915_v51, %v4912_v37  ;;  %v5273_v47 = vor.u32 %v5271_v33, %v5269_v13  ;;  %v5279_v4 = vshrl.u32 %v14073_v11, 16  ;;  %v5277_v36 = vrot.slane %v5275_v53, 1 }
 0x3b6   : > { %v4938_v24 = vrot.slane %v4936_v57, 4  ;;  %v4942_v10 = vrot.slane %v4940_v55, 6  ;;  %v4945_v15 = vrot.slane %v4943_v3, 7  ;;  %v4435_v30 = vsel %vm14054_vm8, %v3750_v21, 0.0 }
 0x3b7   : > { %v4917_v8 = vsel %vm13513_vm9, %v4908_v46, %v4916_v61  ;;  %v5283_v28 = vshll.u32 %v14084_v0, 16  ;;  %v9450_v9 = vpack.c.bf16 %v4435_v30, %v4435_v30  ;;  %v5278_v59 = vsel %vm15543_vm7, %v5273_v47, %v5277_v36  ;;  %v14113_v13 = vld [vmem:[#allocation2 + $0x78] sm:$0xff]  }
 0x3b8   : > { %5023 = vst [vmem:[#allocation2 + $0x88] sm:$0xf] %v4917_v8  ;;  %v4946_v41 = vor.u32 %v4945_v15, %v4942_v10  ;;  %v5281_v44 = vor.u32 %v5279_v4, %v5277_v36  ;;  %vm15544_vm6 = vsmask.f32 1280  ;;  %vm15545_vm10 = vcmask 1041408   ;;  %10233 = vmatmul.mubr.bf16.gmra.mrb[12].mxu1 %v5278_v59 }
 0x3b9   : > { %vm14100_vm15 = vmand %vm15545_vm10, %vm15544_vm6  ;;  %v5285_v14 = vrot.slane %v5283_v28, 1  ;;  %v5287_v1 = vshrl.u32 %v14084_v0, 16  ;;  %v5291_v58 = vshll.u32 %v14088_v20, 16  ;;  %v5295_v40 = vshrl.u32 %v14088_v20, 16  ;;  %v14142_v59 = vld [vmem:[#allocation2 + $0xc] sm:$0xf] }
 0x3ba   : > { %v4947_v60 = vsel %vm13513_vm9, %v4938_v24, %v4946_v41  ;;  %v4948_v31 = vrot.slane %v4946_v41, 4  ;;  %v4920_v12 = vshrl.u32 %v9450_v9, 16  ;;  %v4923_v19 = vshll.u32 %v9450_v9, 16  ;;  %v14124_v35 = vld [vmem:[#allocation2 + $0x80] sm:$0xff]  }
 0x3bb   : > { %5026 = vst [vmem:[#allocation2 + $0x94] sm:$0xf] %v4947_v60  ;;  %v5286_v39 = vsel %vm15548_vm13, %v5281_v44, %v5285_v14  ;;  %v5289_v22 = vor.u32 %v5287_v1, %v5285_v14  ;;  %v5293_v17 = vrot.slane %v5291_v58, 1  ;;  %v5299_v46 = vshll.u32 %v14095_v48, 16  ;;  %v14150_v60 = vld [vmem:[#allocation2 + $0x18] sm:$0xff]  }
 0x3bc   : > { %v4918_v63 = vrot.slane %v4916_v61, 4  ;;  %v5030_v2 = vsel %vm14100_vm15, %v4948_v31, %v5029_v7  ;;  %v4922_v42 = vrot.slane %v4920_v12, 6  ;;  %v4925_v56 = vrot.slane %v4923_v19, 7  ;;  %10236 = vmatprep.mubr.bf16.mxu1 %v5286_v39  ;;  %v14152_v31 = vld [vmem:[#allocation2 + $0x20] sm:$0xff]   ;;  %v14155_v19 = vld [vmem:[#allocation2 + $0x28] sm:$0xff]  }
 0x3bd   : > { %5031 = vst [vmem:[#allocation2 + $0x98] sm:$0x3] %v5030_v2  ;;  %v5297_v29 = vor.u32 %v5295_v40, %v5293_v17  ;;  %v5301_v16 = vrot.slane %v5299_v46, 1  ;;  %v5307_v23 = vshll.u32 %v14107_v43, 16  ;;  %v5294_v45 = vsel %vm15549_vm11, %v5289_v22, %v5293_v17  ;;  %v14148_v40 = vld [vmem:[#allocation2 + $0x10] sm:$0xff]  }
 0x3be   : > { %v4926_v27 = vor.u32 %v4925_v56, %v4922_v42  ;;  %v5315_v54 = vshll.u32 %v14113_v13, 16  ;;  %v5303_v37 = vshrl.u32 %v14095_v48, 16  ;;  %v5311_v3 = vshrl.u32 %v14107_v43, 16  ;;  %v14158_v22 = vld [vmem:[#allocation2 + $0x8] sm:$0xc]  ;;  %v14165_v56 = vld [vmem:[#allocation2 + $0x30] sm:$0xff]  }
 0x3bf   : > { %v5302_v32 = vsel %vm15550_vm12, %v5297_v29, %v5301_v16  ;;  %v5309_v51 = vrot.slane %v5307_v23, 1  ;;  %v5323_v21 = vshll.u32 %v14124_v35, 16  ;;  %v5319_v24 = vshrl.u32 %v14113_v13, 16 }
 0x3c0   : > { %v4927_v5 = vsel %vm13513_vm9, %v4918_v63, %v4926_v27  ;;  %v4928_v38 = vrot.slane %v4926_v27, 4  ;;  %10237 = vmatmul.mubr.bf16.gmra.mrb[16].mxu1 %v5294_v45  ;;  %v5305_v55 = vor.u32 %v5303_v37, %v5301_v16  ;;  %v5317_v53 = vrot.slane %v5315_v54, 1  ;;  %v15556_v45 = vld [vmem:[#allocation22_spill] sm:$0xff] }
 0x3c1   : > { %5024 = vst [vmem:[#allocation2 + $0x8c] sm:$0xf] %v4927_v5  ;;  %10240 = vmatprep.mubr.bf16.mxu1 %v5302_v32  ;;  %v5313_v61 = vor.u32 %v5311_v3, %v5309_v51  ;;  %v5325_v6 = vrot.slane %v5323_v21, 1  ;;  %v5327_v8 = vshrl.u32 %v14124_v35, 16  ;;  %v14146_v58 = vcombine.low %v6166_v62, %v14142_v59  ;;  %v14172_v32 = vld [vmem:[#allocation2 + $0x38] sm:$0xff]  }
 0x3c2   : > { %v4937_v33 = vsel %vm13513_vm9, %v4928_v38, %v4936_v57  ;;  %v5310_v47 = vsel %vm15551_vm0, %v5305_v55, %v5309_v51  ;;  %v5321_v57 = vor.u32 %v5319_v24, %v5317_v53  ;;  %vm15553_vm9 = vmmov %vm15551_vm0  ;;  %v6659_v2 = vshrl.u32 %v14148_v40, 16  ;;  %v14178_v24 = vld [vmem:[#allocation2 + $0x48] sm:$0xff]  }
 0x3c3   : > { %5025 = vst [vmem:[#allocation2 + $0x90] sm:$0xf] %v4937_v33  ;;  %v5318_v4 = vsel %vm15552_vm2, %v5313_v61, %v5317_v53  ;;  %v5329_v28 = vor.u32 %v5327_v8, %v5325_v6  ;;  %v6651_v39 = vshrl.u32 %v14146_v58, 16  ;;  %v6654_v63 = vshll.u32 %v14146_v58, 16  ;;  %v14175_v53 = vld [vmem:[#allocation2 + $0x40] sm:$0xff]  }
 0x3c4   : > { %v5326_v41 = vsel %vm15553_vm9, %v5321_v57, %v5325_v6  ;;  %v6662_v42 = vshll.u32 %v14148_v40, 16  ;;  %v6668_v29 = vshrl.u32 %v14150_v60, 16  ;;  %v6671_v16 = vshll.u32 %v14150_v60, 16 }
 0x3c5   : > { %v6653_v46 = vrot.slane %v6651_v39, 1  ;;  %v6677_v23 = vshrl.u32 %v14152_v31, 16  ;;  %v6680_v27 = vshll.u32 %v14152_v31, 16  ;;  %v6656_v54 = vrot.slane %v6654_v63, 2  ;;  %v14198_v39 = vld [vmem:[#allocation2 + $0x58] sm:$0xff]  }
 0x3c6   : > { %v6661_v5 = vrot.slane %v6659_v2, 1  ;;  %v6664_v38 = vrot.slane %v6662_v42, 2  ;;  %v6686_v37 = vshrl.u32 %v14155_v19, 16  ;;  %v6670_v51 = vrot.slane %v6668_v29, 1  ;;  %v14201_v29 = vld [vmem:[#allocation2 + $0x8] sm:$0xff]  }
 0x3c7   : > { %v6673_v33 = vrot.slane %v6671_v16, 2  ;;  %v6679_v55 = vrot.slane %v6677_v23, 1  ;;  %v6682_v3 = vrot.slane %v6680_v27, 2  ;;  %v6657_v61 = vor.u32 %v6656_v54, %v6653_v46  ;;  %v14204_v16 = vld [vmem:[#allocation2 + $0x60] sm:$0xff]  }
 0x3c8   : > { %v14133_v10 = vld [vmem:[#allocation2 + $0x88] sm:$0xff]   ;;  %10241 = vmatmul.mubr.bf16.gmra.mrb[20].mxu1 %v5310_v47  ;;  %v6665_v21 = vor.u32 %v6664_v38, %v6661_v5  ;;  %v6688_v47 = vrot.slane %v6686_v37, 1  ;;  %v6698_v8 = vshll.u32 %v14165_v56, 16  ;;  %vm15557_vm14 = vsmask.f32 6400  ;;  %v14210_v5 = vld [vmem:[#allocation2 + $0x10] sm:$0xff]  }
 0x3c9   : > { %10244 = vmatprep.mubr.bf16.mxu1 %v5318_v4  ;;  %v5331_v15 = vshll.u32 %v14133_v10, 16  ;;  %v5335_v44 = vshrl.u32 %v14133_v10, 16  ;;  %v6689_v4 = vshll.u32 %v14155_v19, 16  ;;  %v6674_v6 = vor.u32 %v6673_v33, %v6670_v51  ;;  %vm15559_vm5 = vmmov %vm15557_vm14  ;;  %v14213_v38 = vld [vmem:[#allocation2 + $0x68] sm:$0xff]  }
 0x3ca   : > { %v14136_v36 = vld [vmem:[#allocation2 + $0x90] ss:$0 sps:$4 sm:$0x11]   ;;  %v6683_v57 = vor.u32 %v6682_v3, %v6679_v55  ;;  %vm15561_vm8 = vmmov %vm15559_vm5  ;;  %v6713_v42 = vshrl.u32 %v14175_v53, 16  ;;  %v6716_v27 = vshll.u32 %v14175_v53, 16  ;;  %v6725_v54 = vshll.u32 %v14178_v24, 16 }
 0x3cb   : > { %v5333_v30 = vrot.slane %v5331_v15, 1  ;;  %v5339_v7 = vshll.u32 %v14136_v36, 16  ;;  %v6695_v15 = vshrl.u32 %v14165_v56, 16  ;;  %v14193_v62 = vsel %vm15559_vm5, %v6665_v21, %v6674_v6  ;;  %vm15563_vm3 = vmmov %vm15559_vm5  ;;  %v11451_v3 = vld [vmem:[%s15034_s3 + $0x90] sm:$0xff]  }
 0x3cc   : > { %15560 = vst [vmem:[#allocation7_spill] sm:$0xff] %v14193_v62  ;;  %v6715_v33 = vrot.slane %v6713_v42, 1  ;;  %vm15565_vm7 = vmmov %vm15563_vm3  ;;  %v6758_v42 = vshrl.u32 %v14213_v38, 16 }
 0x3cd   : > { %v5334_v9 = vsel %vm15554_vm4, %v5329_v28, %v5333_v30  ;;  %v5337_v14 = vor.u32 %v5335_v44, %v5333_v30  ;;  %v5341_v1 = vrot.slane %v5339_v7, 1  ;;  %v14182_v30 = vld [vmem:[#allocation2 + $0x50] sm:$0xff]   ;;  %v14185_v28 = vsel %vm15557_vm14, %v6657_v61, %v6665_v21  ;;  %v11450_v44 = vld [vmem:[%s15034_s3 + $0x88] sm:$0xff]   ;;  %vm15567_vm6 = vmmov %vm15563_vm3 }
 0x3ce   : > { %15558 = vst [vmem:[#allocation6_spill] sm:$0xff] %v14185_v28  ;;  %v6704_v7 = vshrl.u32 %v14172_v32, 16  ;;  %v6731_v55 = vshrl.u32 %v14182_v30, 16  ;;  %v6718_v61 = vrot.slane %v6716_v27, 2  ;;  %vm15569_vm10 = vmmov %vm15563_vm3  ;;  %vm15593_vm14 = vcmask 1045504  }
 0x3cf   : > { %v5342_v12 = vsel %vm15555_vm1, %v5337_v14, %v5341_v1  ;;  %v14196_v14 = vsel %vm15561_vm8, %v6674_v6, %v6683_v57  ;;  %v6697_v1 = vrot.slane %v6695_v15, 1  ;;  %v6740_v15 = vshrl.u32 %v14198_v39, 16  ;;  %vm15571_vm15 = vmmov %vm15563_vm3 }
 0x3d0   : > { %10245 = vmatmul.mubr.bf16.gmra.mrb[24].mxu1 %v5326_v41  ;;  %v6691_v41 = vrot.slane %v6689_v4, 2  ;;  %15562 = vst [vmem:[#allocation3_spill] sm:$0xff] %v14196_v14  ;;  %v6706_v63 = vrot.slane %v6704_v7, 1  ;;  %v6733_v6 = vrot.slane %v6731_v55, 1  ;;  %v6719_v7 = vor.u32 %v6718_v61, %v6715_v33  ;;  %vm15575_vm13 = vmmov %vm15563_vm3 }
 0x3d1   : > { %10248 = vmatprep.mubr.bf16.mxu1 %v5334_v9  ;;  %v6707_v9 = vshll.u32 %v14172_v32, 16  ;;  %vm15577_vm11 = vmmov %vm15563_vm3 }
 0x3d2   : > { %v6692_v46 = vor.u32 %v6691_v41, %v6688_v47  ;;  %v6727_v47 = vrot.slane %v6725_v54, 2  ;;  %v14232_v41 = vld [vmem:[#allocation2 + $0x78] sm:$0xff]   ;;  %vm15579_vm12 = vmmov %vm15563_vm3 }
 0x3d3   : > { %v6709_v2 = vrot.slane %v6707_v9, 2  ;;  %vm15581_vm0 = vmmov %vm15563_vm3 }
 0x3d4   : > { %v14216_v37 = vsel %vm15563_vm3, %v6683_v57, %v6692_v46  ;;  %v6734_v57 = vshll.u32 %v14182_v30, 16  ;;  %vm15583_vm2 = vmmov %vm15581_vm0 }
 0x3d5   : > { %15564 = vst [vmem:[#allocation8_spill] sm:$0xff] %v14216_v37  ;;  %v6710_v51 = vor.u32 %v6709_v2, %v6706_v63  ;;  %v6742_v63 = vrot.slane %v6740_v15, 1  ;;  %v6752_v2 = vshll.u32 %v14204_v16, 16  ;;  %v14253_v15 = vld [vmem:[#allocation2 + $0x88] sm:$0xff]   ;;  %vm15585_vm9 = vmmov %vm15581_vm0 }
 0x3d6   : > { %15573 = vst [vmem:[#allocation5_spill] sm:$0xff] %v14253_v15  ;;  %vm15588_vm4 = vmmov %vm15581_vm0 }
 0x3d7   : > { %v14242_v27 = vsel %vm15569_vm10, %v6710_v51, %v6719_v7  ;;  %v6754_v61 = vrot.slane %v6752_v2, 2  ;;  %vm15590_vm1 = vmmov %vm15581_vm0 }
 0x3d8   : > { %10249 = vmatmul.mubr.bf16.gmra.mrb[28].mxu1 %v5342_v12  ;;  %v6700_v12 = vrot.slane %v6698_v8, 2  ;;  %v14230_v8 = vld [vmem:[#allocation2 + $0x70] sm:$0xff]   ;;  %15570 = vst [vmem:[#allocation12_spill] sm:$0xff] %v14242_v27  ;;  %vm15595_vm5 = vmmov %vm15593_vm14 }
 0x3d9   : > { %10268 = vmatprep.mubr.bf16.mxu1 %v15556_v45  ;;  %v6722_v45 = vshrl.u32 %v14178_v24, 16  ;;  %v6767_v17 = vshrl.u32 %v14230_v8, 16  ;;  %vm15597_vm8 = vmmov %vm15595_vm5 }
 0x3da   : > { %v6701_v23 = vor.u32 %v6700_v12, %v6697_v1  ;;  %v6743_v1 = vshll.u32 %v14198_v39, 16  ;;  %v6749_v12 = vshrl.u32 %v14204_v16, 16  ;;  %vm15599_vm3 = vmmov %vm15581_vm0 }
 0x3db   : > { %v6724_v21 = vrot.slane %v6722_v45, 1  ;;  %vm15605_vm10 = vmmov %vm15595_vm5 }
 0x3dc   : > { %v14226_v4 = vsel %vm15567_vm6, %v6701_v23, %v6710_v51  ;;  %v6745_v54 = vrot.slane %v6743_v1, 2  ;;  %v6751_v33 = vrot.slane %v6749_v12, 1  ;;  %v6776_v1 = vshrl.u32 %v14232_v41, 16  ;;  %vm15603_vm6 = vmmov %vm15595_vm5 }
 0x3dd   : > { %15568 = vst [vmem:[#allocation4_spill] sm:$0xff] %v14226_v4  ;;  %v6728_v9 = vor.u32 %v6727_v47, %v6724_v21  ;;  %v6760_v21 = vrot.slane %v6758_v42, 1  ;;  %v6761_v47 = vshll.u32 %v14213_v38, 16  ;;  %v6779_v42 = vshll.u32 %v14232_v41, 16 }
 0x3de   : > { %v6746_v51 = vor.u32 %v6745_v54, %v6742_v63  ;;  %v11453_v63 = vld [vmem:[%s15034_s3 + $0xa0] sm:$0xff]   ;;  %v6794_v4 = vshrl.u32 %v14253_v15, 16 }
 0x3df   : > { %v14245_v45 = vsel %vm15571_vm15, %v6719_v7, %v6728_v9  ;;  %v6770_v7 = vshll.u32 %v14230_v8, 16  ;;  %v6763_v2 = vrot.slane %v6761_v47, 2  ;;  %vm15608_vm15 = vmmov %vm15595_vm5 }
 0x3e0   : > { %10269 = vmatmul.mubr.bf16.vlgmr.msra.gmra.mrb[32].mxu1 %v14201_v29  ;;  %15572 = vst [vmem:[#allocation10_spill] sm:$0xff] %v14245_v45  ;;  %v6769_v45 = vrot.slane %v6767_v17, 1 }
 0x3e1   : > { %10305 = vmatpush3.bf16.msra.mxu1 %v14067_v25  ;;  %10272 = vmatprep.mubr.bf16.mxu1 %v14210_v5  ;;  %v14223_v25 = vsel %vm15565_vm7, %v6692_v46, %v6701_v23  ;;  %v6736_v46 = vrot.slane %v6734_v57, 2  ;;  %v11452_v23 = vld [vmem:[%s15034_s3 + $0x98] sm:$0xff]   ;;  %vm15601_vm7 = vmmov %vm15595_vm5 }
 0x3e2   : > { %10306 = vmatprep.subr.bf16.mxu1 %v11450_v44  ;;  %15566 = vst [vmem:[#allocation9_spill] sm:$0xff] %v14223_v25  ;;  %v14250_v57 = vld [vmem:[#allocation2 + $0x18] sm:$0xff]   ;;  %v6797_v25 = vshll.u32 %v14253_v15, 16 }
 0x3e3   : > { %v6737_v55 = vor.u32 %v6736_v46, %v6733_v6  ;;  %v14259_v6 = vld [vmem:[#allocation2 + $0x90] sm:$0xff]   ;;  %v6755_v46 = vor.u32 %v6754_v61, %v6751_v33 }
 0x3e4   : > { %15574 = vst [vmem:[#allocation16_spill] sm:$0xff] %v14259_v6 }
 0x3e5   : > { %10307 = vmatpush3.bf16.msra.mxu1 %v11450_v44  ;;  %v14247_v44 = vld [vmem:[#allocation2 + $0x80] sm:$0xff]   ;;  %v14262_v12 = vsel %vm15575_vm13, %v6728_v9, %v6737_v55  ;;  %v14269_v54 = vsel %vm15577_vm11, %v6737_v55, %v6746_v51  ;;  %v14272_v27 = vsel %vm15579_vm12, %v6746_v51, %v6755_v46  ;;  %v6764_v9 = vor.u32 %v6763_v2, %v6760_v21  ;;  %v11454_v21 = vld [vmem:[%s15034_s3 + $0xa8] sm:$0xff]   ;;  %vm15610_vm13 = vmmov %vm15595_vm5 }
 0x3e6   : > { %10308 = vmatprep.subr.bf16.mxu1 %v11451_v3  ;;  %15576 = vst [vmem:[#allocation14_spill] sm:$0xff] %v14262_v12  ;;  %15578 = vst [vmem:[#allocation11_spill] sm:$0xff] %v14269_v54  ;;  %v6781_v12 = vrot.slane %v6779_v42, 2  ;;  %v6785_v33 = vshrl.u32 %v14247_v44, 16  ;;  %v6788_v47 = vshll.u32 %v14247_v44, 16  ;;  %v6803_v51 = vshrl.u32 %v14259_v6, 16 }
 0x3e7   : > { %15580 = vst [vmem:[#allocation27_spill] sm:$0xff] %v14272_v27  ;;  %v14279_v55 = vsel %vm15581_vm0, %v6755_v46, %v6764_v9  ;;  %v6796_v2 = vrot.slane %v6794_v4, 1  ;;  %v6799_v42 = vrot.slane %v6797_v25, 2  ;;  %v7121_v25 = vrot.slane %v14148_v40, 2  ;;  %vm15612_vm11 = vmmov %vm15595_vm5 }
 0x3e8   : > { %10273 = vmatmul.mubr.bf16.gmra.mrb[0].mxu1 %v14250_v57  ;;  %15582 = vst [vmem:[#allocation17_spill] sm:$0xff] %v14279_v55  ;;  %v6805_v46 = vrot.slane %v6803_v51, 1  ;;  %v7123_v4 = vrot.slane %v14150_v60, 2  ;;  %vm15614_vm12 = vmmov %vm15595_vm5 }
 0x3e9   : > { %10276 = vmatprep.mubr.bf16.mxu1 %v13818_v26  ;;  %10309 = vmatpush3.bf16.msra.mxu1 %v11451_v3  ;;  %v6772_v26 = vrot.slane %v6770_v7, 2  ;;  %v6778_v3 = vrot.slane %v6776_v1, 1  ;;  %v6787_v7 = vrot.slane %v6785_v33, 1  ;;  %v6790_v1 = vrot.slane %v6788_v47, 2  ;;  %vm15616_vm0 = vmmov %vm15595_vm5 }
 0x3ea   : > { %10310 = vmatprep.subr.bf16.mxu1 %v11452_v23  ;;  %v15587_v33 = vcombine.low %v14158_v22, %v14142_v59  ;;  %v7125_v59 = vrot.slane %v14152_v31, 2 }
 0x3eb   : > { %v6773_v61 = vor.u32 %v6772_v26, %v6769_v45  ;;  %v6782_v17 = vor.u32 %v6781_v12, %v6778_v3  ;;  %v6806_v12 = vshll.u32 %v14259_v6, 16  ;;  %v6791_v26 = vor.u32 %v6790_v1, %v6787_v7 }
 0x3ec   : > { %v6800_v3 = vor.u32 %v6799_v42, %v6796_v2  ;;  %v7120_v55 = vrot.slane %v15587_v33, 2  ;;  %v7127_v7 = vrot.slane %v14155_v19, 2  ;;  %v14319_v51 = vsel %vm15597_vm8, %v7123_v4, %v7125_v59  ;;  %v14342_v33 = vld [vmem:[#allocation2 + $0x98] ss:$0 sps:$4 sm:$0x33]   ;;  %vm15630_vm8 = vmmov %vm15616_vm0 }
 0x3ed   : > { %10311 = vmatpush3.bf16.msra.mxu1 %v11452_v23  ;;  %v14286_v45 = vsel %vm15583_vm2, %v6764_v9, %v6773_v61  ;;  %v14289_v23 = vsel %vm15585_vm9, %v6773_v61, %v6782_v17  ;;  %v6808_v9 = vrot.slane %v6806_v12, 2  ;;  %v11455_v61 = vld [vmem:[%s15034_s3 + $0xb0] sm:$0xff]   ;;  %15598 = vst [vmem:[#allocation32_spill] sm:$0xff] %v14319_v51  ;;  %v7131_v1 = vrot.slane %v14172_v32, 2  ;;  %v11456_v12 = vld [vmem:[%s15034_s3 + $0xb8] sm:$0xff]   ;;  %15607 = vst [vmem:[#allocation21_spill] sm:$0xff] %v14342_v33 }
 0x3ee   : > { %10312 = vmatprep.subr.bf16.mxu1 %v11453_v63  ;;  %15584 = vst [vmem:[#allocation13_spill] sm:$0xff] %v14286_v45  ;;  %15586 = vst [vmem:[#allocation29_spill] sm:$0xff] %v14289_v23  ;;  %v14306_v47 = vsel %vm15590_vm1, %v6791_v26, %v6800_v3  ;;  %v14312_v22 = vsel %vm15593_vm14, %v7120_v55, %v7121_v25  ;;  %v14328_v55 = vsel %vm15601_vm7, %v7125_v59, %v7127_v7 }
 0x3ef   : > { %15591 = vst [vmem:[#allocation15_spill] sm:$0xff] %v14306_v47  ;;  %15594 = vst [vmem:[#allocation23_spill] sm:$0xff] %v14312_v22  ;;  %v7133_v42 = vrot.slane %v14175_v53, 2  ;;  %v7141_v59 = vrot.slane %v14204_v16, 2 }
 0x3f0   : > { %10277 = vmatmul.mubr.bf16.gmra.mrb[4].mxu1 %v13848_v18  ;;  %v14303_v18 = vsel %vm15588_vm4, %v6782_v17, %v6791_v26  ;;  %v7129_v17 = vrot.slane %v14165_v56, 2  ;;  %15602 = vst [vmem:[#allocation19_spill] sm:$0xff] %v14328_v55  ;;  %vm15618_vm2 = vmmov %vm15616_vm0 }
 0x3f1   : > { %10280 = vmatprep.mubr.bf16.mxu1 %v13898_v34  ;;  %10313 = vmatpush3.bf16.msra.mxu1 %v11453_v63  ;;  %15589 = vst [vmem:[#allocation20_spill] sm:$0xff] %v14303_v18  ;;  %v14309_v34 = vor.u32 %v6808_v9, %v6805_v46  ;;  %v14315_v63 = vsel %vm15595_vm5, %v7121_v25, %v7123_v4  ;;  %v7135_v46 = vrot.slane %v14178_v24, 2  ;;  %v7139_v4 = vrot.slane %v14198_v39, 2  ;;  %vm15620_vm9 = vmmov %vm15616_vm0 }
 0x3f2   : > { %10314 = vmatprep.subr.bf16.mxu1 %v11454_v21  ;;  %15596 = vst [vmem:[#allocation18_spill] sm:$0xff] %v14315_v63  ;;  %v14336_v26 = vsel %vm15603_vm6, %v7127_v7, %v7129_v17  ;;  %v14345_v9 = vsel %vm15608_vm15, %v7131_v1, %v7133_v42  ;;  %vm15622_vm4 = vmmov %vm15616_vm0 }
 0x3f3   : > { %15592 = vst [vmem:[#allocation31_spill] sm:$0xff] %v14309_v34  ;;  %v14325_v2 = vsel %vm15599_vm3, %v6800_v3, %v14309_v34  ;;  %15604 = vst [vmem:[#allocation33_spill] sm:$0xff] %v14336_v26  ;;  %v7137_v3 = vrot.slane %v14182_v30, 2  ;;  %v14348_v25 = vsel %vm15610_vm13, %v7133_v42, %v7135_v46  ;;  %v7147_v26 = vrot.slane %v14232_v41, 2 }
 0x3f4   : > { %15600 = vst [vmem:[#allocation26_spill] sm:$0xff] %v14325_v2  ;;  %15609 = vst [vmem:[#allocation35_spill] sm:$0xff] %v14345_v9  ;;  %v14364_v42 = vsel %vm15616_vm0, %v7139_v4, %v7141_v59  ;;  %vm15633_vm3 = vsmask.f32 5376 }
 0x3f5   : > { %10315 = vmatpush3.bf16.msra.mxu1 %v11454_v21  ;;  %v14339_v21 = vsel %vm15605_vm10, %v7129_v17, %v7131_v1  ;;  %15611 = vst [vmem:[#allocation34_spill] sm:$0xff] %v14348_v25  ;;  %v14354_v7 = vsel %vm15612_vm11, %v7135_v46, %v7137_v3  ;;  %v7143_v17 = vrot.slane %v14213_v38, 2  ;;  %v14361_v1 = vsel %vm15614_vm12, %v7137_v3, %v7139_v4  ;;  %vm15624_vm1 = vmmov %vm15616_vm0 }
 0x3f6   : > { %10316 = vmatprep.subr.bf16.mxu1 %v11455_v61  ;;  %15606 = vst [vmem:[#allocation30_spill] sm:$0xff] %v14339_v21  ;;  %15613 = vst [vmem:[#allocation24_spill] sm:$0xff] %v14354_v7  ;;  %v7145_v21 = vrot.slane %v14230_v8, 2  ;;  %v7151_v46 = vrot.slane %v14253_v15, 2  ;;  %v14371_v7 = vld [vmem:[%s15034_s3 + $0xc0] sm:$0xff]   ;;  %v7153_v3 = vrot.slane %v14259_v6, 2 }
 0x3f7   : > { %15615 = vst [vmem:[#allocation37_spill] sm:$0xff] %v14361_v1  ;;  %15617 = vst [vmem:[#allocation36_spill] sm:$0xff] %v14364_v42  ;;  %v14374_v25 = vsel %vm15618_vm2, %v7141_v59, %v7143_v17  ;;  %v7155_v1 = vrot.slane %v14342_v33, 2  ;;  %v8369_v15 = vld [vmem:[#allocation2 + $0x10] sm:$0x8] }
 0x3f8   : > { %10281 = vmatmul.mubr.bf16.gmra.mrb[8].mxu1 %v13942_v49  ;;  %v7149_v49 = vrot.slane %v14247_v44, 2  ;;  %15619 = vst [vmem:[#allocation25_spill] sm:$0xff] %v14374_v25  ;;  %vm15626_vm14 = vmmov %vm15616_vm0 }
 0x3f9   : > { %10284 = vmatprep.mubr.bf16.mxu1 %v13975_v52  ;;  %10317 = vmatpush3.bf16.msra.mxu1 %v11455_v61  ;;  %v14377_v52 = vsel %vm15620_vm9, %v7143_v17, %v7145_v21  ;;  %v14380_v61 = vsel %vm15622_vm4, %v7145_v21, %v7147_v26  ;;  %vm15628_vm5 = vmmov %vm15616_vm0  ;;  %v14394_v59 = vsel %vm15630_vm8, %v7153_v3, %v7155_v1  ;;  %v7436_v21 = vld [vmem:[#allocation2 + $0x10] sm:$0xc]  ;;  %v5829_v17 = vld [vmem:[#allocation2] sm:$0xe] }
 0x3fa   : > { %10318 = vmatprep.subr.bf16.mxu1 %v11456_v12  ;;  %15621 = vst [vmem:[#allocation40_spill] sm:$0xff] %v14377_v52  ;;  %15623 = vst [vmem:[#allocation38_spill] sm:$0xff] %v14380_v61  ;;  %v14384_v4 = vsel %vm15624_vm1, %v7147_v26, %v7149_v49  ;;  %v14387_v42 = vsel %vm15626_vm14, %v7149_v49, %v7151_v46  ;;  %v14391_v9 = vsel %vm15628_vm5, %v7151_v46, %v7153_v3  ;;  %v14398_v26 = vld [vmem:[#allocation2 + $0x14] sm:$0xf]  ;;  %v11553_v46 = vld [vmem:[#allocation2 + $0x4] sm:$0xf] }
 0x3fb   : > { %15625 = vst [vmem:[#allocation28_spill] sm:$0xff] %v14384_v4  ;;  %15627 = vst [vmem:[#allocation39_spill] sm:$0xff] %v14387_v42  ;;  %v14402_v49 = vcombine.low %v7436_v21, %v14398_v26  ;;  %v14404_v42 = vld [vmem:[#allocation2 + $0x18] sm:$0xff]   ;;  %v14408_v1 = vld [vmem:[#allocation2 + $0x28] sm:$0xff]   ;;  %vm15659_vm5 = vcmask 1046528  }
 0x3fc   : > { %15629 = vst [vmem:[#allocation42_spill] sm:$0xff] %v14391_v9  ;;  %15631 = vst [vmem:[#allocation41_spill] sm:$0xff] %v14394_v59  ;;  %v14406_v9 = vld [vmem:[#allocation2 + $0x20] sm:$0xff]   ;;  %v14410_v3 = vld [vmem:[#allocation2 + $0x30] sm:$0xff]   ;;  %v7929_v4 = vshrl.u32 %v14404_v42, 16  ;;  %v7947_v22 = vshrl.u32 %v14408_v1, 16 }
 0x3fd   : > { %10319 = vmatpush3.bf16.msra.mxu1 %v11456_v12  ;;  %15632 = vst [vmem:[#allocation43_spill] sm:$0xff] %v14402_v49  ;;  %v9219_v12 = vcombine.low %v5829_v17, %v11553_v46  ;;  %v7921_v59 = vshrl.u32 %v14402_v49, 16  ;;  %v14418_v61 = vld [vmem:[#allocation2 + $0x38] sm:$0xff]   ;;  %v7932_v17 = vshll.u32 %v14404_v42, 16  ;;  %v7938_v46 = vshrl.u32 %v14406_v9, 16  ;;  %vm15635_vm7 = vmmov %vm15633_vm3 }
 0x3fe   : > { %10356 = vmatprep.subr.bf16.mxu1 %v14371_v7  ;;  %v7931_v55 = vrot.slane %v7929_v4, 2  ;;  %v7941_v51 = vshll.u32 %v14406_v9, 16  ;;  %v7950_v21 = vshll.u32 %v14408_v1, 16  ;;  %v7959_v4 = vshll.u32 %v14410_v3, 16  ;;  %vm15637_vm6 = vmmov %vm15633_vm3 }
 0x3ff   : > { %v7923_v52 = vrot.slane %v7921_v59, 2  ;;  %v7934_v63 = vrot.slane %v7932_v17, 3  ;;  %v7956_v59 = vshrl.u32 %v14410_v3, 16  ;;  %v7965_v17 = vshrl.u32 %v14418_v61, 16  ;;  %vm15639_vm10 = vmmov %vm15633_vm3 }
 0x400   : > { %10285 = vmatmul.mubr.bf16.gmra.mrb[12].mxu1 %v14035_v50  ;;  %v7924_v50 = vshll.u32 %v14402_v49, 16  ;;  %v14424_v49 = vld [vmem:[#allocation2 + $0x40] sm:$0xff]   ;;  %v7943_v2 = vrot.slane %v7941_v51, 3  ;;  %v7952_v33 = vrot.slane %v7950_v21, 3  ;;  %v7961_v45 = vrot.slane %v7959_v4, 3  ;;  %vm15641_vm15 = vmmov %vm15633_vm3 }
 0x401   : > { %10288 = vmatprep.mubr.bf16.mxu1 %v14073_v11  ;;  %v14415_v11 = vrot.slane %v9219_v12, 1  ;;  %v7940_v12 = vrot.slane %v7938_v46, 2  ;;  %v7935_v47 = vor.u32 %v7934_v63, %v7931_v55  ;;  %v14434_v46 = vld [vmem:[#allocation2 + $0x50] sm:$0xff]   ;;  %v7958_v23 = vrot.slane %v7956_v59, 2  ;;  %vm15643_vm13 = vmmov %vm15633_vm3 }
 0x402   : > { %v7926_v25 = vrot.slane %v7924_v50, 3  ;;  %v14431_v50 = vld [vmem:[#allocation2 + $0x48] sm:$0xff]   ;;  %v7967_v27 = vrot.slane %v7965_v17, 2  ;;  %v7974_v63 = vshrl.u32 %v14424_v49, 16  ;;  %vm15645_vm11 = vmmov %vm15633_vm3 }
 0x403   : > { %v7944_v18 = vor.u32 %v7943_v2, %v7940_v12  ;;  %v7962_v55 = vor.u32 %v7961_v45, %v7958_v23  ;;  %v7977_v2 = vshll.u32 %v14424_v49, 16  ;;  %v14447_v12 = vld [vmem:[#allocation2 + $0x60] sm:$0xff]   ;;  %v7992_v23 = vshrl.u32 %v14434_v46, 16  ;;  %vm15647_vm12 = vmmov %vm15633_vm3 }
 0x404   : > { %v7927_v34 = vor.u32 %v7926_v25, %v7923_v52  ;;  %v14437_v25 = vld [vmem:[#allocation2 + $0x58] sm:$0xff]   ;;  %v7976_v4 = vrot.slane %v7974_v63, 2  ;;  %v8013_v37 = vshll.u32 %v14447_v12, 16  ;;  %vm15649_vm0 = vmmov %vm15633_vm3 }
 0x405   : > { %v7979_v45 = vrot.slane %v7977_v2, 3  ;;  %v8001_v63 = vshrl.u32 %v14437_v25, 16  ;;  %v14470_v2 = vld [vmem:[#allocation2 + $0x78] sm:$0xff]   ;;  %vm15651_vm2 = vmmov %vm15649_vm0 }
 0x406   : > { %v14440_v51 = vsel %vm15633_vm3, %v7927_v34, %v7935_v47  ;;  %v7983_v34 = vshrl.u32 %v14431_v50, 16  ;;  %vm15653_vm9 = vmmov %vm15649_vm0 }
 0x407   : > { %15634 = vst [vmem:[#allocation51_spill] sm:$0xff] %v14440_v51  ;;  %vm15654_vm4 = vmmov %vm15649_vm0 }
 0x408   : > { %10289 = vmatmul.mubr.bf16.gmra.mrb[16].mxu1 %v14084_v0  ;;  %v7949_v0 = vrot.slane %v7947_v22, 2  ;;  %v14444_v22 = vsel %vm15635_vm7, %v7935_v47, %v7944_v18  ;;  %vm15656_vm1 = vmmov %vm15649_vm0 }
 0x409   : > { %10292 = vmatprep.mubr.bf16.mxu1 %v14088_v20  ;;  %v7968_v20 = vshll.u32 %v14418_v61, 16  ;;  %15636 = vst [vmem:[#allocation44_spill] sm:$0xff] %v14444_v22  ;;  %vm15657_vm14 = vmmov %vm15649_vm0 }
 0x40a   : > { %v7953_v52 = vor.u32 %v7952_v33, %v7949_v0  ;;  %v7986_v33 = vshll.u32 %v14431_v50, 16  ;;  %v14454_v0 = vld [vmem:[#allocation2 + $0x68] sm:$0xff]   ;;  %vm15660_vm8 = vmmov %vm15649_vm0 }
 0x40b   : > { %v7970_v21 = vrot.slane %v7968_v20, 3  ;;  %v7985_v20 = vrot.slane %v7983_v34, 2  ;;  %vm15661_vm3 = vmmov %vm15649_vm0 }
 0x40c   : > { %v14450_v59 = vsel %vm15637_vm6, %v7944_v18, %v7953_v52  ;;  %v14457_v17 = vsel %vm15639_vm10, %v7953_v52, %v7962_v55  ;;  %v7988_v22 = vrot.slane %v7986_v33, 3  ;;  %v7995_v18 = vshll.u32 %v14434_v46, 16  ;;  %vm15663_vm7 = vmmov %vm15659_vm5 }
 0x40d   : > { %15638 = vst [vmem:[#allocation53_spill] sm:$0xff] %v14450_v59  ;;  %15640 = vst [vmem:[#allocation55_spill] sm:$0xff] %v14457_v17  ;;  %v7971_v47 = vor.u32 %v7970_v21, %v7967_v27  ;;  %v14464_v59 = vld [vmem:[#allocation2 + $0x70] sm:$0xff]   ;;  %v7980_v52 = vor.u32 %v7979_v45, %v7976_v4  ;;  %v7994_v27 = vrot.slane %v7992_v23, 2  ;;  %v8004_v21 = vshll.u32 %v14437_v25, 16 }
 0x40e   : > { %v7997_v34 = vrot.slane %v7995_v18, 3  ;;  %v8003_v33 = vrot.slane %v8001_v63, 2  ;;  %v8010_v17 = vshrl.u32 %v14447_v12, 16  ;;  %v8015_v63 = vrot.slane %v8013_v37, 3  ;;  %vm15664_vm6 = vmmov %vm15649_vm0 }
 0x40f   : > { %v14467_v51 = vsel %vm15641_vm15, %v7962_v55, %v7971_v47  ;;  %v14474_v54 = vsel %vm15643_vm13, %v7971_v47, %v7980_v52  ;;  %v8019_v55 = vshrl.u32 %v14454_v0, 16  ;;  %v8031_v62 = vshll.u32 %v14464_v59, 16 }
 0x410   : > { %10293 = vmatmul.mubr.bf16.gmra.mrb[20].mxu1 %v14095_v48  ;;  %15642 = vst [vmem:[#allocation45_spill] sm:$0xff] %v14467_v51  ;;  %v7989_v48 = vor.u32 %v7988_v22, %v7985_v20  ;;  %15644 = vst [vmem:[#allocation56_spill] sm:$0xff] %v14474_v54  ;;  %v14478_v51 = vld [vmem:[#allocation2 + $0x80] sm:$0xff]   ;;  %v7998_v45 = vor.u32 %v7997_v34, %v7994_v27  ;;  %v8012_v23 = vrot.slane %v8010_v17, 2  ;;  %v8022_v22 = vshll.u32 %v14454_v0, 16  ;;  %v14484_v20 = vld [vmem:[#allocation2 + $0x88] sm:$0xff]  }
 0x411   : > { %10296 = vmatprep.mubr.bf16.mxu1 %v14107_v43  ;;  %v8006_v43 = vrot.slane %v8004_v21, 3  ;;  %v8021_v47 = vrot.slane %v8019_v55, 2  ;;  %v8028_v21 = vshrl.u32 %v14464_v59, 16  ;;  %v8040_v37 = vshll.u32 %v14470_v2, 16 }
 0x412   : > { %v14481_v4 = vsel %vm15645_vm11, %v7980_v52, %v7989_v48  ;;  %v14488_v54 = vsel %vm15647_vm12, %v7989_v48, %v7998_v45  ;;  %v8024_v14 = vrot.slane %v8022_v22, 3  ;;  %v8037_v52 = vshrl.u32 %v14470_v2, 16 }
 0x413   : > { %15646 = vst [vmem:[#allocation57_spill] sm:$0xff] %v14481_v4  ;;  %v8007_v18 = vor.u32 %v8006_v43, %v8003_v33  ;;  %15648 = vst [vmem:[#allocation46_spill] sm:$0xff] %v14488_v54  ;;  %v14492_v4 = vld [vmem:[#allocation2 + $0x90] sm:$0xff]   ;;  %v8016_v27 = vor.u32 %v8015_v63, %v8012_v23  ;;  %v8030_v34 = vrot.slane %v8028_v21, 2  ;;  %v14499_v33 = vld [vmem:[#allocation2 + $0x98] sm:$0xff]   ;;  %v8033_v43 = vrot.slane %v8031_v62, 3 }
 0x414   : > { %v8025_v48 = vor.u32 %v8024_v14, %v8021_v47  ;;  %v8039_v55 = vrot.slane %v8037_v52, 2  ;;  %v8046_v22 = vshrl.u32 %v14478_v51, 16  ;;  %v8049_v23 = vshll.u32 %v14478_v51, 16 }
 0x415   : > { %v14495_v17 = vsel %vm15649_vm0, %v7998_v45, %v8007_v18  ;;  %v14504_v54 = vsel %vm15651_vm2, %v8007_v18, %v8016_v27  ;;  %v8042_v45 = vrot.slane %v8040_v37, 3  ;;  %v8055_v63 = vshrl.u32 %v14484_v20, 16  ;;  %vm15674_vm0 = vmmov %vm15659_vm5 }
 0x416   : > { %15650 = vst [vmem:[#allocation58_spill] sm:$0xff] %v14495_v17  ;;  %15652 = vst [vmem:[#allocation59_spill] sm:$0xff] %v14504_v54  ;;  %v14509_v21 = vsel %vm15653_vm9, %v8016_v27, %v8025_v48  ;;  %v8048_v17 = vrot.slane %v8046_v22, 2  ;;  %v8058_v62 = vshll.u32 %v14484_v20, 16  ;;  %v8051_v47 = vrot.slane %v8049_v23, 3 }
 0x417   : > { %v8043_v14 = vor.u32 %v8042_v45, %v8039_v55  ;;  %v8057_v52 = vrot.slane %v8055_v63, 2  ;;  %v8064_v28 = vshrl.u32 %v14492_v4, 16  ;;  %v8067_v54 = vshll.u32 %v14492_v4, 16 }
 0x418   : > { %10297 = vmatmul.mubr.bf16.gmra.mrb[24].mxu1 %v14113_v13  ;;  %v8034_v13 = vor.u32 %v8033_v43, %v8030_v34  ;;  %v8060_v37 = vrot.slane %v8058_v62, 3  ;;  %v8073_v6 = vshrl.u32 %v14499_v33, 16  ;;  %v8052_v34 = vor.u32 %v8051_v47, %v8048_v17 }
 0x419   : > { %10300 = vmatprep.mubr.bf16.mxu1 %v14124_v35  ;;  %v8066_v43 = vrot.slane %v8064_v28, 2  ;;  %v8076_v55 = vshll.u32 %v14499_v33, 16  ;;  %v8069_v45 = vrot.slane %v8067_v54, 3  ;;  %v5853_v63 = vrot.slane %v14210_v5, 1 }
 0x41a   : > { %v14514_v18 = vsel %vm15654_vm4, %v8025_v48, %v8034_v13  ;;  %v14519_v27 = vsel %vm15656_vm1, %v8034_v13, %v8043_v14  ;;  %v8061_v22 = vor.u32 %v8060_v37, %v8057_v52  ;;  %v8075_v23 = vrot.slane %v8073_v6, 2 }
 0x41b   : > { %15655 = vst [vmem:[#allocation47_spill] sm:$0xff] %v14514_v18  ;;  %v14524_v48 = vsel %vm15657_vm14, %v8043_v14, %v8052_v34  ;;  %v8078_v62 = vrot.slane %v8076_v55, 3  ;;  %v9405_v18 = vcombine.low %v8369_v15, %v14398_v26  ;;  %v15658_v13 = vrot.slane %v14201_v29, 1 }
 0x41c   : > { %v14533_v17 = vsel %vm15660_vm8, %v8052_v34, %v8061_v22  ;;  %v8070_v54 = vor.u32 %v8069_v45, %v8066_v43  ;;  %v8391_v6 = vrot.slane %v14404_v42, 3  ;;  %v5855_v5 = vrot.slane %v14250_v57, 1 }
 0x41d   : > { %v5852_v28 = vsel %vm15659_vm5, %v14415_v11, %v15658_v13  ;;  %v14537_v14 = vor.u32 %v8078_v62, %v8075_v23  ;;  %v8390_v47 = vrot.slane %v9405_v18, 3  ;;  %v8393_v15 = vrot.slane %v14406_v9, 3 }
 0x41e   : > { %v14541_v26 = vsel %vm15661_vm3, %v8061_v22, %v8070_v54  ;;  %v8395_v52 = vrot.slane %v14408_v1, 3  ;;  %v8397_v11 = vrot.slane %v14410_v3, 3  ;;  %v8399_v37 = vrot.slane %v14418_v61, 3 }
 0x41f   : > { %v15662_v34 = vmov %v15658_v13  ;;  %v14551_v57 = vsel %vm15664_vm6, %v8070_v54, %v14537_v14  ;;  %vm15665_vm10 = vcmask 1044480   ;;  %v8401_v23 = vrot.slane %v14424_v49, 3  ;;  %v11459_v13 = vld [vmem:[%s15034_s3 + $0xc8] sm:$0xff]  }
 0x420   : > { %10301 = vmatmul.mubr.bf16.gmra.mrb[28].mxu1 %v14133_v10  ;;  %v5854_v43 = vsel %vm15663_vm7, %v15662_v34, %v5853_v63  ;;  %v14554_v18 = vsel %vm15665_vm10, %v8390_v47, %v8391_v6  ;;  %vm15666_vm15 = vmmov %vm15665_vm10  ;;  %v5856_v62 = vsel %vm15674_vm0, %v5853_v63, %v5855_v5  ;;  %v8405_v54 = vrot.slane %v14434_v46, 3  ;;  %v14576_v47 = vld [vmem:[#allocation2 + $0xa0] ss:$0 sps:$4 sm:$0x77]  }
 0x421   : > { %10320 = vmatprep.mubr.bf16.mxu1 %v5852_v28  ;;  %v14557_v55 = vsel %vm15666_vm15, %v8391_v6, %v8393_v15  ;;  %vm15668_vm13 = vmmov %vm15665_vm10  ;;  %v8403_v28 = vrot.slane %v14431_v50, 3  ;;  %v8407_v6 = vrot.slane %v14437_v25, 3  ;;  %v8413_v63 = vrot.slane %v14464_v59, 3 }
 0x422   : > { %15667 = vst [vmem:[#allocation60_spill] sm:$0xff] %v14557_v55  ;;  %v14560_v22 = vsel %vm15668_vm13, %v8393_v15, %v8395_v52  ;;  %vm15670_vm11 = vmmov %vm15665_vm10 }
 0x423   : > { %15669 = vst [vmem:[#allocation61_spill] sm:$0xff] %v14560_v22  ;;  %v14563_v45 = vsel %vm15670_vm11, %v8395_v52, %v8397_v11  ;;  %vm15672_vm12 = vmmov %vm15665_vm10  ;;  %v8409_v52 = vrot.slane %v14447_v12, 3  ;;  %v8415_v22 = vrot.slane %v14470_v2, 3 }
 0x424   : > { %15671 = vst [vmem:[#allocation48_spill] sm:$0xff] %v14563_v45  ;;  %v14566_v29 = vsel %vm15672_vm12, %v8397_v11, %v8399_v37  ;;  %vm15675_vm2 = vmmov %vm15665_vm10  ;;  %v8411_v11 = vrot.slane %v14454_v0, 3 }
 0x425   : > { %15673 = vst [vmem:[#allocation62_spill] sm:$0xff] %v14566_v29  ;;  %v14579_v15 = vsel %vm15675_vm2, %v8399_v37, %v8401_v23  ;;  %vm15677_vm9 = vmmov %vm15675_vm2 }
 0x426   : > { %15676 = vst [vmem:[#allocation63_spill] sm:$0xff] %v14579_v15  ;;  %v14585_v34 = vsel %vm15677_vm9, %v8401_v23, %v8403_v28  ;;  %vm15678_vm4 = vmmov %vm15675_vm2  ;;  %v8417_v23 = vrot.slane %v14478_v51, 3 }
 0x427   : > { %v14588_v29 = vsel %vm15678_vm4, %v8403_v28, %v8405_v54  ;;  %vm15680_vm1 = vmmov %vm15675_vm2 }
 0x428   : > { %15679 = vst [vmem:[#allocation49_spill] sm:$0xff] %v14588_v29  ;;  %v14591_v45 = vsel %vm15680_vm1, %v8405_v54, %v8407_v6  ;;  %10321 = vmatmul.mubr.bf16.vlgmr.msra.gmra.mrb[32].mxu1 %v5854_v43  ;;  %vm15682_vm14 = vmmov %vm15680_vm1  ;;  %v8419_v54 = vrot.slane %v14484_v20, 3  ;;  %v8421_v43 = vrot.slane %v14492_v4, 3 }
 0x429   : > { %15681 = vst [vmem:[#allocation64_spill] sm:$0xff] %v14591_v45  ;;  %v14595_v37 = vsel %vm15682_vm14, %v8407_v6, %v8409_v52  ;;  %vm15684_vm5 = vmmov %vm15680_vm1  ;;  %10357 = vmatpush3.bf16.msra.mxu1 %v14371_v7  ;;  %10324 = vmatprep.mubr.bf16.mxu1 %v5856_v62  ;;  %v8423_v6 = vrot.slane %v14499_v33, 3  ;;  %v8425_v7 = vrot.slane %v14576_v47, 3  ;;  %v11554_v62 = vld [vmem:[#allocation2 + $0x20] sm:$0xff]  }
 0x42a   : > { %15683 = vst [vmem:[#allocation65_spill] sm:$0xff] %v14595_v37  ;;  %v14598_v15 = vsel %vm15684_vm5, %v8409_v52, %v8411_v11  ;;  %vm15686_vm8 = vmmov %vm15680_vm1  ;;  %10358 = vmatprep.subr.bf16.mxu1 %v11459_v13  ;;  %v11460_v52 = vld [vmem:[%s15034_s3 + $0xd0] sm:$0xff]   ;;  %v11555_v37 = vld [vmem:[#allocation2 + $0x28] sm:$0xff]  }
 0x42b   : > { %15685 = vst [vmem:[#allocation50_spill] sm:$0xff] %v14598_v15  ;;  %v14601_v55 = vsel %vm15686_vm8, %v8411_v11, %v8413_v63  ;;  %vm15688_vm3 = vmmov %vm15680_vm1  ;;  %v5859_v45 = vrot.slane %v11555_v37, 1  ;;  %v11462_v37 = vld [vmem:[%s15034_s3 + $0xe0] sm:$0xff]  }
 0x42c   : > { %15687 = vst [vmem:[#allocation66_spill] sm:$0xff] %v14601_v55  ;;  %v14606_v28 = vsel %vm15688_vm3, %v8413_v63, %v8415_v22  ;;  %vm15690_vm7 = vmmov %vm15680_vm1  ;;  %v5857_v55 = vrot.slane %v11554_v62, 1 }
 0x42d   : > { %15689 = vst [vmem:[#allocation67_spill] sm:$0xff] %v14606_v28  ;;  %v14615_v11 = vsel %vm15690_vm7, %v8415_v22, %v8417_v23  ;;  %vm15691_vm6 = vmmov %vm15680_vm1  ;;  %10359 = vmatpush3.bf16.msra.mxu1 %v11459_v13  ;;  %v11461_v22 = vld [vmem:[%s15034_s3 + $0xd8] sm:$0xff]  }
 0x42e   : > { %v14619_v63 = vsel %vm15691_vm6, %v8417_v23, %v8419_v54  ;;  %vm15693_vm10 = vmmov %vm15680_vm1  ;;  %10360 = vmatprep.subr.bf16.mxu1 %v11460_v52  ;;  %v11557_v13 = vld [vmem:[#allocation2 + $0x38] sm:$0xff]  }
 0x42f   : > { %15692 = vst [vmem:[#allocation52_spill] sm:$0xff] %v14619_v63  ;;  %v14622_v28 = vsel %vm15693_vm10, %v8419_v54, %v8421_v43  ;;  %vm15695_vm15 = vmmov %vm15680_vm1 }
 0x430   : > { %15694 = vst [vmem:[#allocation69_spill] sm:$0xff] %v14622_v28  ;;  %v14625_v15 = vsel %vm15695_vm15, %v8421_v43, %v8423_v6  ;;  %vm15697_vm13 = vmmov %vm15680_vm1  ;;  %v11556_v43 = vld [vmem:[#allocation2 + $0x30] sm:$0xff]  }
 0x431   : > { %15696 = vst [vmem:[#allocation68_spill] sm:$0xff] %v14625_v15  ;;  %v14628_v29 = vsel %vm15697_vm13, %v8423_v6, %v8425_v7  ;;  %vm15699_vm11 = vmmov %vm15674_vm0  ;;  %10361 = vmatpush3.bf16.msra.mxu1 %v11460_v52  ;;  %v5861_v6 = vrot.slane %v11556_v43, 1  ;;  %v5863_v7 = vrot.slane %v11557_v13, 1  ;;  %v11464_v52 = vld [vmem:[%s15034_s3 + $0xf0] sm:$0xff]  }
 0x432   : > { %15698 = vst [vmem:[#allocation54_spill] sm:$0xff] %v14628_v29  ;;  %v5858_v23 = vsel %vm15699_vm11, %v5855_v5, %v5857_v55  ;;  %vm15700_vm12 = vmmov %vm15674_vm0  ;;  %10362 = vmatprep.subr.bf16.mxu1 %v11461_v22  ;;  %v11463_v5 = vld [vmem:[%s15034_s3 + $0xe8] sm:$0xff]  }
 0x433   : > { %10325 = vmatmul.mubr.bf16.gmra.mrb[0].mxu1 %v5858_v23  ;;  %v5860_v54 = vsel %vm15700_vm12, %v5857_v55, %v5859_v45  ;;  %v5862_v62 = vsel %vm15674_vm0, %v5859_v45, %v5861_v6  ;;  %vm15701_vm2 = vmmov %vm15674_vm0  ;;  %v11558_v23 = vld [vmem:[#allocation2 + $0x40] sm:$0xff]   ;;  %v11465_v45 = vld [vmem:[%s15034_s3 + $0xf8] sm:$0xff]  }
 0x434   : > { %10328 = vmatprep.mubr.bf16.mxu1 %v5860_v54  ;;  %v5864_v55 = vsel %vm15701_vm2, %v5861_v6, %v5863_v7  ;;  %v5865_v54 = vrot.slane %v11558_v23, 1  ;;  %vm15702_vm9 = vmmov %vm15674_vm0  ;;  %v11468_v6 = vld [vmem:[%s15034_s3 + $0x100] sm:$0xff]  }
 0x435   : > { %10363 = vmatpush3.bf16.msra.mxu1 %v11461_v22  ;;  %v11559_v22 = vld [vmem:[#allocation2 + $0x48] sm:$0xff]   ;;  %vm15703_vm4 = vmmov %vm15674_vm0 }
 0x436   : > { %10364 = vmatprep.subr.bf16.mxu1 %v11462_v37  ;;  %v5867_v43 = vrot.slane %v11559_v22, 1  ;;  %v5866_v13 = vsel %vm15702_vm9, %v5863_v7, %v5865_v54  ;;  %vm15704_vm1 = vmmov %vm15674_vm0 }
 0x437   : > { %vm15705_vm14 = vmmov %vm15674_vm0 }
 0x438   : > { %vm15706_vm5 = vmmov %vm15674_vm0 }
 0x439   : > { %10365 = vmatpush3.bf16.msra.mxu1 %v11462_v37  ;;  %v5868_v37 = vsel %vm15703_vm4, %v5865_v54, %v5867_v43  ;;  %v11562_v54 = vld [vmem:[#allocation2 + $0x60] sm:$0xff]   ;;  %vm15707_vm8 = vmmov %vm15674_vm0 }
 0x43a   : > { %10366 = vmatprep.subr.bf16.mxu1 %v11463_v5  ;;  %vm15708_vm3 = vmmov %vm15674_vm0 }
 0x43b   : > { %10329 = vmatmul.mubr.bf16.gmra.mrb[4].mxu1 %v5862_v62  ;;  %v11560_v62 = vld [vmem:[#allocation2 + $0x50] sm:$0xff]   ;;  %vm15709_vm7 = vmmov %vm15674_vm0 }
 0x43c   : > { %10332 = vmatprep.mubr.bf16.mxu1 %v5864_v55  ;;  %v5869_v55 = vrot.slane %v11560_v62, 1  ;;  %v11564_v62 = vld [vmem:[#allocation2 + $0x70] sm:$0xff]   ;;  %vm15710_vm6 = vmmov %vm15674_vm0 }
 0x43d   : > { %10367 = vmatpush3.bf16.msra.mxu1 %v11463_v5  ;;  %v11561_v5 = vld [vmem:[#allocation2 + $0x58] sm:$0xff]   ;;  %vm15711_vm10 = vmmov %vm15674_vm0 }
 0x43e   : > { %10368 = vmatprep.subr.bf16.mxu1 %v11464_v52  ;;  %v5871_v23 = vrot.slane %v11561_v5, 1  ;;  %v5870_v22 = vsel %vm15704_vm1, %v5867_v43, %v5869_v55  ;;  %v5877_v5 = vrot.slane %v11564_v62, 1  ;;  %v6314_v62 = vrot.slane %v14148_v40, 1  ;;  %vm15712_vm15 = vmmov %vm15674_vm0  ;;  %v11476_v40 = vld [vmem:[%s15034_s3 + $0x110] sm:$0xff]  }
 0x43f   : > { %vm15713_vm13 = vmmov %vm15674_vm0 }
 0x440   : > { %v5872_v7 = vsel %vm15705_vm14, %v5869_v55, %v5871_v23  ;;  %vm15714_vm11 = vmmov %vm15674_vm0 }
 0x441   : > { %10369 = vmatpush3.bf16.msra.mxu1 %v11464_v52  ;;  %v11563_v52 = vld [vmem:[#allocation2 + $0x68] sm:$0xff]   ;;  %vm15715_vm12 = vmmov %vm15674_vm0 }
 0x442   : > { %10370 = vmatprep.subr.bf16.mxu1 %v11465_v45  ;;  %vm15716_vm2 = vmmov %vm15674_vm0 }
 0x443   : > { %10333 = vmatmul.mubr.bf16.gmra.mrb[8].mxu1 %v5866_v13  ;;  %v5873_v13 = vrot.slane %v11562_v54, 1  ;;  %vm15717_vm9 = vmmov %vm15674_vm0 }
 0x444   : > { %10336 = vmatprep.mubr.bf16.mxu1 %v5868_v37  ;;  %v5875_v37 = vrot.slane %v11563_v52, 1  ;;  %v5885_v52 = vrot.slane %v14136_v36, 1  ;;  %vm15718_vm4 = vmmov %vm15674_vm0 }
 0x445   : > { %10371 = vmatpush3.bf16.msra.mxu1 %v11465_v45  ;;  %v5874_v29 = vsel %vm15706_vm5, %v5871_v23, %v5873_v13  ;;  %v11565_v45 = vld [vmem:[#allocation2 + $0x78] sm:$0xff]   ;;  %vm15719_vm1 = vmmov %vm15674_vm0 }
 0x446   : > { %10408 = vmatprep.subr.bf16.mxu1 %v11468_v6  ;;  %v5876_v15 = vsel %vm15707_vm8, %v5873_v13, %v5875_v37  ;;  %v5879_v28 = vrot.slane %v11565_v45, 1  ;;  %v5878_v55 = vsel %vm15708_vm3, %v5875_v37, %v5877_v5  ;;  %v6313_v37 = vrot.slane %v14146_v58, 1  ;;  %vm15720_vm14 = vmmov %vm15674_vm0 }
 0x447   : > { %vm15721_vm5 = vmmov %vm15674_vm0 }
 0x448   : > { %v6315_v45 = vsel %vm15713_vm13, %v6313_v37, %v6314_v62  ;;  %v11491_v37 = vld [vmem:[%s15034_s3 + $0x138] sm:$0xff]   ;;  %vm15722_vm8 = vmmov %vm15674_vm0 }
 0x449   : > { %vm15723_vm3 = vmmov %vm15674_vm0 }
 0x44a   : > { %vm15730_vm13 = vmmov %vm15674_vm0 }
 0x44b   : > { %10337 = vmatmul.mubr.bf16.gmra.mrb[12].mxu1 %v5870_v22 }
 0x44c   : > { %10340 = vmatprep.mubr.bf16.mxu1 %v5872_v7  ;;  %v5880_v7 = vsel %vm15709_vm7, %v5877_v5, %v5879_v28  ;;  %vm15724_vm7 = vmmov %vm15674_vm0 }
 0x44d   : > { %v14658_v63 = vpop.f32.mrb[36].mxu0 }
 0x44e   : > { %v14660_v43 = vpop.f32.mrb[37].mxu0 }
 0x44f   : > { %v14663_v22 = vpop.f32.mrb[38].mxu0 }
 0x450   : > { %v14666_v23 = vpop.f32.mrb[39].mxu0 }
 0x453   : > { %10341 = vmatmul.mubr.bf16.gmra.mrb[16].mxu1 %v5874_v29  ;;  %v5881_v29 = vrot.slane %v14124_v35, 1  ;;  %v6316_v35 = vrot.slane %v14150_v60, 1  ;;  %v6320_v60 = vrot.slane %v14155_v19, 1  ;;  %v11482_v19 = vld [vmem:[%s15034_s3 + $0x120] sm:$0xff]  }
 0x454   : > { %10344 = vmatprep.mubr.bf16.mxu1 %v5876_v15  ;;  %v5883_v15 = vrot.slane %v14133_v10, 1  ;;  %v6318_v10 = vrot.slane %v14152_v31, 1  ;;  %v6322_v31 = vrot.slane %v14165_v56, 1  ;;  %v6324_v56 = vrot.slane %v14172_v32, 1  ;;  %v11488_v32 = vld [vmem:[%s15034_s3 + $0x130] sm:$0xff]  }
 0x455   : > { %v5882_v54 = vsel %vm15710_vm6, %v5879_v28, %v5881_v29  ;;  %v11472_v28 = vld [vmem:[%s15034_s3 + $0x108] sm:$0xff]   ;;  %v6317_v36 = vsel %vm15714_vm11, %v6314_v62, %v6316_v35  ;;  %vm15725_vm6 = vmmov %vm15674_vm0 }
 0x456   : > { %v5884_v13 = vsel %vm15711_vm10, %v5881_v29, %v5883_v15  ;;  %v5886_v5 = vsel %vm15712_vm15, %v5883_v15, %v5885_v52  ;;  %v6319_v58 = vsel %vm15715_vm12, %v6316_v35, %v6318_v10  ;;  %v6326_v29 = vrot.slane %v14175_v53, 1  ;;  %v11485_v15 = vld [vmem:[%s15034_s3 + $0x128] sm:$0xff]   ;;  %vm15726_vm10 = vmmov %vm15674_vm0 }
 0x457   : > { %v6328_v53 = vrot.slane %v14178_v24, 1  ;;  %v6330_v52 = vrot.slane %v14182_v30, 1  ;;  %v11493_v24 = vld [vmem:[%s15034_s3 + $0x140] sm:$0xff]   ;;  %v6332_v30 = vrot.slane %v14198_v39, 1  ;;  %v6340_v39 = vrot.slane %v14232_v41, 1  ;;  %vm15729_vm15 = vmmov %vm15674_vm0 }
 0x458   : > { %vm15731_vm11 = vmmov %vm15674_vm0  ;;  %vm15751_vm12 = vsmask.f32 6400 }
 0x459   : > { %v6329_v62 = vsel %vm15719_vm1, %v6326_v29, %v6328_v53  ;;  %v6333_v35 = vsel %vm15721_vm5, %v6330_v52, %v6332_v30 }
 0x45b   : > { %10345 = vmatmul.mubr.bf16.gmra.mrb[20].mxu1 %v5878_v55  ;;  %v11479_v55 = vld [vmem:[%s15034_s3 + $0x118] sm:$0xff]  }
 0x45c   : > { %10348 = vmatprep.mubr.bf16.mxu1 %v5880_v7  ;;  %v6321_v7 = vsel %vm15674_vm0, %v6318_v10, %v6320_v60  ;;  %vm15771_vm0 = vcmask 1045504  }
 0x45d   : > { %vm15775_vm1 = vmmov %vm15771_vm0 }
 0x45e   : > { %vm15777_vm5 = vmmov %vm15771_vm0 }
 0x463   : > { %10349 = vmatmul.mubr.bf16.gmra.mrb[24].mxu1 %v5882_v54  ;;  %v6325_v54 = vsel %vm15717_vm9, %v6322_v31, %v6324_v56  ;;  %vm15773_vm9 = vmmov %vm15771_vm0 }
 0x464   : > { %10352 = vmatprep.mubr.bf16.mxu1 %v5884_v13  ;;  %v6327_v13 = vsel %vm15718_vm4, %v6324_v56, %v6326_v29  ;;  %v15732_v29 = vld [vmem:[#allocation6_spill] sm:$0xff]  ;;  %vm15774_vm4 = vmmov %vm15771_vm0 }
 0x46b   : > { %10353 = vmatmul.mubr.bf16.gmra.mrb[28].mxu1 %v5886_v5  ;;  %v6331_v5 = vsel %vm15720_vm14, %v6328_v53, %v6330_v52  ;;  %v11496_v53 = vld [vmem:[%s15034_s3 + $0x158] sm:$0xff]   ;;  %v15735_v52 = vld [vmem:[#allocation8_spill] sm:$0xff]  ;;  %vm15776_vm14 = vmmov %vm15771_vm0 }
 0x46c   : > { %10372 = vmatprep.mubr.bf16.mxu1 %v6315_v45  ;;  %v6334_v45 = vrot.slane %v14204_v16, 1  ;;  %v6342_v16 = vrot.slane %v14247_v44, 1 }
 0x46e   : > { %v6335_v10 = vsel %vm15722_vm8, %v6332_v30, %v6334_v45  ;;  %v15738_v30 = vld [vmem:[#allocation12_spill] sm:$0xff]  ;;  %vm15778_vm8 = vmmov %vm15771_vm0 }
 0x473   : > { %10373 = vmatmul.mubr.bf16.vlgmr.msra.gmra.mrb[32].mxu1 %v6317_v36  ;;  %v6338_v36 = vrot.slane %v14230_v8, 1 }
 0x474   : > { %10409 = vmatpush3.bf16.msra.mxu1 %v11468_v6  ;;  %10376 = vmatprep.mubr.bf16.mxu1 %v6319_v58  ;;  %v6323_v6 = vsel %vm15716_vm2, %v6320_v60, %v6322_v31  ;;  %v6343_v31 = vsel %vm15726_vm10, %v6340_v39, %v6342_v16  ;;  %vm15772_vm2 = vmmov %vm15771_vm0 }
 0x475   : > { %10410 = vmatprep.subr.bf16.mxu1 %v11472_v28  ;;  %v6341_v60 = vsel %vm15725_vm6, %v6338_v36, %v6340_v39  ;;  %v15743_v39 = vld [vmem:[#allocation17_spill] sm:$0xff]  ;;  %vm15781_vm6 = vmmov %vm15771_vm0 }
 0x476   : > { %vm15782_vm10 = vmmov %vm15771_vm0 }
 0x478   : > { %10411 = vmatpush3.bf16.msra.mxu1 %v11472_v28  ;;  %v6336_v28 = vrot.slane %v14213_v38, 1 }
 0x479   : > { %10412 = vmatprep.subr.bf16.mxu1 %v11476_v40 }
 0x47a   : > { %v6337_v58 = vsel %vm15723_vm3, %v6334_v45, %v6336_v28  ;;  %v11499_v45 = vld [vmem:[%s15034_s3 + $0x170] sm:$0xff]   ;;  %vm15779_vm3 = vmmov %vm15771_vm0 }
 0x47b   : > { %10377 = vmatmul.mubr.bf16.gmra.mrb[0].mxu1 %v6321_v7  ;;  %v15728_v7 = vld [vmem:[#allocation16_spill] sm:$0xff] }
 0x47c   : > { %10380 = vmatprep.mubr.bf16.mxu1 %v6323_v6  ;;  %10413 = vmatpush3.bf16.msra.mxu1 %v11476_v40  ;;  %v6339_v40 = vsel %vm15724_vm7, %v6336_v28, %v6338_v36  ;;  %v6346_v8 = vrot.slane %v15728_v7, 1  ;;  %v15740_v28 = vld [vmem:[#allocation14_spill] sm:$0xff]  ;;  %vm15780_vm7 = vmmov %vm15771_vm0 }
 0x47d   : > { %10414 = vmatprep.subr.bf16.mxu1 %v11479_v55  ;;  %v11503_v36 = vld [vmem:[%s15034_s3 + $0x180] sm:$0xff]  }
 0x480   : > { %10415 = vmatpush3.bf16.msra.mxu1 %v11479_v55  ;;  %v15727_v55 = vld [vmem:[#allocation5_spill] sm:$0xff] }
 0x481   : > { %10416 = vmatprep.subr.bf16.mxu1 %v11482_v19  ;;  %v6344_v38 = vrot.slane %v15727_v55, 1  ;;  %v15747_v55 = vld [vmem:[#allocation21_spill] sm:$0xff] }
 0x482   : > { %v6815_v7 = vshll.u32 %v15747_v55, 16 }
 0x483   : > { %10381 = vmatmul.mubr.bf16.gmra.mrb[4].mxu1 %v6325_v54  ;;  %v6345_v6 = vsel %vm15729_vm15, %v6342_v16, %v6344_v38  ;;  %v6347_v56 = vsel %vm15730_vm13, %v6344_v38, %v6346_v8  ;;  %v15733_v54 = vld [vmem:[#allocation7_spill] sm:$0xff]  ;;  %v15744_v16 = vld [vmem:[#allocation13_spill] sm:$0xff]  ;;  %v6812_v38 = vshrl.u32 %v15747_v55, 16  ;;  %v15766_v55 = vld [vmem:[#allocation28_spill] sm:$0xff] }
 0x484   : > { %10384 = vmatprep.mubr.bf16.mxu1 %v6327_v13  ;;  %10417 = vmatpush3.bf16.msra.mxu1 %v11482_v19  ;;  %v11492_v19 = vld [vmem:[#allocation2 + $0x98] ss:$0 sps:$4 sm:$0x11]   ;;  %v15734_v13 = vld [vmem:[#allocation3_spill] sm:$0xff]  ;;  %vm15783_vm15 = vmmov %vm15771_vm0 }
 0x485   : > { %10418 = vmatprep.subr.bf16.mxu1 %v11485_v15  ;;  %v6348_v41 = vrot.slane %v11492_v19, 1  ;;  %v15748_v19 = vld [vmem:[#allocation15_spill] sm:$0xff]  ;;  %vm15784_vm13 = vmmov %vm15771_vm0 }
 0x487   : > { %v6349_v44 = vsel %vm15731_vm11, %v6346_v8, %v6348_v41  ;;  %v6814_v8 = vrot.slane %v6812_v38, 1  ;;  %v15767_v38 = vld [vmem:[#allocation39_spill] sm:$0xff]  ;;  %vm15785_vm11 = vmmov %vm15771_vm0 }
 0x488   : > { %10419 = vmatpush3.bf16.msra.mxu1 %v11485_v15  ;;  %v11494_v15 = vld [vmem:[%s15034_s3 + $0x148] sm:$0xff]  }
 0x489   : > { %10420 = vmatprep.subr.bf16.mxu1 %v11488_v32 }
 0x48b   : > { %10385 = vmatmul.mubr.bf16.gmra.mrb[8].mxu1 %v6329_v62  ;;  %v11497_v62 = vld [vmem:[%s15034_s3 + $0x160] sm:$0xff]  }
 0x48c   : > { %10388 = vmatprep.mubr.bf16.mxu1 %v6331_v5  ;;  %10421 = vmatpush3.bf16.msra.mxu1 %v11488_v32  ;;  %v11495_v32 = vld [vmem:[%s15034_s3 + $0x150] sm:$0xff]   ;;  %v11498_v5 = vld [vmem:[%s15034_s3 + $0x168] sm:$0xff]  }
 0x48d   : > { %10422 = vmatprep.subr.bf16.mxu1 %v11491_v37 }
 0x490   : > { %10423 = vmatpush3.bf16.msra.mxu1 %v11491_v37  ;;  %v15736_v37 = vld [vmem:[#allocation9_spill] sm:$0xff] }
 0x491   : > { %10460 = vmatprep.subr.bf16.mxu1 %v11493_v24 }
 0x493   : > { %10389 = vmatmul.mubr.bf16.gmra.mrb[12].mxu1 %v6333_v35  ;;  %v11500_v35 = vld [vmem:[%s15034_s3 + $0x178] sm:$0xff]  }
 0x494   : > { %10392 = vmatprep.mubr.bf16.mxu1 %v6335_v10  ;;  %v15739_v10 = vld [vmem:[#allocation10_spill] sm:$0xff] }
 0x49b   : > { %10393 = vmatmul.mubr.bf16.gmra.mrb[16].mxu1 %v6337_v58  ;;  %v15741_v58 = vld [vmem:[#allocation11_spill] sm:$0xff] }
 0x49c   : > { %10396 = vmatprep.mubr.bf16.mxu1 %v6339_v40  ;;  %v15742_v40 = vld [vmem:[#allocation27_spill] sm:$0xff] }
 0x4a3   : > { %10397 = vmatmul.mubr.bf16.gmra.mrb[20].mxu1 %v6341_v60  ;;  %v15745_v60 = vld [vmem:[#allocation29_spill] sm:$0xff] }
 0x4a4   : > { %10400 = vmatprep.mubr.bf16.mxu1 %v6343_v31  ;;  %v15746_v31 = vld [vmem:[#allocation20_spill] sm:$0xff] }
 0x4ab   : > { %10401 = vmatmul.mubr.bf16.gmra.mrb[24].mxu1 %v6345_v6  ;;  %v6817_v6 = vrot.slane %v6815_v7, 2  ;;  %v15768_v7 = vld [vmem:[#allocation42_spill] sm:$0xff] }
 0x4ac   : > { %10404 = vmatprep.mubr.bf16.mxu1 %v6347_v56  ;;  %v15749_v56 = vld [vmem:[#allocation26_spill] sm:$0xff] }
 0x4ad   : > { %v6818_v41 = vor.u32 %v6817_v6, %v6814_v8  ;;  %v7584_v8 = vrot.slane %v14404_v42, 2  ;;  %v15769_v6 = vld [vmem:[#allocation43_spill] sm:$0xff] }
 0x4b3   : > { %10405 = vmatmul.mubr.bf16.gmra.mrb[28].mxu1 %v6349_v44  ;;  %v15750_v44 = vld [vmem:[#allocation31_spill] sm:$0xff] }
 0x4b4   : > { %10424 = vmatprep.mubr.bf16.mxu1 %v15732_v29  ;;  %v6819_v29 = vsel %vm15751_vm12, %v15750_v44, %v6818_v41  ;;  %v7586_v44 = vrot.slane %v14406_v9, 2  ;;  %v7590_v9 = vrot.slane %v14410_v3, 2  ;;  %v11527_v3 = vld [vmem:[%s15034_s3 + $0x1e0] sm:$0xff]   ;;  %vm15786_vm12 = vmmov %vm15771_vm0 }
 0x4bb   : > { %10425 = vmatmul.mubr.bf16.vlgmr.msra.gmra.mrb[32].mxu1 %v15733_v54  ;;  %v11504_v54 = vld [vmem:[%s15034_s3 + $0x188] sm:$0xff]  }
 0x4bc   : > { %10461 = vmatpush3.bf16.msra.mxu1 %v11493_v24  ;;  %10428 = vmatprep.mubr.bf16.mxu1 %v15734_v13  ;;  %v15737_v24 = vld [vmem:[#allocation4_spill] sm:$0xff]  ;;  %v15753_v13 = vld [vmem:[#allocation18_spill] sm:$0xff] }
 0x4bd   : > { %10462 = vmatprep.subr.bf16.mxu1 %v11494_v15 }
 0x4c0   : > { %10463 = vmatpush3.bf16.msra.mxu1 %v11494_v15  ;;  %v15752_v15 = vld [vmem:[#allocation23_spill] sm:$0xff] }
 0x4c1   : > { %10464 = vmatprep.subr.bf16.mxu1 %v11495_v32 }
 0x4c3   : > { %10429 = vmatmul.mubr.bf16.gmra.mrb[0].mxu1 %v15735_v52  ;;  %v11506_v52 = vld [vmem:[%s15034_s3 + $0x198] sm:$0xff]  }
 0x4c4   : > { %10432 = vmatprep.mubr.bf16.mxu1 %v15736_v37  ;;  %10465 = vmatpush3.bf16.msra.mxu1 %v11495_v32  ;;  %v15754_v32 = vld [vmem:[#allocation32_spill] sm:$0xff]  ;;  %v15755_v37 = vld [vmem:[#allocation19_spill] sm:$0xff] }
 0x4c5   : > { %10466 = vmatprep.subr.bf16.mxu1 %v11496_v53 }
 0x4c8   : > { %10467 = vmatpush3.bf16.msra.mxu1 %v11496_v53  ;;  %v11505_v53 = vld [vmem:[%s15034_s3 + $0x190] sm:$0xff]  }
 0x4c9   : > { %10468 = vmatprep.subr.bf16.mxu1 %v11497_v62 }
 0x4cb   : > { %10433 = vmatmul.mubr.bf16.gmra.mrb[4].mxu1 %v15737_v24  ;;  %v11508_v24 = vld [vmem:[%s15034_s3 + $0x1a8] sm:$0xff]  }
 0x4cc   : > { %10436 = vmatprep.mubr.bf16.mxu1 %v15738_v30  ;;  %10469 = vmatpush3.bf16.msra.mxu1 %v11497_v62  ;;  %v15756_v62 = vld [vmem:[#allocation33_spill] sm:$0xff]  ;;  %v15757_v30 = vld [vmem:[#allocation30_spill] sm:$0xff] }
 0x4cd   : > { %10470 = vmatprep.subr.bf16.mxu1 %v11498_v5 }
 0x4d0   : > { %10471 = vmatpush3.bf16.msra.mxu1 %v11498_v5  ;;  %v11507_v5 = vld [vmem:[%s15034_s3 + $0x1a0] sm:$0xff]  }
 0x4d1   : > { %10472 = vmatprep.subr.bf16.mxu1 %v11499_v45 }
 0x4d3   : > { %10437 = vmatmul.mubr.bf16.gmra.mrb[8].mxu1 %v15739_v10  ;;  %v11510_v10 = vld [vmem:[%s15034_s3 + $0x1b8] sm:$0xff]  }
 0x4d4   : > { %10440 = vmatprep.mubr.bf16.mxu1 %v15740_v28  ;;  %10473 = vmatpush3.bf16.msra.mxu1 %v11499_v45  ;;  %v15758_v45 = vld [vmem:[#allocation35_spill] sm:$0xff]  ;;  %v15759_v28 = vld [vmem:[#allocation34_spill] sm:$0xff] }
 0x4d5   : > { %10474 = vmatprep.subr.bf16.mxu1 %v11500_v35 }
 0x4d8   : > { %10475 = vmatpush3.bf16.msra.mxu1 %v11500_v35  ;;  %v11509_v35 = vld [vmem:[%s15034_s3 + $0x1b0] sm:$0xff]  }
 0x4d9   : > { %10512 = vmatprep.subr.bf16.mxu1 %v11503_v36 }
 0x4db   : > { %10441 = vmatmul.mubr.bf16.gmra.mrb[12].mxu1 %v15741_v58  ;;  %v11513_v58 = vld [vmem:[%s15034_s3 + $0x1c0] sm:$0xff]  }
 0x4dc   : > { %10444 = vmatprep.mubr.bf16.mxu1 %v15742_v40  ;;  %v15761_v40 = vld [vmem:[#allocation37_spill] sm:$0xff] }
 0x4e3   : > { %10445 = vmatmul.mubr.bf16.gmra.mrb[16].mxu1 %v15743_v39  ;;  %v15762_v39 = vld [vmem:[#allocation36_spill] sm:$0xff] }
 0x4e4   : > { %10448 = vmatprep.mubr.bf16.mxu1 %v15744_v16  ;;  %v15763_v16 = vld [vmem:[#allocation25_spill] sm:$0xff] }
 0x4eb   : > { %10449 = vmatmul.mubr.bf16.gmra.mrb[20].mxu1 %v15745_v60  ;;  %v15764_v60 = vld [vmem:[#allocation40_spill] sm:$0xff] }
 0x4ec   : > { %10452 = vmatprep.mubr.bf16.mxu1 %v15746_v31  ;;  %v15765_v31 = vld [vmem:[#allocation38_spill] sm:$0xff] }
 0x4f3   : > { %10453 = vmatmul.mubr.bf16.gmra.mrb[24].mxu1 %v15748_v19  ;;  %v7583_v19 = vrot.slane %v15769_v6, 2  ;;  %v15788_v6 = vld [vmem:[#allocation51_spill] sm:$0xff] }
 0x4f4   : > { %10456 = vmatprep.mubr.bf16.mxu1 %v15749_v56  ;;  %v15770_v56 = vld [vmem:[#allocation41_spill] sm:$0xff] }
 0x4f5   : > { %v7585_v41 = vsel %vm15771_vm0, %v7583_v19, %v7584_v8  ;;  %v11539_v19 = vld [vmem:[%s15034_s3 + $0x208] sm:$0xff]  }
 0x4fb   : > { %10457 = vmatmul.mubr.bf16.gmra.mrb[28].mxu1 %v6819_v29  ;;  %v7588_v29 = vrot.slane %v14408_v1, 2  ;;  %v7592_v1 = vrot.slane %v14418_v61, 2  ;;  %v7594_v61 = vrot.slane %v14424_v49, 2  ;;  %v11533_v49 = vld [vmem:[%s15034_s3 + $0x1f0] sm:$0xff]  }
 0x4fc   : > { %10476 = vmatprep.mubr.bf16.mxu1 %v15752_v15  ;;  %v11517_v15 = vld [vmem:[%s15034_s3 + $0x1c8] sm:$0xff]  }
 0x4fd   : > { %v7589_v42 = vsel %vm15773_vm9, %v7586_v44, %v7588_v29  ;;  %vm15799_vm9 = vsmask.f32 5376 }
 0x503   : > { %10477 = vmatmul.mubr.bf16.vlgmr.msra.gmra.mrb[32].mxu1 %v15753_v13  ;;  %v11521_v13 = vld [vmem:[%s15034_s3 + $0x1d0] sm:$0xff]  }
 0x504   : > { %10513 = vmatpush3.bf16.msra.mxu1 %v11503_v36  ;;  %10480 = vmatprep.mubr.bf16.mxu1 %v15754_v32  ;;  %v15760_v36 = vld [vmem:[#allocation24_spill] sm:$0xff]  ;;  %v11524_v32 = vld [vmem:[%s15034_s3 + $0x1d8] sm:$0xff]  }
 0x505   : > { %10514 = vmatprep.subr.bf16.mxu1 %v11504_v54 }
 0x508   : > { %10515 = vmatpush3.bf16.msra.mxu1 %v11504_v54  ;;  %v7587_v54 = vsel %vm15772_vm2, %v7584_v8, %v7586_v44  ;;  %vm15787_vm2 = vmmov %vm15771_vm0  ;;  %v15791_v44 = vld [vmem:[#allocation55_spill] sm:$0xff] }
 0x509   : > { %10516 = vmatprep.subr.bf16.mxu1 %v11505_v53 }
 0x50b   : > { %10481 = vmatmul.mubr.bf16.gmra.mrb[0].mxu1 %v15755_v37  ;;  %v7596_v37 = vrot.slane %v14431_v50, 2  ;;  %v7598_v50 = vrot.slane %v14434_v46, 2  ;;  %v11538_v46 = vld [vmem:[%s15034_s3 + $0x200] sm:$0xff]  }
 0x50c   : > { %10484 = vmatprep.mubr.bf16.mxu1 %v15756_v62  ;;  %10517 = vmatpush3.bf16.msra.mxu1 %v11505_v53  ;;  %v7591_v53 = vsel %vm15774_vm4, %v7588_v29, %v7590_v9  ;;  %v11530_v62 = vld [vmem:[%s15034_s3 + $0x1e8] sm:$0xff]   ;;  %v15792_v29 = vld [vmem:[#allocation45_spill] sm:$0xff] }
 0x50d   : > { %10518 = vmatprep.subr.bf16.mxu1 %v11506_v52 }
 0x510   : > { %10519 = vmatpush3.bf16.msra.mxu1 %v11506_v52  ;;  %v7593_v52 = vsel %vm15775_vm1, %v7590_v9, %v7592_v1  ;;  %v11544_v9 = vld [vmem:[%s15034_s3 + $0x230] sm:$0xff]  }
 0x511   : > { %10520 = vmatprep.subr.bf16.mxu1 %v11507_v5 }
 0x513   : > { %10485 = vmatmul.mubr.bf16.gmra.mrb[4].mxu1 %v15757_v30  ;;  %v7600_v30 = vrot.slane %v14437_v25, 2  ;;  %v7602_v25 = vrot.slane %v14447_v12, 2  ;;  %v7610_v12 = vrot.slane %v14478_v51, 2 }
 0x514   : > { %10488 = vmatprep.mubr.bf16.mxu1 %v15758_v45  ;;  %10521 = vmatpush3.bf16.msra.mxu1 %v11507_v5  ;;  %v7595_v5 = vsel %vm15776_vm14, %v7592_v1, %v7594_v61  ;;  %v11536_v45 = vld [vmem:[%s15034_s3 + $0x1f8] sm:$0xff]  }
 0x515   : > { %10522 = vmatprep.subr.bf16.mxu1 %v11508_v24  ;;  %v11545_v1 = vld [vmem:[%s15034_s3 + $0x238] sm:$0xff]  }
 0x518   : > { %10523 = vmatpush3.bf16.msra.mxu1 %v11508_v24  ;;  %v7597_v24 = vsel %vm15777_vm5, %v7594_v61, %v7596_v37  ;;  %v8082_v61 = vshrl.u32 %v14576_v47, 16 }
 0x519   : > { %10524 = vmatprep.subr.bf16.mxu1 %v11509_v35 }
 0x51b   : > { %10489 = vmatmul.mubr.bf16.gmra.mrb[8].mxu1 %v15759_v28  ;;  %v7604_v28 = vrot.slane %v14454_v0, 2  ;;  %v7612_v0 = vrot.slane %v14484_v20, 2 }
 0x51c   : > { %10492 = vmatprep.mubr.bf16.mxu1 %v15760_v36  ;;  %10525 = vmatpush3.bf16.msra.mxu1 %v11509_v35  ;;  %v7599_v35 = vsel %vm15778_vm8, %v7596_v37, %v7598_v50  ;;  %v7603_v36 = vsel %vm15780_vm7, %v7600_v30, %v7602_v25  ;;  %v8085_v37 = vshll.u32 %v14576_v47, 16  ;;  %v15803_v47 = vld [vmem:[#allocation62_spill] sm:$0xff] }
 0x51d   : > { %10526 = vmatprep.subr.bf16.mxu1 %v11510_v10 }
 0x520   : > { %10527 = vmatpush3.bf16.msra.mxu1 %v11510_v10  ;;  %v7601_v10 = vsel %vm15779_vm3, %v7598_v50, %v7600_v30  ;;  %v15809_v50 = vld [vmem:[#allocation66_spill] sm:$0xff]  ;;  %v15810_v30 = vld [vmem:[#allocation67_spill] sm:$0xff] }
 0x521   : > { %10564 = vmatprep.subr.bf16.mxu1 %v11513_v58 }
 0x523   : > { %10493 = vmatmul.mubr.bf16.gmra.mrb[12].mxu1 %v15761_v40  ;;  %v7606_v40 = vrot.slane %v14464_v59, 2  ;;  %v7614_v59 = vrot.slane %v14492_v4, 2  ;;  %v15789_v4 = vld [vmem:[#allocation44_spill] sm:$0xff] }
 0x524   : > { %10496 = vmatprep.mubr.bf16.mxu1 %v15762_v39  ;;  %v7608_v39 = vrot.slane %v14470_v2, 2  ;;  %v7616_v2 = vrot.slane %v14499_v33, 2  ;;  %v15790_v33 = vld [vmem:[#allocation53_spill] sm:$0xff] }
 0x526   : > { %v7617_v8 = vsel %vm15771_vm0, %v7614_v59, %v7616_v2 }
 0x52b   : > { %10497 = vmatmul.mubr.bf16.gmra.mrb[16].mxu1 %v15763_v16  ;;  %v7607_v16 = vsel %vm15782_vm10, %v7604_v28, %v7606_v40 }
 0x52c   : > { %10500 = vmatprep.mubr.bf16.mxu1 %v15764_v60  ;;  %v7609_v60 = vsel %vm15783_vm15, %v7606_v40, %v7608_v39 }
 0x533   : > { %10501 = vmatmul.mubr.bf16.gmra.mrb[20].mxu1 %v15765_v31  ;;  %v7611_v31 = vsel %vm15784_vm13, %v7608_v39, %v7610_v12 }
 0x534   : > { %10504 = vmatprep.mubr.bf16.mxu1 %v15766_v55  ;;  %v7613_v55 = vsel %vm15785_vm11, %v7610_v12, %v7612_v0 }
 0x53b   : > { %10505 = vmatmul.mubr.bf16.gmra.mrb[24].mxu1 %v15767_v38  ;;  %v7615_v38 = vsel %vm15786_vm12, %v7612_v0, %v7614_v59 }
 0x53c   : > { %10508 = vmatprep.mubr.bf16.mxu1 %v15768_v7  ;;  %v11537_v7 = vld [vmem:[#allocation2 + $0xa0] ss:$0 sps:$4 sm:$0x33]  }
 0x53d   : > { %v7618_v51 = vrot.slane %v11537_v7, 2 }
 0x53f   : > { %v7619_v20 = vsel %vm15787_vm2, %v7616_v2, %v7618_v51 }
 0x543   : > { %10509 = vmatmul.mubr.bf16.gmra.mrb[28].mxu1 %v15770_v56  ;;  %v11540_v56 = vld [vmem:[%s15034_s3 + $0x210] sm:$0xff]  }
 0x544   : > { %10528 = vmatprep.mubr.bf16.mxu1 %v7585_v41  ;;  %v11541_v41 = vld [vmem:[%s15034_s3 + $0x218] sm:$0xff]  }
 0x54b   : > { %10529 = vmatmul.mubr.bf16.vlgmr.msra.gmra.mrb[32].mxu1 %v7587_v54  ;;  %v11543_v54 = vld [vmem:[%s15034_s3 + $0x228] sm:$0xff]  }
 0x54c   : > { %10565 = vmatpush3.bf16.msra.mxu1 %v11513_v58  ;;  %10532 = vmatprep.mubr.bf16.mxu1 %v7589_v42  ;;  %v7605_v58 = vsel %vm15781_vm6, %v7602_v25, %v7604_v28  ;;  %v15793_v42 = vld [vmem:[#allocation56_spill] sm:$0xff]  ;;  %v14945_v25 = vld [vmem:[%s15035_s4] ss:$0 sm:$0xff] }
 0x54d   : > { %10566 = vmatprep.subr.bf16.mxu1 %v11517_v15 }
 0x550   : > { %10567 = vmatpush3.bf16.msra.mxu1 %v11517_v15  ;;  %v11542_v15 = vld [vmem:[%s15034_s3 + $0x220] sm:$0xff]  }
 0x551   : > { %10568 = vmatprep.subr.bf16.mxu1 %v11521_v13 }
 0x553   : > { %10533 = vmatmul.mubr.bf16.gmra.mrb[0].mxu1 %v7591_v53  ;;  %v15796_v53 = vld [vmem:[#allocation58_spill] sm:$0xff] }
 0x554   : > { %10536 = vmatprep.mubr.bf16.mxu1 %v7593_v52  ;;  %10569 = vmatpush3.bf16.msra.mxu1 %v11521_v13  ;;  %v15794_v13 = vld [vmem:[#allocation57_spill] sm:$0xff]  ;;  %v15797_v52 = vld [vmem:[#allocation59_spill] sm:$0xff] }
 0x555   : > { %10570 = vmatprep.subr.bf16.mxu1 %v11524_v32 }
 0x558   : > { %10571 = vmatpush3.bf16.msra.mxu1 %v11524_v32  ;;  %v15795_v32 = vld [vmem:[#allocation46_spill] sm:$0xff] }
 0x559   : > { %10572 = vmatprep.subr.bf16.mxu1 %v11527_v3 }
 0x55b   : > { %10537 = vmatmul.mubr.bf16.gmra.mrb[4].mxu1 %v7595_v5  ;;  %v8087_v5 = vrot.slane %v8085_v37, 3 }
 0x55c   : > { %10540 = vmatprep.mubr.bf16.mxu1 %v7597_v24  ;;  %10573 = vmatpush3.bf16.msra.mxu1 %v11527_v3  ;;  %v15798_v3 = vld [vmem:[#allocation47_spill] sm:$0xff] }
 0x55d   : > { %10574 = vmatprep.subr.bf16.mxu1 %v11530_v62 }
 0x560   : > { %10575 = vmatpush3.bf16.msra.mxu1 %v11530_v62  ;;  %v8084_v62 = vrot.slane %v8082_v61, 2 }
 0x561   : > { %10576 = vmatprep.subr.bf16.mxu1 %v11533_v49 }
 0x562   : > { %v8088_v24 = vor.u32 %v8087_v5, %v8084_v62 }
 0x563   : > { %10541 = vmatmul.mubr.bf16.gmra.mrb[8].mxu1 %v7599_v35  ;;  %v15812_v35 = vld [vmem:[#allocation69_spill] sm:$0xff] }
 0x564   : > { %10544 = vmatprep.mubr.bf16.mxu1 %v7601_v10  ;;  %10577 = vmatpush3.bf16.msra.mxu1 %v11533_v49  ;;  %v15804_v49 = vld [vmem:[#allocation63_spill] sm:$0xff]  ;;  %v15813_v10 = vld [vmem:[#allocation68_spill] sm:$0xff] }
 0x565   : > { %10578 = vmatprep.subr.bf16.mxu1 %v11536_v45 }
 0x568   : > { %10579 = vmatpush3.bf16.msra.mxu1 %v11536_v45  ;;  %v15811_v45 = vld [vmem:[#allocation52_spill] sm:$0xff] }
 0x569   : > { %10616 = vmatprep.subr.bf16.mxu1 %v11538_v46 }
 0x56b   : > { %10545 = vmatmul.mubr.bf16.gmra.mrb[12].mxu1 %v7603_v36 }
 0x56c   : > { %10548 = vmatprep.mubr.bf16.mxu1 %v7605_v58 }
 0x573   : > { %10549 = vmatmul.mubr.bf16.gmra.mrb[16].mxu1 %v7607_v16 }
 0x574   : > { %10552 = vmatprep.mubr.bf16.mxu1 %v7609_v60 }
 0x57b   : > { %10553 = vmatmul.mubr.bf16.gmra.mrb[20].mxu1 %v7611_v31 }
 0x57c   : > { %10556 = vmatprep.mubr.bf16.mxu1 %v7613_v55 }
 0x583   : > { %10557 = vmatmul.mubr.bf16.gmra.mrb[24].mxu1 %v7615_v38 }
 0x584   : > { %10560 = vmatprep.mubr.bf16.mxu1 %v7617_v8 }
 0x58b   : > { %10561 = vmatmul.mubr.bf16.gmra.mrb[28].mxu1 %v7619_v20 }
 0x58c   : > { %10580 = vmatprep.mubr.bf16.mxu1 %v15788_v6 }
 0x593   : > { %10581 = vmatmul.mubr.bf16.vlgmr.msra.gmra.mrb[32].mxu1 %v15789_v4 }
 0x594   : > { %10617 = vmatpush3.bf16.msra.mxu1 %v11538_v46  ;;  %10584 = vmatprep.mubr.bf16.mxu1 %v15790_v33 }
 0x595   : > { %10618 = vmatprep.subr.bf16.mxu1 %v11539_v19 }
 0x598   : > { %10619 = vmatpush3.bf16.msra.mxu1 %v11539_v19 }
 0x599   : > { %10620 = vmatprep.subr.bf16.mxu1 %v11540_v56 }
 0x59b   : > { %10585 = vmatmul.mubr.bf16.gmra.mrb[0].mxu1 %v15791_v44 }
 0x59c   : > { %10588 = vmatprep.mubr.bf16.mxu1 %v15792_v29  ;;  %10621 = vmatpush3.bf16.msra.mxu1 %v11540_v56 }
 0x59d   : > { %10622 = vmatprep.subr.bf16.mxu1 %v11541_v41 }
 0x5a0   : > { %10623 = vmatpush3.bf16.msra.mxu1 %v11541_v41 }
 0x5a1   : > { %10624 = vmatprep.subr.bf16.mxu1 %v11542_v15 }
 0x5a3   : > { %10589 = vmatmul.mubr.bf16.gmra.mrb[4].mxu1 %v15793_v42 }
 0x5a4   : > { %10592 = vmatprep.mubr.bf16.mxu1 %v15794_v13  ;;  %10625 = vmatpush3.bf16.msra.mxu1 %v11542_v15 }
 0x5a5   : > { %10626 = vmatprep.subr.bf16.mxu1 %v11543_v54 }
 0x5a8   : > { %10627 = vmatpush3.bf16.msra.mxu1 %v11543_v54 }
 0x5a9   : > { %10628 = vmatprep.subr.bf16.mxu1 %v11544_v9 }
 0x5ab   : > { %10593 = vmatmul.mubr.bf16.gmra.mrb[8].mxu1 %v15795_v32 }
 0x5ac   : > { %10596 = vmatprep.mubr.bf16.mxu1 %v15796_v53  ;;  %10629 = vmatpush3.bf16.msra.mxu1 %v11544_v9 }
 0x5ad   : > { %10630 = vmatprep.subr.bf16.mxu1 %v11545_v1 }
 0x5b0   : > { %10631 = vmatpush3.bf16.msra.mxu1 %v11545_v1 }
 0x5b3   : > { %10597 = vmatmul.mubr.bf16.gmra.mrb[12].mxu1 %v15797_v52 }
 0x5b4   : > { %10600 = vmatprep.mubr.bf16.mxu1 %v14509_v21  ;;  %v8089_v21 = vsel %vm15799_vm9, %v14537_v14, %v8088_v24  ;;  %v15807_v14 = vld [vmem:[#allocation65_spill] sm:$0xff] }
 0x5bb   : > { %10601 = vmatmul.mubr.bf16.gmra.mrb[16].mxu1 %v15798_v3 }
 0x5bc   : > { %10604 = vmatprep.mubr.bf16.mxu1 %v14519_v27  ;;  %v15800_v27 = vld [vmem:[#allocation60_spill] sm:$0xff] }
 0x5c3   : > { %10605 = vmatmul.mubr.bf16.gmra.mrb[20].mxu1 %v14524_v48  ;;  %v15801_v48 = vld [vmem:[#allocation61_spill] sm:$0xff] }
 0x5c4   : > { %10608 = vmatprep.mubr.bf16.mxu1 %v14533_v17  ;;  %v15802_v17 = vld [vmem:[#allocation48_spill] sm:$0xff] }
 0x5cb   : > { %10609 = vmatmul.mubr.bf16.gmra.mrb[24].mxu1 %v14541_v26  ;;  %v15805_v26 = vld [vmem:[#allocation49_spill] sm:$0xff] }
 0x5cc   : > { %10612 = vmatprep.mubr.bf16.mxu1 %v14551_v57  ;;  %v15806_v57 = vld [vmem:[#allocation64_spill] sm:$0xff] }
 0x5d3   : > { %10613 = vmatmul.mubr.bf16.gmra.mrb[28].mxu1 %v8089_v21 }
 0x5d4   : > { %10632 = vmatprep.mubr.bf16.mxu1 %v14554_v18  ;;  %v15808_v18 = vld [vmem:[#allocation50_spill] sm:$0xff] }
 0x5db   : > { %10633 = vmatmul.mubr.bf16.vlgmr.msra.gmra.mrb[32].mxu1 %v15800_v27 }
 0x5dc   : > { %10636 = vmatprep.mubr.bf16.mxu1 %v15801_v48 }
 0x5e3   : > { %10637 = vmatmul.mubr.bf16.gmra.mrb[0].mxu1 %v15802_v17 }
 0x5e4   : > { %10640 = vmatprep.mubr.bf16.mxu1 %v15803_v47 }
 0x5eb   : > { %10641 = vmatmul.mubr.bf16.gmra.mrb[4].mxu1 %v15804_v49 }
 0x5ec   : > { %10644 = vmatprep.mubr.bf16.mxu1 %v14585_v34  ;;  %v15814_v34 = vld [vmem:[#allocation54_spill] sm:$0xff] }
 0x5f3   : > { %10645 = vmatmul.mubr.bf16.gmra.mrb[8].mxu1 %v15805_v26 }
 0x5f4   : > { %10648 = vmatprep.mubr.bf16.mxu1 %v15806_v57 }
 0x5fb   : > { %10649 = vmatmul.mubr.bf16.gmra.mrb[12].mxu1 %v15807_v14 }
 0x5fc   : > { %10652 = vmatprep.mubr.bf16.mxu1 %v15808_v18 }
 0x603   : > { %10653 = vmatmul.mubr.bf16.gmra.mrb[16].mxu1 %v15809_v50 }
 0x604   : > { %10656 = vmatprep.mubr.bf16.mxu1 %v15810_v30 }
 0x60b   : > { %10657 = vmatmul.mubr.bf16.gmra.mrb[20].mxu1 %v14615_v11 }
 0x60c   : > { %10660 = vmatprep.mubr.bf16.mxu1 %v15811_v45 }
 0x613   : > { %10661 = vmatmul.mubr.bf16.gmra.mrb[24].mxu1 %v15812_v35 }
 0x614   : > { %10664 = vmatprep.mubr.bf16.mxu1 %v15813_v10 }
 0x61b   : > { %10665 = vmatmul.mubr.bf16.gmra.mrb[28].mxu1 %v15814_v34 }
 0x6ae   : > { %v10634_v46 = vpop.f32.mrb[32].mxu1 }
 0x6af   : > { %v10684_v28 = vadd.f32 %v10634_v46, %v14658_v63  ;;  %v8527_v36 = vpop.f32.mrb[33].mxu1 }
 0x6b0   : > { %v10685_v11 = vadd.f32 %v8527_v36, %v14660_v43  ;;  %v10635_v58 = vpop.f32.mrb[34].mxu1 }
 0x6b1   : > { %v8715_v40 = vadd.f32 %v10684_v28, %v14945_v25  ;;  %v10686_v39 = vadd.f32 %v10635_v58, %v14663_v22  ;;  %v8530_v16 = vpop.f32.mrb[35].mxu1 }
 0x6b2   : > { %v8713_v63 = vadd.f32 %v10685_v11, %v14945_v25  ;;  %v10687_v60 = vadd.f32 %v8530_v16, %v14666_v23 }
 0x6b3   : > { %v8751_v43 = vmax.f32 %v8715_v40, 0.0  ;;  %v8716_v12 = vadd.f32 %v10686_v39, %v14945_v25 }
 0x6b4   : > { %v8749_v0 = vmax.f32 %v8713_v63, 0.0  ;;  %v8714_v22 = vadd.f32 %v10687_v60, %v14945_v25 }
 0x6b5   : > { %8787 = vst [vmem:[%s14954_s19 + $0x10] sm:$0xff] %v8751_v43  ;;  %v8752_v31 = vmax.f32 %v8716_v12, 0.0 }
 0x6b6   : > { %8785 = vst [vmem:[%s14954_s19] sm:$0xff] %v8749_v0  ;;  %v8750_v55 = vmax.f32 %v8714_v22, 0.0  ;;  %v10638_v59 = vpop.f32.mrb[0].mxu1 }
 0x6b7   : > { %8788 = vst [vmem:[%s14954_s19 + $0x18] sm:$0xff] %v8752_v31  ;;  %v8719_v2 = vadd.f32 %v10638_v59, %v14945_v25  ;;  %v8543_v38 = vpop.f32.mrb[1].mxu1 }
 0x6b8   : > { %8786 = vst [vmem:[%s14954_s19 + $0x8] sm:$0xff] %v8750_v55  ;;  %v8717_v23 = vadd.f32 %v14945_v25, %v8543_v38  ;;  %v10639_v7 = vpop.f32.mrb[2].mxu1 }
 0x6b9   : > { %v8755_v8 = vmax.f32 %v8719_v2, 0.0  ;;  %v8720_v51 = vadd.f32 %v10639_v7, %v14945_v25  ;;  %v8546_v20 = vpop.f32.mrb[3].mxu1 }
 0x6ba   : > { %v8753_v6 = vmax.f32 %v8717_v23, 0.0  ;;  %v8718_v19 = vadd.f32 %v14945_v25, %v8546_v20 }
 0x6bb   : > { %8791 = vst [vmem:[%s14954_s19 + $0x30] sm:$0xff] %v8755_v8  ;;  %v8756_v4 = vmax.f32 %v8720_v51, 0.0 }
 0x6bc   : > { %8789 = vst [vmem:[%s14954_s19 + $0x20] sm:$0xff] %v8753_v6  ;;  %v8754_v33 = vmax.f32 %v8718_v19, 0.0 }
 0x6bd   : > { %8792 = vst [vmem:[%s14954_s19 + $0x38] sm:$0xff] %v8756_v4 }
 0x6be   : > { %8790 = vst [vmem:[%s14954_s19 + $0x28] sm:$0xff] %v8754_v33  ;;  %v10642_v56 = vpop.f32.mrb[4].mxu1 }
 0x6bf   : > { %v8723_v41 = vadd.f32 %v10642_v56, %v14945_v25  ;;  %v8559_v44 = vpop.f32.mrb[5].mxu1 }
 0x6c0   : > { %v8721_v29 = vadd.f32 %v14945_v25, %v8559_v44  ;;  %v10643_v15 = vpop.f32.mrb[6].mxu1 }
 0x6c1   : > { %v8759_v54 = vmax.f32 %v8723_v41, 0.0  ;;  %v8724_v42 = vadd.f32 %v10643_v15, %v14945_v25  ;;  %v8562_v13 = vpop.f32.mrb[7].mxu1 }
 0x6c2   : > { %v8757_v9 = vmax.f32 %v8721_v29, 0.0  ;;  %v8722_v1 = vadd.f32 %v14945_v25, %v8562_v13 }
 0x6c3   : > { %8795 = vst [vmem:[%s14954_s19 + $0x50] sm:$0xff] %v8759_v54  ;;  %v8760_v32 = vmax.f32 %v8724_v42, 0.0 }
 0x6c4   : > { %8793 = vst [vmem:[%s14954_s19 + $0x40] sm:$0xff] %v8757_v9  ;;  %v8758_v53 = vmax.f32 %v8722_v1, 0.0 }
 0x6c5   : > { %8796 = vst [vmem:[%s14954_s19 + $0x58] sm:$0xff] %v8760_v32 }
 0x6c6   : > { %8794 = vst [vmem:[%s14954_s19 + $0x48] sm:$0xff] %v8758_v53  ;;  %v10646_v52 = vpop.f32.mrb[8].mxu1 }
 0x6c7   : > { %v8727_v3 = vadd.f32 %v10646_v52, %v14945_v25  ;;  %v8575_v61 = vpop.f32.mrb[9].mxu1 }
 0x6c8   : > { %v8725_v37 = vadd.f32 %v14945_v25, %v8575_v61  ;;  %v10647_v62 = vpop.f32.mrb[10].mxu1 }
 0x6c9   : > { %v8763_v5 = vmax.f32 %v8727_v3, 0.0  ;;  %v8728_v24 = vadd.f32 %v10647_v62, %v14945_v25  ;;  %v8578_v21 = vpop.f32.mrb[11].mxu1 }
 0x6ca   : > { %v8761_v27 = vmax.f32 %v8725_v37, 0.0  ;;  %v8726_v48 = vadd.f32 %v14945_v25, %v8578_v21 }
 0x6cb   : > { %8799 = vst [vmem:[%s14954_s19 + $0x70] sm:$0xff] %v8763_v5  ;;  %v8764_v17 = vmax.f32 %v8728_v24, 0.0 }
 0x6cc   : > { %8797 = vst [vmem:[%s14954_s19 + $0x60] sm:$0xff] %v8761_v27  ;;  %v8762_v47 = vmax.f32 %v8726_v48, 0.0 }
 0x6cd   : > { %8800 = vst [vmem:[%s14954_s19 + $0x78] sm:$0xff] %v8764_v17 }
 0x6ce   : > { %8798 = vst [vmem:[%s14954_s19 + $0x68] sm:$0xff] %v8762_v47  ;;  %v10650_v49 = vpop.f32.mrb[12].mxu1 }
 0x6cf   : > { %v8731_v26 = vadd.f32 %v10650_v49, %v14945_v25  ;;  %v8591_v57 = vpop.f32.mrb[13].mxu1 }
 0x6d0   : > { %v8729_v14 = vadd.f32 %v14945_v25, %v8591_v57  ;;  %v10651_v18 = vpop.f32.mrb[14].mxu1 }
 0x6d1   : > { %v8767_v50 = vmax.f32 %v8731_v26, 0.0  ;;  %v8732_v30 = vadd.f32 %v10651_v18, %v14945_v25  ;;  %v8594_v45 = vpop.f32.mrb[15].mxu1 }
 0x6d2   : > { %v8765_v35 = vmax.f32 %v8729_v14, 0.0  ;;  %v8730_v10 = vadd.f32 %v14945_v25, %v8594_v45 }
 0x6d3   : > { %8803 = vst [vmem:[%s14954_s19 + $0x90] sm:$0xff] %v8767_v50  ;;  %v8768_v34 = vmax.f32 %v8732_v30, 0.0 }
 0x6d4   : > { %8801 = vst [vmem:[%s14954_s19 + $0x80] sm:$0xff] %v8765_v35  ;;  %v8766_v46 = vmax.f32 %v8730_v10, 0.0 }
 0x6d5   : > { %8804 = vst [vmem:[%s14954_s19 + $0x98] sm:$0xff] %v8768_v34 }
 0x6d6   : > { %8802 = vst [vmem:[%s14954_s19 + $0x88] sm:$0xff] %v8766_v46  ;;  %v10654_v28 = vpop.f32.mrb[16].mxu1 }
 0x6d7   : > { %v8735_v36 = vadd.f32 %v10654_v28, %v14945_v25  ;;  %v8607_v11 = vpop.f32.mrb[17].mxu1 }
 0x6d8   : > { %v8733_v58 = vadd.f32 %v14945_v25, %v8607_v11  ;;  %v10655_v40 = vpop.f32.mrb[18].mxu1 }
 0x6d9   : > { %v8771_v39 = vmax.f32 %v8735_v36, 0.0  ;;  %v8736_v16 = vadd.f32 %v10655_v40, %v14945_v25  ;;  %v8610_v63 = vpop.f32.mrb[19].mxu1 }
 0x6da   : > { %v8769_v60 = vmax.f32 %v8733_v58, 0.0  ;;  %v8734_v43 = vadd.f32 %v14945_v25, %v8610_v63 }
 0x6db   : > { %8807 = vst [vmem:[%s14954_s19 + $0xb0] sm:$0xff] %v8771_v39  ;;  %v8772_v12 = vmax.f32 %v8736_v16, 0.0 }
 0x6dc   : > { %8805 = vst [vmem:[%s14954_s19 + $0xa0] sm:$0xff] %v8769_v60  ;;  %v8770_v0 = vmax.f32 %v8734_v43, 0.0 }
 0x6dd   : > { %8808 = vst [vmem:[%s14954_s19 + $0xb8] sm:$0xff] %v8772_v12 }
 0x6de   : > { %8806 = vst [vmem:[%s14954_s19 + $0xa8] sm:$0xff] %v8770_v0  ;;  %v10658_v22 = vpop.f32.mrb[20].mxu1 }
 0x6df   : > { %v8739_v31 = vadd.f32 %v10658_v22, %v14945_v25  ;;  %v8623_v55 = vpop.f32.mrb[21].mxu1 }
 0x6e0   : > { %v8737_v59 = vadd.f32 %v14945_v25, %v8623_v55  ;;  %v10659_v2 = vpop.f32.mrb[22].mxu1 }
 0x6e1   : > { %v8775_v38 = vmax.f32 %v8739_v31, 0.0  ;;  %v8740_v23 = vadd.f32 %v10659_v2, %v14945_v25  ;;  %v8626_v7 = vpop.f32.mrb[23].mxu1 }
 0x6e2   : > { %v8773_v8 = vmax.f32 %v8737_v59, 0.0  ;;  %v8738_v51 = vadd.f32 %v14945_v25, %v8626_v7 }
 0x6e3   : > { %8811 = vst [vmem:[%s14954_s19 + $0xd0] sm:$0xff] %v8775_v38  ;;  %v8776_v20 = vmax.f32 %v8740_v23, 0.0 }
 0x6e4   : > { %8809 = vst [vmem:[%s14954_s19 + $0xc0] sm:$0xff] %v8773_v8  ;;  %v8774_v6 = vmax.f32 %v8738_v51, 0.0 }
 0x6e5   : > { %8812 = vst [vmem:[%s14954_s19 + $0xd8] sm:$0xff] %v8776_v20 }
 0x6e6   : > { %8810 = vst [vmem:[%s14954_s19 + $0xc8] sm:$0xff] %v8774_v6  ;;  %v10662_v19 = vpop.f32.mrb[24].mxu1 }
 0x6e7   : > { %v8743_v4 = vadd.f32 %v10662_v19, %v14945_v25  ;;  %v8639_v33 = vpop.f32.mrb[25].mxu1 }
 0x6e8   : > { %v8741_v56 = vadd.f32 %v14945_v25, %v8639_v33  ;;  %v10663_v41 = vpop.f32.mrb[26].mxu1 }
 0x6e9   : > { %v8779_v44 = vmax.f32 %v8743_v4, 0.0  ;;  %v8744_v29 = vadd.f32 %v10663_v41, %v14945_v25  ;;  %v8642_v15 = vpop.f32.mrb[27].mxu1 }
 0x6ea   : > { %v8777_v54 = vmax.f32 %v8741_v56, 0.0  ;;  %v8742_v42 = vadd.f32 %v14945_v25, %v8642_v15 }
 0x6eb   : > { %8815 = vst [vmem:[%s14954_s19 + $0xf0] sm:$0xff] %v8779_v44  ;;  %v8780_v13 = vmax.f32 %v8744_v29, 0.0 }
 0x6ec   : > { %8813 = vst [vmem:[%s14954_s19 + $0xe0] sm:$0xff] %v8777_v54  ;;  %v8778_v9 = vmax.f32 %v8742_v42, 0.0 }
 0x6ed   : > { %8816 = vst [vmem:[%s14954_s19 + $0xf8] sm:$0xff] %v8780_v13 }
 0x6ee   : > { %8814 = vst [vmem:[%s14954_s19 + $0xe8] sm:$0xff] %v8778_v9  ;;  %v10666_v1 = vpop.f32.mrb[28].mxu1 }
 0x6ef   : > { %v8747_v32 = vadd.f32 %v10666_v1, %v14945_v25  ;;  %v8655_v53 = vpop.f32.mrb[29].mxu1 }
 0x6f0   : > { %v8745_v52 = vadd.f32 %v14945_v25, %v8655_v53  ;;  %v10667_v3 = vpop.f32.mrb[30].mxu1 }
 0x6f1   : > { %v8783_v61 = vmax.f32 %v8747_v32, 0.0  ;;  %v8748_v37 = vadd.f32 %v10667_v3, %v14945_v25  ;;  %v8658_v62 = vpop.f32.mrb[31].mxu1 }
 0x6f2   : > { %v8781_v5 = vmax.f32 %v8745_v52, 0.0  ;;  %v8746_v24 = vadd.f32 %v14945_v25, %v8658_v62 }
 0x6f3   : > { %8819 = vst [vmem:[%s14954_s19 + $0x110] sm:$0xff] %v8783_v61  ;;  %v8784_v21 = vmax.f32 %v8748_v37, 0.0 }
 0x6f4   : > { %8817 = vst [vmem:[%s14954_s19 + $0x100] sm:$0xff] %v8781_v5  ;;  %v8782_v27 = vmax.f32 %v8746_v24, 0.0 }
 0x6f5   : > { %8820 = vst [vmem:[%s14954_s19 + $0x118] sm:$0xff] %v8784_v21 }
 0x6f6   : > { %8818 = vst [vmem:[%s14954_s19 + $0x108] sm:$0xff] %v8782_v27 }
 0x6f7 PF: > { %s15_s18 = sadd.s32 1, %s11572_s18  }
 0x6f8   : > { %p12_p4 = scmp.ge.s32.totalorder %s15_s18, 4  }
 0x6fa   :  { %14 = sbr.rel (!%p12_p4) target bundleno = 1 (0x1), region = 86 }

</bundles_post_ra>
